<compile_context>
chip_gen: v6e
topology: v6e:2x2x1
jax: 0.10.0
libtpu: 0.0.40
codegen_flags: <defaults>
</compile_context>

<pallas_src>
import functools

import numpy as np
import jax
import jax.numpy as jnp
from jax.experimental import pallas as pl
from jax.experimental.pallas import tpu as pltpu

# Shapes fixed by the PyTorch module (backbone '18'/'34' config).
CLS_DIM = (37, 10, 4)
TOTAL_DIM = int(np.prod(CLS_DIM))      # 1480
C_IN = 512                             # pool = nn.Conv2d(512, 8, 1)
POOL_OUT = 8
FEA_H, FEA_W = 9, 25                   # backbone feature map for 288x800 input
S = FEA_H * FEA_W                      # 225 spatial positions
FLAT = POOL_OUT * S                    # 1800  (nn.Linear(1800, 2048))
HIDDEN = 2048
SEG = 256                              # lane-aligned per-channel segment (>= 225)
FLAT_PAD = POOL_OUT * SEG              # 2048 padded flat length

NUM_CORES = 2                          # parallel grid axis (2 TCs on v7x)
TILE_H = 512                           # hidden-dim tile per grid step
K_TILES = HIDDEN // TILE_H             # 4 hidden tiles total
K_PER_CORE = K_TILES // NUM_CORES      # 2 steps per core


def _fused_kernel(fea_ref, pw_ref, pb_ref, w1_ref, b1_ref, w2_ref,
                  o_ref, flat_ref, *, batch):
    """Grid: (core, hidden-tile).  fea / pool params have constant index maps
    (DMA'd once); pooled+flattened bf16 activations live in VMEM scratch; the
    per-core (1, B, 1480) output block is the resident f32 accumulator over
    the inner ("arbitrary") hidden axis."""
    k = pl.program_id(1)

    @pl.when(k == 0)
    def _init():
        # Resident per-core output block -> zero-init accumulator.
        o_ref[...] = jnp.zeros_like(o_ref)
        # Zero the flat buffer so the 225->256 pad lanes contribute nothing
        # (w1's pad rows are zero too).
        flat_ref[...] = jnp.zeros_like(flat_ref)
        pw = pw_ref[...]                       # (8, 512) bf16
        pb = pb_ref[...]                       # (8, 1)   f32
        for b in range(batch):                 # batch is small and static
            # 1x1 conv as a lane-dense matmul: (8, 512) @ (512, 225), f32 acc.
            p = jnp.dot(pw, fea_ref[b].astype(jnp.bfloat16),
                        preferred_element_type=jnp.float32) + pb
            # One masked store per batch; channel-major flatten comes from the
            # (POOL_OUT, SEG) scratch layout matching w1's padded row order.
            flat_ref[b, :, :S] = p.astype(jnp.bfloat16)

    # ---- self.cls: Linear -> ReLU -> Linear, one HIDDEN tile per step ----
    # Contract the padded flat dim segment-by-segment (8 small MXU matmuls);
    # avoids any in-kernel relayout/reshape, compute hidden under the w1 DMA.
    h = jnp.dot(flat_ref[:, 0, :], w1_ref[0, 0:SEG, :],
                preferred_element_type=jnp.float32)
    for c in range(1, POOL_OUT):
        h += jnp.dot(flat_ref[:, c, :], w1_ref[0, c * SEG:(c + 1) * SEG, :],
                     preferred_element_type=jnp.float32)
    h = jnp.maximum(h + b1_ref[...], 0.0).astype(jnp.bfloat16)   # +b1, ReLU
    o_ref[0] += jnp.dot(h, w2_ref[...], preferred_element_type=jnp.float32)


def init_params(key):
    """PyTorch-layout f32 master parameters (as the module initializes them)."""
    kp, k1, kb1, k2, kb2 = jax.random.split(key, 5)
    return {
        # nn.Conv2d(512, 8, 1): kaiming_normal_ weight, bias = 0
        "pool_w": jax.random.normal(kp, (POOL_OUT, C_IN, 1, 1), jnp.float32)
        * float(np.sqrt(2.0 / C_IN)),
        "pool_b": jnp.zeros((POOL_OUT,), jnp.float32),
        # nn.Linear(1800, 2048) / nn.Linear(2048, 1480): weight ~ N(0, 0.01)
        "w1": jax.random.normal(k1, (HIDDEN, FLAT), jnp.float32) * 0.01,
        "b1": jax.random.uniform(kb1, (HIDDEN,), jnp.float32, -0.02, 0.02),
        "w2": jax.random.normal(k2, (TOTAL_DIM, HIDDEN), jnp.float32) * 0.01,
        "b2": jax.random.uniform(kb2, (TOTAL_DIM,), jnp.float32, -0.02, 0.02),
    }


def prepare_params(params):
    """One-time conversion to the kernel layout (NOT per forward):
      * pool_w / w1 / w2 cast to bf16 (biases stay f32, accumulation is f32);
      * w1 rows regrouped into 8 zero-padded 256-row lane-aligned segments
        matching the in-kernel padded flatten, then PRE-TILED along HIDDEN so
        each grid step's w1 tile is one contiguous slab in HBM;
      * w2 pre-transposed to (HIDDEN, TOTAL_DIM) so its tiles are leading-dim
        (contiguous) row slabs."""
    w1_t = params["w1"].T.reshape(POOL_OUT, S, HIDDEN)            # (8, 225, 2048)
    w1_pad = jnp.zeros((POOL_OUT, SEG, HIDDEN), jnp.float32)
    w1_pad = w1_pad.at[:, :S, :].set(w1_t)                        # zero pad rows
    w1_pad = w1_pad.reshape(FLAT_PAD, HIDDEN)                     # (2048, 2048)
    # Pre-tile along HIDDEN: (n_tiles, FLAT_PAD, TILE_H), contiguous per tile.
    w1_tiled = w1_pad.reshape(FLAT_PAD, K_TILES, TILE_H).transpose(1, 0, 2)
    return {
        "pool_w": params["pool_w"].reshape(POOL_OUT, C_IN).astype(jnp.bfloat16),
        "pool_b": params["pool_b"].reshape(POOL_OUT, 1).astype(jnp.float32),
        "w1": w1_tiled.astype(jnp.bfloat16),                      # (4, 2048, 512)
        "b1": params["b1"].reshape(1, HIDDEN).astype(jnp.float32),
        "w2": params["w2"].T.astype(jnp.bfloat16),                # (2048, 1480)
        "b2": params["b2"].reshape(1, TOTAL_DIM).astype(jnp.float32),
    }


def parsing_net_forward(fea, kparams):
    """ParsingNet.forward with use_aux=False, starting from the backbone
    feature map `fea` (NCHW: B x 512 x 9 x 25)."""
    B, C, H, W = fea.shape
    assert (C, H, W) == (C_IN, FEA_H, FEA_W), (C, H, W)
    assert HIDDEN % (NUM_CORES * TILE_H) == 0
    fea3 = fea.reshape(B, C, H * W)          # contiguous reshape, no transpose

    kernel = functools.partial(_fused_kernel, batch=B)
    partials = pl.pallas_call(
        kernel,
        out_shape=jax.ShapeDtypeStruct((NUM_CORES, B, TOTAL_DIM), jnp.float32),
        grid_spec=pltpu.PrefetchScalarGridSpec(
            num_scalar_prefetch=0,
            grid=(NUM_CORES, K_PER_CORE),
            in_specs=[
                pl.BlockSpec((B, C_IN, S), lambda c, k: (0, 0, 0)),       # fea
                pl.BlockSpec((POOL_OUT, C_IN), lambda c, k: (0, 0)),      # pool w
                pl.BlockSpec((POOL_OUT, 1), lambda c, k: (0, 0)),         # pool b
                pl.BlockSpec((1, FLAT_PAD, TILE_H),                       # w1 tile
                             lambda c, k: (c * K_PER_CORE + k, 0, 0)),
                pl.BlockSpec((1, TILE_H),                                 # b1 tile
                             lambda c, k: (0, c * K_PER_CORE + k)),
                pl.BlockSpec((TILE_H, TOTAL_DIM),                         # w2 tile
                             lambda c, k: (c * K_PER_CORE + k, 0)),
            ],
            out_specs=pl.BlockSpec((1, B, TOTAL_DIM), lambda c, k: (c, 0, 0)),
            scratch_shapes=[pltpu.VMEM((B, POOL_OUT, SEG), jnp.bfloat16)],
        ),
        compiler_params=pltpu.CompilerParams(
            # leading axis shards the HIDDEN reduction across TensorCores
            # (per-core partial outputs -> no accumulator race); inner axis is
            # the per-core resident-accumulator reduction.
            dimension_semantics=("parallel", "arbitrary"),
            vmem_limit_bytes=32 * 1024 * 1024,           # fits v5e/v6e/v7x
        ),
    )(fea3, kparams["pool_w"], kparams["pool_b"], kparams["w1"],
      kparams["b1"], kparams["w2"])

    # Reduce the per-core partial sums and add b2 (~12 KB XLA add).
    out = partials.sum(axis=0) + kparams["b2"]
    return out.reshape(B, *CLS_DIM)                      # (B, 37, 10, 4)


def parsing_net_reference(fea, params):
    """Pure-JAX f32 reference (PyTorch-layout master params)."""
    B, C, H, W = fea.shape
    pooled = (
        jnp.einsum("oc,bchw->bohw", params["pool_w"].reshape(POOL_OUT, C), fea)
        + params["pool_b"][None, :, None, None]
    )
    flat = pooled.reshape(B, -1)
    h = jnp.maximum(flat @ params["w1"].T + params["b1"], 0.0)
    out = h @ params["w2"].T + params["b2"]
    return out.reshape(B, *CLS_DIM)


if __name__ == "__main__":
    key = jax.random.PRNGKey(0)
    k_fea, k_par = jax.random.split(key)

    # ResNet-18/34 style feature map for a 288x800 input: (B, 512, 9, 25)
    # (8 pooled channels * 9 * 25 = 1800, matching the hard-coded Linear(1800,...)).
    B = 2
    fea = jax.random.normal(k_fea, (B, C_IN, FEA_H, FEA_W), jnp.float32)
    params = init_params(k_par)
    kparams = prepare_params(params)       # one-time layout/bf16 conversion

    fwd = jax.jit(parsing_net_forward)
    out = jax.block_until_ready(fwd(fea, kparams))
    ref = parsing_net_reference(fea, params)

    assert out.shape == (B,) + CLS_DIM, out.shape
    assert out.dtype == jnp.float32
    # bf16 weights/activations in the matmuls -> loosened tolerance vs f32 ref.
    np.testing.assert_allclose(np.asarray(out), np.asarray(ref), rtol=2e-2, atol=2e-2)
    print("KERNEL_OK")
</pallas_src>

<mosaic_0001>
module attributes {stable_mosaic.version = 11 : i64} {
  func.func @_fused_kernel(%arg0: i32, %arg1: i32, %arg2: memref<2x512x225xf32, #tpu.memory_space<vmem>>, %arg3: memref<8x512xbf16, #tpu.memory_space<vmem>>, %arg4: memref<8x1xf32, #tpu.memory_space<vmem>>, %arg5: memref<1x2048x512xbf16, #tpu.memory_space<vmem>>, %arg6: memref<1x512xf32, #tpu.memory_space<vmem>>, %arg7: memref<512x1480xbf16, #tpu.memory_space<vmem>>, %arg8: memref<1x2x1480xf32, #tpu.memory_space<vmem>>, %arg9: memref<2x8x256xbf16, #tpu.memory_space<vmem>>) attributes {dimension_semantics = [#tpu.dimension_semantics<parallel>, #tpu.dimension_semantics<arbitrary>], iteration_bounds = array<i64: 2, 2>, scalar_prefetch = 0 : i64, scratch_operands = 1 : i64, tpu.core_type = #tpu.core_type<tc>, window_params = [{pipeline_mode = #tpu.pipeline_mode<synchronous>, transform_indices = @transform_0, window_bounds = array<i64: 2, 512, 225>}, {pipeline_mode = #tpu.pipeline_mode<synchronous>, transform_indices = @transform_1, window_bounds = array<i64: 8, 512>}, {pipeline_mode = #tpu.pipeline_mode<synchronous>, transform_indices = @transform_2, window_bounds = array<i64: 8, 1>}, {transform_indices = @transform_3, window_bounds = array<i64: 1, 2048, 512>}, {transform_indices = @transform_4, window_bounds = array<i64: 1, 512>}, {transform_indices = @transform_5, window_bounds = array<i64: 512, 1480>}, {transform_indices = @transform_6, window_bounds = array<i64: 1, 2, 1480>}]} {
    %c0_i32 = arith.constant 0 : i32
    %0 = arith.cmpi eq, %arg1, %c0_i32 : i32
    %1 = arith.extui %0 : i1 to i32
    %c0_i32_0 = arith.constant 0 : i32
    %2 = arith.cmpi ne, %1, %c0_i32_0 : i32
    scf.if %2 {
      %cst_53 = arith.constant 0.000000e+00 : f32
      %64 = vector.broadcast %cst_53 : f32 to vector<1x2x1480xf32>
      %c0_54 = arith.constant 0 : index
      %c0_55 = arith.constant 0 : index
      %c0_56 = arith.constant 0 : index
      %65 = vector.load %arg8[%c0_54, %c0_55, %c0_56] : memref<1x2x1480xf32, #tpu.memory_space<vmem>>, vector<1x2x1480xf32>
      tpu.vector_store %arg8[%c0_54, %c0_55, %c0_56], %64 {strides = array<i32>} : memref<1x2x1480xf32, #tpu.memory_space<vmem>>, vector<1x2x1480xf32>,
      %cst_57 = arith.constant 0.000000e+00 : bf16
      %66 = vector.broadcast %cst_57 : bf16 to vector<2x8x256xbf16>
      %c0_58 = arith.constant 0 : index
      %c0_59 = arith.constant 0 : index
      %c0_60 = arith.constant 0 : index
      %67 = vector.load %arg9[%c0_58, %c0_59, %c0_60] : memref<2x8x256xbf16, #tpu.memory_space<vmem>>, vector<2x8x256xbf16>
      tpu.vector_store %arg9[%c0_58, %c0_59, %c0_60], %66 {strides = array<i32>} : memref<2x8x256xbf16, #tpu.memory_space<vmem>>, vector<2x8x256xbf16>,
      %c0_61 = arith.constant 0 : index
      %c0_62 = arith.constant 0 : index
      %68 = vector.load %arg3[%c0_61, %c0_62] : memref<8x512xbf16, #tpu.memory_space<vmem>>, vector<8x512xbf16>
      %c0_63 = arith.constant 0 : index
      %c0_64 = arith.constant 0 : index
      %69 = vector.load %arg4[%c0_63, %c0_64] : memref<8x1xf32, #tpu.memory_space<vmem>>, vector<8x1xf32>
      %c0_65 = arith.constant 0 : index
      %c0_66 = arith.constant 0 : index
      %c0_67 = arith.constant 0 : index
      %70 = vector.load %arg2[%c0_65, %c0_66, %c0_67] : memref<2x512x225xf32, #tpu.memory_space<vmem>>, vector<1x512x225xf32>
      %71 = vector.shape_cast %70 : vector<1x512x225xf32> to vector<512x225xf32>
      %72 = arith.truncf %71 : vector<512x225xf32> to vector<512x225xbf16>
      %cst_68 = arith.constant dense<0.000000e+00> : vector<8x225xf32>
      %73 = tpu.matmul %68, %72, %cst_68 {dimension_numbers = #tpu.dot_dimension_numbers<[1], [0], [0], [1], [0, 0, 1, 1], [], []>} : vector<8x512xbf16>, vector<512x225xbf16>, vector<8x225xf32> -> vector<8x225xf32>
      %74 = vector.broadcast %69 : vector<8x1xf32> to vector<8x225xf32>
      %75 = arith.addf %73, %74 : vector<8x225xf32>
      %76 = arith.truncf %75 : vector<8x225xf32> to vector<8x225xbf16>
      %c0_69 = arith.constant 0 : index
      %c0_70 = arith.constant 0 : index
      %c0_71 = arith.constant 0 : index
      %77 = vector.load %arg9[%c0_69, %c0_70, %c0_71] : memref<2x8x256xbf16, #tpu.memory_space<vmem>>, vector<1x8x225xbf16>
      %78 = vector.shape_cast %77 : vector<1x8x225xbf16> to vector<8x225xbf16>
      %79 = vector.shape_cast %76 : vector<8x225xbf16> to vector<1x8x225xbf16>
      tpu.vector_store %arg9[%c0_69, %c0_70, %c0_71], %79 {strides = array<i32>} : memref<2x8x256xbf16, #tpu.memory_space<vmem>>, vector<1x8x225xbf16>,
      %c1_72 = arith.constant 1 : index
      %c0_73 = arith.constant 0 : index
      %c0_74 = arith.constant 0 : index
      %80 = vector.load %arg2[%c1_72, %c0_73, %c0_74] : memref<2x512x225xf32, #tpu.memory_space<vmem>>, vector<1x512x225xf32>
      %81 = vector.shape_cast %80 : vector<1x512x225xf32> to vector<512x225xf32>
      %82 = arith.truncf %81 : vector<512x225xf32> to vector<512x225xbf16>
      %cst_75 = arith.constant dense<0.000000e+00> : vector<8x225xf32>
      %83 = tpu.matmul %68, %82, %cst_75 {dimension_numbers = #tpu.dot_dimension_numbers<[1], [0], [0], [1], [0, 0, 1, 1], [], []>} : vector<8x512xbf16>, vector<512x225xbf16>, vector<8x225xf32> -> vector<8x225xf32>
      %84 = vector.broadcast %69 : vector<8x1xf32> to vector<8x225xf32>
      %85 = arith.addf %83, %84 : vector<8x225xf32>
      %86 = arith.truncf %85 : vector<8x225xf32> to vector<8x225xbf16>
      %c1_76 = arith.constant 1 : index
      %c0_77 = arith.constant 0 : index
      %c0_78 = arith.constant 0 : index
      %87 = vector.load %arg9[%c1_76, %c0_77, %c0_78] : memref<2x8x256xbf16, #tpu.memory_space<vmem>>, vector<1x8x225xbf16>
      %88 = vector.shape_cast %87 : vector<1x8x225xbf16> to vector<8x225xbf16>
      %89 = vector.shape_cast %86 : vector<8x225xbf16> to vector<1x8x225xbf16>
      tpu.vector_store %arg9[%c1_76, %c0_77, %c0_78], %89 {strides = array<i32>} : memref<2x8x256xbf16, #tpu.memory_space<vmem>>, vector<1x8x225xbf16>,
    } else {
    }
    %c0 = arith.constant 0 : index
    %c0_1 = arith.constant 0 : index
    %c0_2 = arith.constant 0 : index
    %3 = vector.load %arg9[%c0, %c0_1, %c0_2] : memref<2x8x256xbf16, #tpu.memory_space<vmem>>, vector<2x1x256xbf16>
    %4 = vector.shape_cast %3 : vector<2x1x256xbf16> to vector<2x256xbf16>
    %c0_3 = arith.constant 0 : index
    %c0_4 = arith.constant 0 : index
    %c0_5 = arith.constant 0 : index
    %5 = vector.load %arg5[%c0_3, %c0_4, %c0_5] : memref<1x2048x512xbf16, #tpu.memory_space<vmem>>, vector<1x256x512xbf16>
    %6 = vector.shape_cast %5 : vector<1x256x512xbf16> to vector<256x512xbf16>
    %cst = arith.constant dense<0.000000e+00> : vector<2x512xf32>
    %7 = tpu.matmul %4, %6, %cst {dimension_numbers = #tpu.dot_dimension_numbers<[1], [0], [0], [1], [0, 0, 1, 1], [], []>} : vector<2x256xbf16>, vector<256x512xbf16>, vector<2x512xf32> -> vector<2x512xf32>
    %c0_6 = arith.constant 0 : index
    %c1 = arith.constant 1 : index
    %c0_7 = arith.constant 0 : index
    %8 = vector.load %arg9[%c0_6, %c1, %c0_7] : memref<2x8x256xbf16, #tpu.memory_space<vmem>>, vector<2x1x256xbf16>
    %9 = vector.shape_cast %8 : vector<2x1x256xbf16> to vector<2x256xbf16>
    %c0_8 = arith.constant 0 : index
    %c256 = arith.constant 256 : index
    %c0_9 = arith.constant 0 : index
    %10 = vector.load %arg5[%c0_8, %c256, %c0_9] : memref<1x2048x512xbf16, #tpu.memory_space<vmem>>, vector<1x256x512xbf16>
    %11 = vector.shape_cast %10 : vector<1x256x512xbf16> to vector<256x512xbf16>
    %cst_10 = arith.constant dense<0.000000e+00> : vector<2x512xf32>
    %12 = tpu.matmul %9, %11, %cst_10 {dimension_numbers = #tpu.dot_dimension_numbers<[1], [0], [0], [1], [0, 0, 1, 1], [], []>} : vector<2x256xbf16>, vector<256x512xbf16>, vector<2x512xf32> -> vector<2x512xf32>
    %13 = arith.addf %7, %12 : vector<2x512xf32>
    %c0_11 = arith.constant 0 : index
    %c2 = arith.constant 2 : index
    %c0_12 = arith.constant 0 : index
    %14 = vector.load %arg9[%c0_11, %c2, %c0_12] : memref<2x8x256xbf16, #tpu.memory_space<vmem>>, vector<2x1x256xbf16>
    %15 = vector.shape_cast %14 : vector<2x1x256xbf16> to vector<2x256xbf16>
    %c0_13 = arith.constant 0 : index
    %c512 = arith.constant 512 : index
    %c0_14 = arith.constant 0 : index
    %16 = vector.load %arg5[%c0_13, %c512, %c0_14] : memref<1x2048x512xbf16, #tpu.memory_space<vmem>>, vector<1x256x512xbf16>
    %17 = vector.shape_cast %16 : vector<1x256x512xbf16> to vector<256x512xbf16>
    %cst_15 = arith.constant dense<0.000000e+00> : vector<2x512xf32>
    %18 = tpu.matmul %15, %17, %cst_15 {dimension_numbers = #tpu.dot_dimension_numbers<[1], [0], [0], [1], [0, 0, 1, 1], [], []>} : vector<2x256xbf16>, vector<256x512xbf16>, vector<2x512xf32> -> vector<2x512xf32>
    %19 = arith.addf %13, %18 : vector<2x512xf32>
    %c0_16 = arith.constant 0 : index
    %c3 = arith.constant 3 : index
    %c0_17 = arith.constant 0 : index
    %20 = vector.load %arg9[%c0_16, %c3, %c0_17] : memref<2x8x256xbf16, #tpu.memory_space<vmem>>, vector<2x1x256xbf16>
    %21 = vector.shape_cast %20 : vector<2x1x256xbf16> to vector<2x256xbf16>
    %c0_18 = arith.constant 0 : index
    %c768 = arith.constant 768 : index
    %c0_19 = arith.constant 0 : index
    %22 = vector.load %arg5[%c0_18, %c768, %c0_19] : memref<1x2048x512xbf16, #tpu.memory_space<vmem>>, vector<1x256x512xbf16>
    %23 = vector.shape_cast %22 : vector<1x256x512xbf16> to vector<256x512xbf16>
    %cst_20 = arith.constant dense<0.000000e+00> : vector<2x512xf32>
    %24 = tpu.matmul %21, %23, %cst_20 {dimension_numbers = #tpu.dot_dimension_numbers<[1], [0], [0], [1], [0, 0, 1, 1], [], []>} : vector<2x256xbf16>, vector<256x512xbf16>, vector<2x512xf32> -> vector<2x512xf32>
    %25 = arith.addf %19, %24 : vector<2x512xf32>
    %c0_21 = arith.constant 0 : index
    %c4 = arith.constant 4 : index
    %c0_22 = arith.constant 0 : index
    %26 = vector.load %arg9[%c0_21, %c4, %c0_22] : memref<2x8x256xbf16, #tpu.memory_space<vmem>>, vector<2x1x256xbf16>
    %27 = vector.shape_cast %26 : vector<2x1x256xbf16> to vector<2x256xbf16>
    %c0_23 = arith.constant 0 : index
    %c1024 = arith.constant 1024 : index
    %c0_24 = arith.constant 0 : index
    %28 = vector.load %arg5[%c0_23, %c1024, %c0_24] : memref<1x2048x512xbf16, #tpu.memory_space<vmem>>, vector<1x256x512xbf16>
    %29 = vector.shape_cast %28 : vector<1x256x512xbf16> to vector<256x512xbf16>
    %cst_25 = arith.constant dense<0.000000e+00> : vector<2x512xf32>
    %30 = tpu.matmul %27, %29, %cst_25 {dimension_numbers = #tpu.dot_dimension_numbers<[1], [0], [0], [1], [0, 0, 1, 1], [], []>} : vector<2x256xbf16>, vector<256x512xbf16>, vector<2x512xf32> -> vector<2x512xf32>
    %31 = arith.addf %25, %30 : vector<2x512xf32>
    %c0_26 = arith.constant 0 : index
    %c5 = arith.constant 5 : index
    %c0_27 = arith.constant 0 : index
    %32 = vector.load %arg9[%c0_26, %c5, %c0_27] : memref<2x8x256xbf16, #tpu.memory_space<vmem>>, vector<2x1x256xbf16>
    %33 = vector.shape_cast %32 : vector<2x1x256xbf16> to vector<2x256xbf16>
    %c0_28 = arith.constant 0 : index
    %c1280 = arith.constant 1280 : index
    %c0_29 = arith.constant 0 : index
    %34 = vector.load %arg5[%c0_28, %c1280, %c0_29] : memref<1x2048x512xbf16, #tpu.memory_space<vmem>>, vector<1x256x512xbf16>
    %35 = vector.shape_cast %34 : vector<1x256x512xbf16> to vector<256x512xbf16>
    %cst_30 = arith.constant dense<0.000000e+00> : vector<2x512xf32>
    %36 = tpu.matmul %33, %35, %cst_30 {dimension_numbers = #tpu.dot_dimension_numbers<[1], [0], [0], [1], [0, 0, 1, 1], [], []>} : vector<2x256xbf16>, vector<256x512xbf16>, vector<2x512xf32> -> vector<2x512xf32>
    %37 = arith.addf %31, %36 : vector<2x512xf32>
    %c0_31 = arith.constant 0 : index
    %c6 = arith.constant 6 : index
    %c0_32 = arith.constant 0 : index
    %38 = vector.load %arg9[%c0_31, %c6, %c0_32] : memref<2x8x256xbf16, #tpu.memory_space<vmem>>, vector<2x1x256xbf16>
    %39 = vector.shape_cast %38 : vector<2x1x256xbf16> to vector<2x256xbf16>
    %c0_33 = arith.constant 0 : index
    %c1536 = arith.constant 1536 : index
    %c0_34 = arith.constant 0 : index
    %40 = vector.load %arg5[%c0_33, %c1536, %c0_34] : memref<1x2048x512xbf16, #tpu.memory_space<vmem>>, vector<1x256x512xbf16>
    %41 = vector.shape_cast %40 : vector<1x256x512xbf16> to vector<256x512xbf16>
    %cst_35 = arith.constant dense<0.000000e+00> : vector<2x512xf32>
    %42 = tpu.matmul %39, %41, %cst_35 {dimension_numbers = #tpu.dot_dimension_numbers<[1], [0], [0], [1], [0, 0, 1, 1], [], []>} : vector<2x256xbf16>, vector<256x512xbf16>, vector<2x512xf32> -> vector<2x512xf32>
    %43 = arith.addf %37, %42 : vector<2x512xf32>
    %c0_36 = arith.constant 0 : index
    %c7 = arith.constant 7 : index
    %c0_37 = arith.constant 0 : index
    %44 = vector.load %arg9[%c0_36, %c7, %c0_37] : memref<2x8x256xbf16, #tpu.memory_space<vmem>>, vector<2x1x256xbf16>
    %45 = vector.shape_cast %44 : vector<2x1x256xbf16> to vector<2x256xbf16>
    %c0_38 = arith.constant 0 : index
    %c1792 = arith.constant 1792 : index
    %c0_39 = arith.constant 0 : index
    %46 = vector.load %arg5[%c0_38, %c1792, %c0_39] : memref<1x2048x512xbf16, #tpu.memory_space<vmem>>, vector<1x256x512xbf16>
    %47 = vector.shape_cast %46 : vector<1x256x512xbf16> to vector<256x512xbf16>
    %cst_40 = arith.constant dense<0.000000e+00> : vector<2x512xf32>
    %48 = tpu.matmul %45, %47, %cst_40 {dimension_numbers = #tpu.dot_dimension_numbers<[1], [0], [0], [1], [0, 0, 1, 1], [], []>} : vector<2x256xbf16>, vector<256x512xbf16>, vector<2x512xf32> -> vector<2x512xf32>
    %49 = arith.addf %43, %48 : vector<2x512xf32>
    %c0_41 = arith.constant 0 : index
    %c0_42 = arith.constant 0 : index
    %50 = vector.load %arg6[%c0_41, %c0_42] : memref<1x512xf32, #tpu.memory_space<vmem>>, vector<1x512xf32>
    %51 = vector.broadcast %50 : vector<1x512xf32> to vector<2x512xf32>
    %52 = arith.addf %49, %51 : vector<2x512xf32>
    %cst_43 = arith.constant 0.000000e+00 : f32
    %53 = vector.broadcast %cst_43 : f32 to vector<2x512xf32>
    %54 = arith.maximumf %52, %53 : vector<2x512xf32>
    %55 = arith.truncf %54 : vector<2x512xf32> to vector<2x512xbf16>
    %c0_44 = arith.constant 0 : index
    %c0_45 = arith.constant 0 : index
    %c0_46 = arith.constant 0 : index
    %56 = vector.load %arg8[%c0_44, %c0_45, %c0_46] : memref<1x2x1480xf32, #tpu.memory_space<vmem>>, vector<1x2x1480xf32>
    %57 = vector.shape_cast %56 : vector<1x2x1480xf32> to vector<2x1480xf32>
    %c0_47 = arith.constant 0 : index
    %c0_48 = arith.constant 0 : index
    %58 = vector.load %arg7[%c0_47, %c0_48] : memref<512x1480xbf16, #tpu.memory_space<vmem>>, vector<512x1480xbf16>
    %cst_49 = arith.constant dense<0.000000e+00> : vector<2x1480xf32>
    %59 = tpu.matmul %55, %58, %cst_49 {dimension_numbers = #tpu.dot_dimension_numbers<[1], [0], [0], [1], [0, 0, 1, 1], [], []>} : vector<2x512xbf16>, vector<512x1480xbf16>, vector<2x1480xf32> -> vector<2x1480xf32>
    %60 = arith.addf %57, %59 : vector<2x1480xf32>
    %c0_50 = arith.constant 0 : index
    %c0_51 = arith.constant 0 : index
    %c0_52 = arith.constant 0 : index
    %61 = vector.load %arg8[%c0_50, %c0_51, %c0_52] : memref<1x2x1480xf32, #tpu.memory_space<vmem>>, vector<1x2x1480xf32>
    %62 = vector.shape_cast %61 : vector<1x2x1480xf32> to vector<2x1480xf32>
    %63 = vector.shape_cast %60 : vector<2x1480xf32> to vector<1x2x1480xf32>
    tpu.vector_store %arg8[%c0_50, %c0_51, %c0_52], %63 {strides = array<i32>} : memref<1x2x1480xf32, #tpu.memory_space<vmem>>, vector<1x2x1480xf32>,
    return
  }
  func.func @transform_0(%arg0: i32, %arg1: i32) -> (i32, i32, i32) {
    %c0_i32 = arith.constant 0 : i32
    %c0_i32_0 = arith.constant 0 : i32
    %c0_i32_1 = arith.constant 0 : i32
    %c0_i32_2 = arith.constant 0 : i32
    return %c0_i32, %c0_i32_0, %c0_i32_1 : i32, i32, i32
  }
  func.func @transform_1(%arg0: i32, %arg1: i32) -> (i32, i32) {
    %c0_i32 = arith.constant 0 : i32
    %c0_i32_0 = arith.constant 0 : i32
    %c0_i32_1 = arith.constant 0 : i32
    return %c0_i32, %c0_i32_0 : i32, i32
  }
  func.func @transform_2(%arg0: i32, %arg1: i32) -> (i32, i32) {
    %c0_i32 = arith.constant 0 : i32
    %c0_i32_0 = arith.constant 0 : i32
    %c0_i32_1 = arith.constant 0 : i32
    return %c0_i32, %c0_i32_0 : i32, i32
  }
  func.func @transform_3(%arg0: i32, %arg1: i32) -> (i32, i32, i32) {
    %c2_i32 = arith.constant 2 : i32
    %0 = arith.muli %arg0, %c2_i32 : i32
    %1 = arith.addi %0, %arg1 : i32
    %c0_i32 = arith.constant 0 : i32
    %c0_i32_0 = arith.constant 0 : i32
    %c0_i32_1 = arith.constant 0 : i32
    return %1, %c0_i32, %c0_i32_0 : i32, i32, i32
  }
  func.func @transform_4(%arg0: i32, %arg1: i32) -> (i32, i32) {
    %c2_i32 = arith.constant 2 : i32
    %0 = arith.muli %arg0, %c2_i32 : i32
    %1 = arith.addi %0, %arg1 : i32
    %c0_i32 = arith.constant 0 : i32
    %c0_i32_0 = arith.constant 0 : i32
    return %c0_i32, %1 : i32, i32
  }
  func.func @transform_5(%arg0: i32, %arg1: i32) -> (i32, i32) {
    %c2_i32 = arith.constant 2 : i32
    %0 = arith.muli %arg0, %c2_i32 : i32
    %1 = arith.addi %0, %arg1 : i32
    %c0_i32 = arith.constant 0 : i32
    %c0_i32_0 = arith.constant 0 : i32
    return %1, %c0_i32 : i32, i32
  }
  func.func @transform_6(%arg0: i32, %arg1: i32) -> (i32, i32, i32) {
    %c0_i32 = arith.constant 0 : i32
    %c0_i32_0 = arith.constant 0 : i32
    %c0_i32_1 = arith.constant 0 : i32
    return %arg0, %c0_i32, %c0_i32_0 : i32, i32, i32
  }
}

</mosaic_0001>

<bundles_post_ra>
// kernel: parsing_net_forward.1
= control target key start
LH: loop header
LB: loop body
LE: loop exit
PB: predicated region body
PF: predicated region fallthrough
CT: control target
= control target key end

     0   :  { %s10412_s21 = smov 0   ;;  %s10414_s22 = smov 0   ;;  %s12397_s0 = inlined_call_operand.vmem [shape: f32[2,512,225], index: 0, kind: input, shape index: {}]   ;;  %s12398_s1 = inlined_call_operand.vmem [shape: bf16[8,512], index: 1, kind: input, shape index: {}]   ;;  %s12399_s2 = inlined_call_operand.vmem [shape: f32[8,1], index: 2, kind: input, shape index: {}]   ;;  %s12400_s3 = inlined_call_operand.vmem [shape: bf16[4,2048,512], index: 3, kind: input, shape index: {}]   ;;  %s12401_s4 = inlined_call_operand.vmem [shape: f32[1,2048], index: 4, kind: input, shape index: {}]   ;;  %s12402_s5 = inlined_call_operand.vmem [shape: bf16[2048,1480], index: 5, kind: input, shape index: {}]   ;;  %s12403_s6 = inlined_call_operand.vmem [shape: f32[2,2,1480], index: 6, kind: output, shape index: {}]  }
   0x1   :  { %s10416_s23 = smov 0   ;;  %s10418_s24 = smov 0  }
   0x2   :  { %s10420_s25 = smov 0  }
   0x3 LB: > { %s25_s26 = sadd.s32 1, %s10364_s23  ;;  %s28_s27 = sadd.s32 1, %s10368_s24  ;;  %s10372_s25 = sphi %s10420_s25, %s16_s25   ;;  %s10368_s24 = sphi %s10418_s24, %s12409_s24   ;;  %s10364_s23 = sphi %s10416_s23, %s12408_s23   ;;  %s10360_s22 = sphi %s10414_s22, %s12407_s22   ;;  %s10356_s21 = sphi %s10412_s21, %s12406_s21  }
   0x4   : > { %p26_p0 = scmp.ge.s32.totalorder %s25_s26, 2  ;;  %p7862_p1 = scmp.ge.s32.totalorder %s10372_s25, 1 }
   0x5   : > { %p270_p2 = scmp.lt.s32.totalorder %s10372_s25, 5 }
   0x6   : > { %s12411_s26 = smov (%p26_p0, %s25_s26), 0  ;;  %s12413_s27 = smov (!%p26_p0, %s28_s27), %s10368_s24 }
   0x7   : > { %p271_p3 = pnand %p7862_p1, %p270_p2  ;;  %p30_p4 = scmp.ge.s32.totalorder %s12413_s27, 2 }
   0x8   : > { %s7863_s28 = sshll.u32 (!%p271_p3), %s10360_s22, 1  ;;  %p345_p5 = scmp.lt.s32.totalorder (!%p271_p3), %s10360_s22, 1 }
   0x9   : > { %s12415_s27 = smov (%p30_p4, %s12413_s27), 0  ;;  %274 = sbr.rel (%p271_p3) target bundleno = 1602 (0x642), region = 44 }
   0xa   : > { %s317_s29 = sadd.s32 (!%p271_p3), %s10356_s21, %s7863_s28  ;;  %p7872_p9 = scmp.ne.s32.totalorder (!%p271_p3), %s10356_s21, 0 }
   0xb   : > { %p318_p6 = scmp.lt.s32.totalorder (!%p271_p3), %s317_s29, 3  ;;  %s7867_s30 = sshll.u32 (!%p271_p3), %s317_s29, 2 }
   0xc   : > { %p328_p7 = scmp.lt.s32.totalorder (!%p271_p3), %s7867_s30, 15  ;;  %s7869_s7 = sshll.u32 (!%p271_p3), %s317_s29, 6 }
   0xd   : > { %p337_p8 = scmp.lt.s32.totalorder (!%p271_p3), %s7869_s7, 255 }
   0xe   : > { %s12417_s29 = smov (!%p318_p6, %s317_s29), 3  ;;  %s12419_s30 = smov (!%p328_p7, %s7867_s30), 15 }
   0xf   : > { %s8921_s8 = sshll.u32 %s12417_s29, 12  ;;  %s330_s14 = scalar_lea.vmem %s12401_s4, %s12419_s30 }
  0x10   : > { %s10450_s11 = scalar_lea.vmem %s12400_s3, %s8921_s8  ;;  %s12421_s7 = smov (!%p337_p8, %s7869_s7), 255 }
  0x11   : > { %s12423_s22 = smov (!%p345_p5, %s10360_s22), 1  ;;  %s8924_s15 = smul.u32 48, %s12421_s7 }
  0x12   : > { %s8925_s16 = smul.u32 24, %s12423_s22 }
  0x13   : > { %s10459_s19 = scalar_lea.vmem %s12402_s5, %s8924_s15  ;;  %354 = sbr.rel (%p7872_p9) target bundleno = 358 (0x166), region = 48 }
  0x14   : > { %s10464_s29 = scalar_lea.vmem %s12403_s6, %s8925_s16 }
  0x18   : > { %vm357_vm0 = vcmask 1041408   ;;  %vm358_vm1 = vcmask 1043458   ;;  %vm360_vm2 = vcmask 1045508   ;;  %v399_v0 = vld [vmem:[%s12397_s0 + $0xe8] sm:$0xff]  ;;  %v401_v1 = vld [vmem:[%s12397_s0 + $0xf8] sm:$0xff]  ;;  %v10374_v2 = vmov 0.0  }
  0x19   : > { %355 = vst [vmem:[%s10464_s29] sm:$0xff] %v10374_v2  ;;  %356 = vst [vmem:[%s10464_s29 + $0x8] sm:$0xff] %v10374_v2  ;;  %vm362_vm4 = vcmask 588806   ;;  %v513_v3 = vpack.c.bf16 %v401_v1, %v399_v0  ;;  %v463_v4 = vld [vmem:[%s12397_s0 + $0x2e8] sm:$0xff]  ;;  %v465_v5 = vld [vmem:[%s12397_s0 + $0x2f8] sm:$0xff]  ;;  %v10375_v25 = vmov 0   ;;  %vm671_vm7 = vcmask 1043456  }
  0x1a   : > { %vm359_vm3 = vmor %vm358_vm1, %vm357_vm0  ;;  %v545_v6 = vpack.c.bf16 %v465_v5, %v463_v4  ;;  %v398_v7 = vld [vmem:[%s12397_s0 + $0xe0] sm:$0xff]  ;;  %v400_v8 = vld [vmem:[%s12397_s0 + $0xf0] sm:$0xff]  ;;  %8969 = vset.pattern.permute.xlu0 %v10375_v25  ;;  %365 = vst [vmem:[#allocation2] sm:$0xff] %v10375_v25  ;;  %vm672_vm8 = vcmask 793604  }
  0x1b   : > { %vm361_vm5 = vmor %vm360_vm2, %vm359_vm3  ;;  %581 = vmatprep.subr.bf16.mxu0 %v513_v3  ;;  %v512_v9 = vpack.c.bf16 %v400_v8, %v398_v7  ;;  %v462_v10 = vld [vmem:[%s12397_s0 + $0x2e0] sm:$0xff]  ;;  %v464_v11 = vld [vmem:[%s12397_s0 + $0x2f0] sm:$0xff]  ;;  %366 = vst [vmem:[#allocation2 + $0x8] sm:$0xff] %v10375_v25 }
  0x1c   : > { %vm363_vm6 = vmor %vm362_vm4, %vm361_vm5  ;;  %622 = vmatprep.subr.bf16.mxu1 %v545_v6  ;;  %v544_v12 = vpack.c.bf16 %v464_v11, %v462_v10  ;;  %v395_v13 = vld [vmem:[%s12397_s0 + $0xc8] sm:$0xff]  ;;  %v397_v14 = vld [vmem:[%s12397_s0 + $0xd8] sm:$0xff] }
  0x1d   : > { %364 = vst.msk [vmem:[%s10464_s29 + $0x10] sm:$0xff] %vm363_vm6, %v10374_v2  ;;  %v459_v15 = vld [vmem:[%s12397_s0 + $0x2c8] sm:$0xff]  ;;  %582 = vmatpush1.bf16.msra.mxu0 %v512_v9  ;;  %v511_v16 = vpack.c.bf16 %v397_v14, %v395_v13  ;;  %v461_v17 = vld [vmem:[%s12397_s0 + $0x2d8] sm:$0xff]  ;;  %v394_v18 = vld [vmem:[%s12397_s0 + $0xc0] sm:$0xff] }
  0x1e   : > { %v396_v19 = vld [vmem:[%s12397_s0 + $0xd0] sm:$0xff]  ;;  %623 = vmatpush1.bf16.msra.mxu1 %v544_v12  ;;  %v543_v20 = vpack.c.bf16 %v461_v17, %v459_v15  ;;  %v458_v22 = vld [vmem:[%s12397_s0 + $0x2c0] sm:$0xff]  ;;  %v391_v24 = vld [vmem:[%s12397_s0 + $0xa8] sm:$0xff] }
  0x1f   : > { %v510_v21 = vpack.c.bf16 %v396_v19, %v394_v18  ;;  %v460_v23 = vld [vmem:[%s12397_s0 + $0x2d0] sm:$0xff]  ;;  %583 = vmatprep.subr.bf16.mxu0 %v511_v16  ;;  %v393_v27 = vld [vmem:[%s12397_s0 + $0xb8] sm:$0xff]  ;;  %v455_v28 = vld [vmem:[%s12397_s0 + $0x2a8] sm:$0xff] }
  0x20   : > { %v542_v26 = vpack.c.bf16 %v460_v23, %v458_v22  ;;  %v457_v29 = vld [vmem:[%s12397_s0 + $0x2b8] sm:$0xff]  ;;  %624 = vmatprep.subr.bf16.mxu1 %v543_v20  ;;  %v509_v30 = vpack.c.bf16 %v393_v27, %v391_v24  ;;  %v390_v32 = vld [vmem:[%s12397_s0 + $0xa0] sm:$0xff]  ;;  %v392_v33 = vld [vmem:[%s12397_s0 + $0xb0] sm:$0xff] }
  0x21   : > { %v541_v31 = vpack.c.bf16 %v457_v29, %v455_v28  ;;  %v454_v34 = vld [vmem:[%s12397_s0 + $0x2a0] sm:$0xff]  ;;  %584 = vmatpush1.bf16.msra.mxu0 %v510_v21  ;;  %v508_v35 = vpack.c.bf16 %v392_v33, %v390_v32  ;;  %v456_v36 = vld [vmem:[%s12397_s0 + $0x2b0] sm:$0xff]  ;;  %v387_v37 = vld [vmem:[%s12397_s0 + $0x88] sm:$0xff] }
  0x22   : > { %v389_v38 = vld [vmem:[%s12397_s0 + $0x98] sm:$0xff]  ;;  %625 = vmatpush1.bf16.msra.mxu1 %v542_v26  ;;  %585 = vmatprep.subr.bf16.mxu0 %v509_v30  ;;  %v540_v39 = vpack.c.bf16 %v456_v36, %v454_v34  ;;  %v451_v41 = vld [vmem:[%s12397_s0 + $0x288] sm:$0xff]  ;;  %v386_v43 = vld [vmem:[%s12397_s0 + $0x80] sm:$0xff] }
  0x23   : > { %v507_v40 = vpack.c.bf16 %v389_v38, %v387_v37  ;;  %v453_v42 = vld [vmem:[%s12397_s0 + $0x298] sm:$0xff]  ;;  %626 = vmatprep.subr.bf16.mxu1 %v541_v31  ;;  %v388_v45 = vld [vmem:[%s12397_s0 + $0x90] sm:$0xff]  ;;  %v450_v46 = vld [vmem:[%s12397_s0 + $0x280] sm:$0xff] }
  0x24   : > { %v539_v44 = vpack.c.bf16 %v453_v42, %v451_v41  ;;  %v452_v47 = vld [vmem:[%s12397_s0 + $0x290] sm:$0xff]  ;;  %v383_v48 = vld [vmem:[%s12397_s0 + $0x68] sm:$0xff]  ;;  %v385_v49 = vld [vmem:[%s12397_s0 + $0x78] sm:$0xff]  ;;  %v506_v51 = vpack.c.bf16 %v388_v45, %v386_v43 }
  0x25   : > { %v447_v50 = vld [vmem:[%s12397_s0 + $0x268] sm:$0xff]  ;;  %586 = vmatpush1.bf16.msra.mxu0 %v508_v35  ;;  %v449_v52 = vld [vmem:[%s12397_s0 + $0x278] sm:$0xff]  ;;  %v538_v53 = vpack.c.bf16 %v452_v47, %v450_v46  ;;  %v505_v54 = vpack.c.bf16 %v385_v49, %v383_v48  ;;  %v382_v55 = vld [vmem:[%s12397_s0 + $0x60] sm:$0xff] }
  0x26   : > { %627 = vmatpush1.bf16.msra.mxu1 %v540_v39  ;;  %587 = vmatprep.subr.bf16.mxu0 %v507_v40  ;;  %v384_v56 = vld [vmem:[%s12397_s0 + $0x70] sm:$0xff]  ;;  %v446_v57 = vld [vmem:[%s12397_s0 + $0x260] sm:$0xff]  ;;  %v537_v58 = vpack.c.bf16 %v449_v52, %v447_v50  ;;  %v379_v60 = vld [vmem:[%s12397_s0 + $0x48] sm:$0xff] }
  0x27   : > { %628 = vmatprep.subr.bf16.mxu1 %v539_v44  ;;  %v448_v59 = vld [vmem:[%s12397_s0 + $0x270] sm:$0xff]  ;;  %v381_v61 = vld [vmem:[%s12397_s0 + $0x58] sm:$0xff]  ;;  %v443_v62 = vld [vmem:[%s12397_s0 + $0x248] sm:$0xff]  ;;  %v504_v0 = vpack.c.bf16 %v384_v56, %v382_v55 }
  0x28   : > { %v445_v63 = vld [vmem:[%s12397_s0 + $0x258] sm:$0xff]  ;;  %v536_v1 = vpack.c.bf16 %v448_v59, %v446_v57  ;;  %v503_v2 = vpack.c.bf16 %v381_v61, %v379_v60  ;;  %v378_v3 = vld [vmem:[%s12397_s0 + $0x40] sm:$0xff]  ;;  %v380_v4 = vld [vmem:[%s12397_s0 + $0x50] sm:$0xff] }
  0x29   : > { %588 = vmatpush1.bf16.msra.mxu0 %v506_v51  ;;  %v442_v5 = vld [vmem:[%s12397_s0 + $0x240] sm:$0xff]  ;;  %v535_v6 = vpack.c.bf16 %v445_v63, %v443_v62  ;;  %v444_v7 = vld [vmem:[%s12397_s0 + $0x250] sm:$0xff]  ;;  %v375_v8 = vld [vmem:[%s12397_s0 + $0x28] sm:$0xff]  ;;  %v502_v12 = vpack.c.bf16 %v380_v4, %v378_v3 }
  0x2a   : > { %629 = vmatpush1.bf16.msra.mxu1 %v538_v53  ;;  %589 = vmatprep.subr.bf16.mxu0 %v505_v54  ;;  %v377_v9 = vld [vmem:[%s12397_s0 + $0x38] sm:$0xff]  ;;  %v439_v10 = vld [vmem:[%s12397_s0 + $0x228] sm:$0xff]  ;;  %v534_v13 = vpack.c.bf16 %v444_v7, %v442_v5  ;;  %v374_v15 = vld [vmem:[%s12397_s0 + $0x20] sm:$0xff] }
  0x2b   : > { %630 = vmatprep.subr.bf16.mxu1 %v537_v58  ;;  %v441_v11 = vld [vmem:[%s12397_s0 + $0x238] sm:$0xff]  ;;  %v501_v14 = vpack.c.bf16 %v377_v9, %v375_v8  ;;  %v376_v16 = vld [vmem:[%s12397_s0 + $0x30] sm:$0xff]  ;;  %v438_v17 = vld [vmem:[%s12397_s0 + $0x220] sm:$0xff] }
  0x2c   : > { %v533_v18 = vpack.c.bf16 %v441_v11, %v439_v10  ;;  %v440_v19 = vld [vmem:[%s12397_s0 + $0x230] sm:$0xff]  ;;  %v371_v20 = vld [vmem:[%s12397_s0 + $0x8] sm:$0xff]  ;;  %v373_v21 = vld [vmem:[%s12397_s0 + $0x18] sm:$0xff]  ;;  %v500_v24 = vpack.c.bf16 %v376_v16, %v374_v15 }
  0x2d   : > { %590 = vmatpush1.bf16.msra.mxu0 %v504_v0  ;;  %v435_v22 = vld [vmem:[%s12397_s0 + $0x208] sm:$0xff]  ;;  %v437_v23 = vld [vmem:[%s12397_s0 + $0x218] sm:$0xff]  ;;  %v532_v25 = vpack.c.bf16 %v440_v19, %v438_v17  ;;  %v499_v26 = vpack.c.bf16 %v373_v21, %v371_v20  ;;  %v370_v27 = vld [vmem:[%s12397_s0] sm:$0xff] }
  0x2e   : > { %631 = vmatpush1.bf16.msra.mxu1 %v536_v1  ;;  %591 = vmatprep.subr.bf16.mxu0 %v503_v2  ;;  %v372_v28 = vld [vmem:[%s12397_s0 + $0x10] sm:$0xff]  ;;  %v434_v29 = vld [vmem:[%s12397_s0 + $0x200] sm:$0xff]  ;;  %v531_v30 = vpack.c.bf16 %v437_v23, %v435_v22  ;;  %v431_v32 = vld [vmem:[%s12397_s0 + $0x1e8] sm:$0xff] }
  0x2f   : > { %632 = vmatprep.subr.bf16.mxu1 %v535_v6  ;;  %v436_v31 = vld [vmem:[%s12397_s0 + $0x210] sm:$0xff]  ;;  %v433_v33 = vld [vmem:[%s12397_s0 + $0x1f8] sm:$0xff]  ;;  %v495_v34 = vld [vmem:[%s12397_s0 + $0x3e8] sm:$0xff]  ;;  %v498_v36 = vpack.c.bf16 %v372_v28, %v370_v27 }
  0x30   : > { %v497_v35 = vld [vmem:[%s12397_s0 + $0x3f8] sm:$0xff]  ;;  %v530_v37 = vpack.c.bf16 %v436_v31, %v434_v29  ;;  %v529_v38 = vpack.c.bf16 %v433_v33, %v431_v32  ;;  %v430_v39 = vld [vmem:[%s12397_s0 + $0x1e0] sm:$0xff]  ;;  %v432_v40 = vld [vmem:[%s12397_s0 + $0x1f0] sm:$0xff] }
  0x31   : > { %592 = vmatpush1.bf16.msra.mxu0 %v502_v12  ;;  %v494_v41 = vld [vmem:[%s12397_s0 + $0x3e0] sm:$0xff]  ;;  %v561_v42 = vpack.c.bf16 %v497_v35, %v495_v34  ;;  %v496_v43 = vld [vmem:[%s12397_s0 + $0x3f0] sm:$0xff]  ;;  %v427_v44 = vld [vmem:[%s12397_s0 + $0x1c8] sm:$0xff]  ;;  %v528_v48 = vpack.c.bf16 %v432_v40, %v430_v39 }
  0x32   : > { %633 = vmatpush1.bf16.msra.mxu1 %v534_v13  ;;  %593 = vmatprep.subr.bf16.mxu0 %v501_v14  ;;  %v429_v45 = vld [vmem:[%s12397_s0 + $0x1d8] sm:$0xff]  ;;  %v491_v46 = vld [vmem:[%s12397_s0 + $0x3c8] sm:$0xff]  ;;  %v560_v49 = vpack.c.bf16 %v496_v43, %v494_v41  ;;  %v426_v51 = vld [vmem:[%s12397_s0 + $0x1c0] sm:$0xff] }
  0x33   : > { %634 = vmatprep.subr.bf16.mxu1 %v533_v18  ;;  %v493_v47 = vld [vmem:[%s12397_s0 + $0x3d8] sm:$0xff]  ;;  %v527_v50 = vpack.c.bf16 %v429_v45, %v427_v44  ;;  %v428_v52 = vld [vmem:[%s12397_s0 + $0x1d0] sm:$0xff]  ;;  %v490_v53 = vld [vmem:[%s12397_s0 + $0x3c0] sm:$0xff] }
  0x34   : > { %v559_v54 = vpack.c.bf16 %v493_v47, %v491_v46  ;;  %v492_v55 = vld [vmem:[%s12397_s0 + $0x3d0] sm:$0xff]  ;;  %v423_v56 = vld [vmem:[%s12397_s0 + $0x1a8] sm:$0xff]  ;;  %v425_v57 = vld [vmem:[%s12397_s0 + $0x1b8] sm:$0xff]  ;;  %v526_v60 = vpack.c.bf16 %v428_v52, %v426_v51 }
  0x35   : > { %594 = vmatpush1.bf16.msra.mxu0 %v500_v24  ;;  %v487_v58 = vld [vmem:[%s12397_s0 + $0x3a8] sm:$0xff]  ;;  %v489_v59 = vld [vmem:[%s12397_s0 + $0x3b8] sm:$0xff]  ;;  %v558_v61 = vpack.c.bf16 %v492_v55, %v490_v53  ;;  %v525_v62 = vpack.c.bf16 %v425_v57, %v423_v56  ;;  %v422_v63 = vld [vmem:[%s12397_s0 + $0x1a0] sm:$0xff] }
  0x36   : > { %635 = vmatpush1.bf16.msra.mxu1 %v532_v25  ;;  %595 = vmatprep.subr.bf16.mxu0 %v499_v26  ;;  %v424_v0 = vld [vmem:[%s12397_s0 + $0x1b0] sm:$0xff]  ;;  %v486_v1 = vld [vmem:[%s12397_s0 + $0x3a0] sm:$0xff]  ;;  %v557_v2 = vpack.c.bf16 %v489_v59, %v487_v58  ;;  %v419_v4 = vld [vmem:[%s12397_s0 + $0x188] sm:$0xff] }
  0x37   : > { %636 = vmatprep.subr.bf16.mxu1 %v531_v30  ;;  %v488_v3 = vld [vmem:[%s12397_s0 + $0x3b0] sm:$0xff]  ;;  %v421_v5 = vld [vmem:[%s12397_s0 + $0x198] sm:$0xff]  ;;  %v483_v6 = vld [vmem:[%s12397_s0 + $0x388] sm:$0xff]  ;;  %v524_v8 = vpack.c.bf16 %v424_v0, %v422_v63 }
  0x38   : > { %v485_v7 = vld [vmem:[%s12397_s0 + $0x398] sm:$0xff]  ;;  %v418_v9 = vld [vmem:[%s12397_s0 + $0x180] sm:$0xff]  ;;  %v556_v10 = vpack.c.bf16 %v488_v3, %v486_v1  ;;  %v523_v11 = vpack.c.bf16 %v421_v5, %v419_v4  ;;  %v420_v12 = vld [vmem:[%s12397_s0 + $0x190] sm:$0xff] }
  0x39   : > { %596 = vmatpush1.bf16.msra.mxu0 %v498_v36  ;;  %v482_v13 = vld [vmem:[%s12397_s0 + $0x380] sm:$0xff]  ;;  %v484_v14 = vld [vmem:[%s12397_s0 + $0x390] sm:$0xff]  ;;  %v555_v15 = vpack.c.bf16 %v485_v7, %v483_v6  ;;  %v415_v16 = vld [vmem:[%s12397_s0 + $0x168] sm:$0xff]  ;;  %v522_v22 = vpack.c.bf16 %v420_v12, %v418_v9 }
  0x3a   : > { %637 = vmatpush1.bf16.msra.mxu1 %v530_v37  ;;  %597 = vmatprep.subr.bf16.mxu0 %v529_v38  ;;  %v417_v17 = vld [vmem:[%s12397_s0 + $0x178] sm:$0xff]  ;;  %v479_v18 = vld [vmem:[%s12397_s0 + $0x368] sm:$0xff]  ;;  %v10773_v20 = vld [vmem:[%s12398_s1] sm:$0xff]  ;;  %v554_v25 = vpack.c.bf16 %v484_v14, %v482_v13 }
  0x3b   : > { %638 = vmatprep.subr.bf16.mxu1 %v561_v42  ;;  %v481_v19 = vld [vmem:[%s12397_s0 + $0x378] sm:$0xff]  ;;  %v10778_v21 = vld [vmem:[%s12398_s1 + $0x8] sm:$0xff]  ;;  %v10782_v23 = vcombine.high %v10773_v20, %v10773_v20  ;;  %v521_v26 = vpack.c.bf16 %v417_v17, %v415_v16  ;;  %v414_v27 = vld [vmem:[%s12397_s0 + $0x160] sm:$0xff] }
  0x3c   : > { %v10786_v24 = vcombine.high %v10778_v21, %v10778_v21  ;;  %v416_v28 = vld [vmem:[%s12397_s0 + $0x170] sm:$0xff]  ;;  %v478_v29 = vld [vmem:[%s12397_s0 + $0x360] sm:$0xff]  ;;  %v553_v30 = vpack.c.bf16 %v481_v19, %v479_v18  ;;  %v411_v32 = vld [vmem:[%s12397_s0 + $0x148] sm:$0xff]  ;;  %v10906_v18 = vcombine.low %v10773_v20, %v10773_v20 }
  0x3d   : > { %598 = vmatpush2.bf16.msra.mxu0 %v528_v48  ;;  %v480_v31 = vld [vmem:[%s12397_s0 + $0x370] sm:$0xff]  ;;  %v413_v33 = vld [vmem:[%s12397_s0 + $0x158] sm:$0xff]  ;;  %613 = vmatprep.mubr.bf16.mxu0 %v10782_v23  ;;  %v475_v34 = vld [vmem:[%s12397_s0 + $0x348] sm:$0xff]  ;;  %v520_v36 = vpack.c.bf16 %v416_v28, %v414_v27 }
  0x3e   : > { %639 = vmatpush2.bf16.msra.mxu1 %v560_v49  ;;  %599 = vmatprep.subr.bf16.mxu0 %v527_v50  ;;  %v477_v35 = vld [vmem:[%s12397_s0 + $0x358] sm:$0xff]  ;;  %v552_v37 = vpack.c.bf16 %v480_v31, %v478_v29  ;;  %v519_v38 = vpack.c.bf16 %v413_v33, %v411_v32  ;;  %v410_v39 = vld [vmem:[%s12397_s0 + $0x140] sm:$0xff]  ;;  %v412_v40 = vld [vmem:[%s12397_s0 + $0x150] sm:$0xff] }
  0x3f   : > { %640 = vmatprep.subr.bf16.mxu1 %v559_v54  ;;  %654 = vmatprep.mubr.bf16.mxu1 %v10786_v24  ;;  %v474_v41 = vld [vmem:[%s12397_s0 + $0x340] sm:$0xff]  ;;  %v551_v42 = vpack.c.bf16 %v477_v35, %v475_v34  ;;  %v476_v43 = vld [vmem:[%s12397_s0 + $0x350] sm:$0xff]  ;;  %v407_v44 = vld [vmem:[%s12397_s0 + $0x128] sm:$0xff]  ;;  %v518_v48 = vpack.c.bf16 %v412_v40, %v410_v39 }
  0x40   : > { %v409_v45 = vld [vmem:[%s12397_s0 + $0x138] sm:$0xff]  ;;  %v471_v46 = vld [vmem:[%s12397_s0 + $0x328] sm:$0xff]  ;;  %v550_v49 = vpack.c.bf16 %v476_v43, %v474_v41  ;;  %v406_v51 = vld [vmem:[%s12397_s0 + $0x120] sm:$0xff] }
  0x41   : > { %600 = vmatpush2.bf16.msra.mxu0 %v526_v60  ;;  %v473_v47 = vld [vmem:[%s12397_s0 + $0x338] sm:$0xff]  ;;  %v517_v50 = vpack.c.bf16 %v409_v45, %v407_v44  ;;  %v408_v52 = vld [vmem:[%s12397_s0 + $0x130] sm:$0xff]  ;;  %v470_v53 = vld [vmem:[%s12397_s0 + $0x320] sm:$0xff] }
  0x42   : > { %641 = vmatpush2.bf16.msra.mxu1 %v558_v61  ;;  %601 = vmatprep.subr.bf16.mxu0 %v525_v62  ;;  %v549_v54 = vpack.c.bf16 %v473_v47, %v471_v46  ;;  %v472_v55 = vld [vmem:[%s12397_s0 + $0x330] sm:$0xff]  ;;  %v403_v56 = vld [vmem:[%s12397_s0 + $0x108] sm:$0xff]  ;;  %v405_v57 = vld [vmem:[%s12397_s0 + $0x118] sm:$0xff]  ;;  %v516_v60 = vpack.c.bf16 %v408_v52, %v406_v51 }
  0x43   : > { %642 = vmatprep.subr.bf16.mxu1 %v557_v2  ;;  %v467_v58 = vld [vmem:[%s12397_s0 + $0x308] sm:$0xff]  ;;  %v469_v59 = vld [vmem:[%s12397_s0 + $0x318] sm:$0xff]  ;;  %v548_v61 = vpack.c.bf16 %v472_v55, %v470_v53  ;;  %v515_v62 = vpack.c.bf16 %v405_v57, %v403_v56  ;;  %v402_v63 = vld [vmem:[%s12397_s0 + $0x100] sm:$0xff] }
  0x44   : > { %v404_v0 = vld [vmem:[%s12397_s0 + $0x110] sm:$0xff]  ;;  %v466_v1 = vld [vmem:[%s12397_s0 + $0x300] sm:$0xff]  ;;  %v547_v2 = vpack.c.bf16 %v469_v59, %v467_v58  ;;  %v7907_v4 = vld [vmem:[%s12397_s0 + $0x4e8] sm:$0xff] }
  0x45   : > { %602 = vmatpush2.bf16.msra.mxu0 %v524_v8  ;;  %v468_v3 = vld [vmem:[%s12397_s0 + $0x310] sm:$0xff]  ;;  %v7909_v5 = vld [vmem:[%s12397_s0 + $0x4f8] sm:$0xff]  ;;  %v7971_v6 = vld [vmem:[%s12397_s0 + $0x6e8] sm:$0xff]  ;;  %v514_v8 = vpack.c.bf16 %v404_v0, %v402_v63 }
  0x46   : > { %643 = vmatpush2.bf16.msra.mxu1 %v556_v10  ;;  %603 = vmatprep.subr.bf16.mxu0 %v523_v11  ;;  %v7973_v7 = vld [vmem:[%s12397_s0 + $0x6f8] sm:$0xff]  ;;  %v546_v9 = vpack.c.bf16 %v468_v3, %v466_v1  ;;  %v819_v10 = vpack.c.bf16 %v7909_v5, %v7907_v4  ;;  %v7906_v11 = vld [vmem:[%s12397_s0 + $0x4e0] sm:$0xff]  ;;  %v7908_v12 = vld [vmem:[%s12397_s0 + $0x4f0] sm:$0xff] }
  0x47   : > { %644 = vmatprep.subr.bf16.mxu1 %v555_v15  ;;  %v7970_v13 = vld [vmem:[%s12397_s0 + $0x6e0] sm:$0xff]  ;;  %v851_v14 = vpack.c.bf16 %v7973_v7, %v7971_v6  ;;  %v7972_v15 = vld [vmem:[%s12397_s0 + $0x6f0] sm:$0xff]  ;;  %v7903_v16 = vld [vmem:[%s12397_s0 + $0x4c8] sm:$0xff] }
  0x48   : > { %v7905_v17 = vld [vmem:[%s12397_s0 + $0x4d8] sm:$0xff]  ;;  %v7967_v19 = vld [vmem:[%s12397_s0 + $0x6c8] sm:$0xff]  ;;  %v850_v27 = vpack.c.bf16 %v7972_v15, %v7970_v13  ;;  %v7902_v20 = vld [vmem:[%s12397_s0 + $0x4c0] sm:$0xff] }
  0x49   : > { %604 = vmatpush2.bf16.msra.mxu0 %v522_v22  ;;  %v7969_v22 = vld [vmem:[%s12397_s0 + $0x6d8] sm:$0xff]  ;;  %v817_v28 = vpack.c.bf16 %v7905_v17, %v7903_v16  ;;  %v7904_v29 = vld [vmem:[%s12397_s0 + $0x4d0] sm:$0xff]  ;;  %v7899_v32 = vld [vmem:[%s12397_s0 + $0x4a8] sm:$0xff] }
  0x4a   : > { %645 = vmatpush2.bf16.msra.mxu1 %v554_v25  ;;  %605 = vmatprep.subr.bf16.mxu0 %v521_v26  ;;  %v10916_v25 = vcombine.low %v10778_v21, %v10778_v21  ;;  %v818_v26 = vpack.c.bf16 %v7908_v12, %v7906_v11  ;;  %v849_v21 = vpack.c.bf16 %v7969_v22, %v7967_v19  ;;  %v7968_v31 = vld [vmem:[%s12397_s0 + $0x6d0] sm:$0xff]  ;;  %v7901_v33 = vld [vmem:[%s12397_s0 + $0x4b8] sm:$0xff]  ;;  %v7963_v34 = vld [vmem:[%s12397_s0 + $0x6a8] sm:$0xff] }
  0x4b   : > { %646 = vmatprep.subr.bf16.mxu1 %v553_v30  ;;  %v7966_v30 = vld [vmem:[%s12397_s0 + $0x6c0] sm:$0xff]  ;;  %v7965_v35 = vld [vmem:[%s12397_s0 + $0x6b8] sm:$0xff]  ;;  %v7900_v40 = vld [vmem:[%s12397_s0 + $0x4b0] sm:$0xff] }
  0x4c   : > { %v7898_v39 = vld [vmem:[%s12397_s0 + $0x4a0] sm:$0xff]  ;;  %v7964_v43 = vld [vmem:[%s12397_s0 + $0x6b0] sm:$0xff]  ;;  %v7895_v44 = vld [vmem:[%s12397_s0 + $0x488] sm:$0xff] }
  0x4d   : > { %606 = vmatpush2.bf16.msra.mxu0 %v520_v36  ;;  %v816_v36 = vpack.c.bf16 %v7904_v29, %v7902_v20  ;;  %v7962_v41 = vld [vmem:[%s12397_s0 + $0x6a0] sm:$0xff]  ;;  %v7897_v45 = vld [vmem:[%s12397_s0 + $0x498] sm:$0xff]  ;;  %v7959_v46 = vld [vmem:[%s12397_s0 + $0x688] sm:$0xff] }
  0x4e   : > { %647 = vmatpush2.bf16.msra.mxu1 %v552_v37  ;;  %607 = vmatprep.subr.bf16.mxu0 %v519_v38  ;;  %v848_v37 = vpack.c.bf16 %v7968_v31, %v7966_v30  ;;  %v815_v38 = vpack.c.bf16 %v7901_v33, %v7899_v32  ;;  %v7961_v47 = vld [vmem:[%s12397_s0 + $0x698] sm:$0xff]  ;;  %v7896_v51 = vld [vmem:[%s12397_s0 + $0x490] sm:$0xff]  ;;  %v7958_v52 = vld [vmem:[%s12397_s0 + $0x680] sm:$0xff] }
  0x4f   : > { %648 = vmatprep.subr.bf16.mxu1 %v551_v42  ;;  %v847_v42 = vpack.c.bf16 %v7965_v35, %v7963_v34  ;;  %v7960_v53 = vld [vmem:[%s12397_s0 + $0x690] sm:$0xff]  ;;  %v7893_v55 = vld [vmem:[%s12397_s0 + $0x478] sm:$0xff]  ;;  %v7955_v56 = vld [vmem:[%s12397_s0 + $0x668] sm:$0xff] }
  0x50   : > { %v7957_v57 = vld [vmem:[%s12397_s0 + $0x678] sm:$0xff]  ;;  %v844_v59 = vpack.c.bf16 %v7960_v53, %v7958_v52  ;;  %v7954_v63 = vld [vmem:[%s12397_s0 + $0x660] sm:$0xff]  ;;  %v7956_v1 = vld [vmem:[%s12397_s0 + $0x670] sm:$0xff] }
  0x51   : > { %608 = vmatpush2.bf16.msra.mxu0 %v518_v48  ;;  %v814_v48 = vpack.c.bf16 %v7900_v40, %v7898_v39  ;;  %v843_v0 = vpack.c.bf16 %v7957_v57, %v7955_v56  ;;  %v7889_v3 = vld [vmem:[%s12397_s0 + $0x458] sm:$0xff]  ;;  %v7951_v4 = vld [vmem:[%s12397_s0 + $0x648] sm:$0xff]  ;;  %v842_v7 = vpack.c.bf16 %v7956_v1, %v7954_v63  ;;  %v7950_v11 = vld [vmem:[%s12397_s0 + $0x640] sm:$0xff] }
  0x52   : > { %649 = vmatpush2.bf16.msra.mxu1 %v550_v49  ;;  %609 = vmatprep.subr.bf16.mxu0 %v517_v50  ;;  %v846_v49 = vpack.c.bf16 %v7964_v43, %v7962_v41  ;;  %v813_v50 = vpack.c.bf16 %v7897_v45, %v7895_v44  ;;  %v7953_v5 = vld [vmem:[%s12397_s0 + $0x658] sm:$0xff]  ;;  %v7952_v13 = vld [vmem:[%s12397_s0 + $0x650] sm:$0xff]  ;;  %v7947_v16 = vld [vmem:[%s12397_s0 + $0x628] sm:$0xff] }
  0x53   : > { %650 = vmatprep.subr.bf16.mxu1 %v549_v54  ;;  %v7891_v54 = vld [vmem:[%s12397_s0 + $0x468] sm:$0xff]  ;;  %v841_v12 = vpack.c.bf16 %v7953_v5, %v7951_v4  ;;  %v7885_v15 = vld [vmem:[%s12397_s0 + $0x438] sm:$0xff]  ;;  %v7882_v22 = vld [vmem:[%s12397_s0 + $0x420] sm:$0xff] }
  0x54   : > { %v7949_v17 = vld [vmem:[%s12397_s0 + $0x638] sm:$0xff]  ;;  %v7946_v20 = vld [vmem:[%s12397_s0 + $0x620] sm:$0xff]  ;;  %v7948_v29 = vld [vmem:[%s12397_s0 + $0x630] sm:$0xff] }
  0x55   : > { %610 = vmatpush2.bf16.msra.mxu0 %v516_v60  ;;  %v811_v60 = vpack.c.bf16 %v7893_v55, %v7891_v54  ;;  %v839_v30 = vpack.c.bf16 %v7949_v17, %v7947_v16  ;;  %v7881_v31 = vld [vmem:[%s12397_s0 + $0x418] sm:$0xff]  ;;  %v369_v32 = vld [vmem:[%s12399_s2] sm:$0xff]  ;;  %v7943_v33 = vld [vmem:[%s12397_s0 + $0x608] sm:$0xff] }
  0x56   : > { %651 = vmatpush2.bf16.msra.mxu1 %v548_v61  ;;  %611 = vmatprep.subr.bf16.mxu0 %v515_v62  ;;  %v7890_v61 = vld [vmem:[%s12397_s0 + $0x460] sm:$0xff]  ;;  %v7892_v62 = vld [vmem:[%s12397_s0 + $0x470] sm:$0xff]  ;;  %v7945_v34 = vld [vmem:[%s12397_s0 + $0x618] sm:$0xff] }
  0x57   : > { %652 = vmatprep.subr.bf16.mxu1 %v547_v2  ;;  %v7887_v2 = vld [vmem:[%s12397_s0 + $0x448] sm:$0xff]  ;;  %v810_v6 = vpack.c.bf16 %v7892_v62, %v7890_v61  ;;  %564 = vperm.xlu0 %8969, %v369_v32   ;;  %v7880_v39 = vld [vmem:[%s12397_s0 + $0x410] sm:$0xff]  ;;  %v7942_v40 = vld [vmem:[%s12397_s0 + $0x600] sm:$0xff]  ;;  %v837_v41 = vpack.c.bf16 %v7945_v34, %v7943_v33 }
  0x58   : > { %v7939_v43 = vld [vmem:[%s12397_s0 + $0x5e8] sm:$0xff]  ;;  %v7941_v44 = vld [vmem:[%s12397_s0 + $0x5f8] sm:$0xff]  ;;  %v7936_v61 = vld [vmem:[%s12397_s0 + $0x5d0] sm:$0xff] }
  0x59   : > { %612 = vmatpush2.bf16.msra.mxu0 %v514_v8  ;;  %v809_v8 = vpack.c.bf16 %v7889_v3, %v7887_v2  ;;  %v8003_v45 = vld [vmem:[%s12397_s0 + $0x7e8] sm:$0xff]  ;;  %v7937_v54 = vld [vmem:[%s12397_s0 + $0x5d8] sm:$0xff]  ;;  %v7998_v62 = vld [vmem:[%s12397_s0 + $0x7c0] sm:$0xff] }
  0x5a   : > { %653 = vmatpush2.bf16.msra.mxu1 %v546_v9  ;;  %868 = vmatprep.subr.bf16.mxu0 %v819_v10  ;;  %v7886_v9 = vld [vmem:[%s12397_s0 + $0x440] sm:$0xff]  ;;  %v7888_v10 = vld [vmem:[%s12397_s0 + $0x450] sm:$0xff]  ;;  %v7935_v53 = vld [vmem:[%s12397_s0 + $0x5c8] sm:$0xff] }
  0x5b   : > { %909 = vmatprep.subr.bf16.mxu1 %v851_v14  ;;  %v7883_v14 = vld [vmem:[%s12397_s0 + $0x428] sm:$0xff]  ;;  %v808_v19 = vpack.c.bf16 %v7888_v10, %v7886_v9  ;;  %v8001_v56 = vld [vmem:[%s12397_s0 + $0x7d8] sm:$0xff]  ;;  %v7932_v9 = vld [vmem:[%s12397_s0 + $0x5b0] sm:$0xff] }
  0x5c   : > { %614 = vmatmul.mubr.bf16.vlgmr.msra.gmra.mxu0 %v10906_v18  ;;  %v7999_v55 = vld [vmem:[%s12397_s0 + $0x7c8] sm:$0xff]  ;;  %v7933_v2 = vld [vmem:[%s12397_s0 + $0x5b8] sm:$0xff]  ;;  %v7994_v10 = vld [vmem:[%s12397_s0 + $0x7a0] sm:$0xff] }
  0x5d   : > { %655 = vmatmul.mubr.bf16.vlgmr.msra.gmra.mxu1 %v10916_v25  ;;  %869 = vmatpush1.bf16.msra.mxu0 %v818_v26  ;;  %v840_v26 = vpack.c.bf16 %v7952_v13, %v7950_v11  ;;  %v865_v63 = vpack.c.bf16 %v8001_v56, %v7999_v55  ;;  %v7931_v1 = vld [vmem:[%s12397_s0 + $0x5a8] sm:$0xff]  ;;  %v7997_v4 = vld [vmem:[%s12397_s0 + $0x7b8] sm:$0xff]  ;;  %vm11275_vm9 = vmor %vm672_vm8, %vm671_vm7 }
  0x5e   : > { %910 = vmatpush1.bf16.msra.mxu1 %v850_v27  ;;  %870 = vmatprep.subr.bf16.mxu0 %v817_v28  ;;  %v807_v27 = vpack.c.bf16 %v7885_v15, %v7883_v14  ;;  %v7884_v28 = vld [vmem:[%s12397_s0 + $0x430] sm:$0xff]  ;;  %v7995_v3 = vld [vmem:[%s12397_s0 + $0x7a8] sm:$0xff]  ;;  %v7929_v14 = vld [vmem:[%s12397_s0 + $0x598] sm:$0xff] }
  0x5f   : > { %911 = vmatprep.subr.bf16.mxu1 %v849_v21  ;;  %900 = vmatprep.mubr.bf16.mxu0 %v10782_v23  ;;  %v7894_v23 = vld [vmem:[%s12397_s0 + $0x480] sm:$0xff]  ;;  %v7879_v21 = vld [vmem:[%s12397_s0 + $0x408] sm:$0xff]  ;;  %v806_v35 = vpack.c.bf16 %v7884_v28, %v7882_v22  ;;  %v863_v11 = vpack.c.bf16 %v7997_v4, %v7995_v3  ;;  %v7993_v16 = vld [vmem:[%s12397_s0 + $0x798] sm:$0xff] }
  0x60   : > { %941 = vmatprep.mubr.bf16.mxu1 %v10786_v24  ;;  %v845_v24 = vpack.c.bf16 %v7961_v47, %v7959_v46  ;;  %v812_v58 = vpack.c.bf16 %v7896_v51, %v7894_v23  ;;  %v8005_v46 = vld [vmem:[%s12397_s0 + $0x7f8] sm:$0xff]  ;;  %v7940_v23 = vld [vmem:[%s12397_s0 + $0x5f0] sm:$0xff]  ;;  %v8002_v51 = vld [vmem:[%s12397_s0 + $0x7e0] sm:$0xff] }
  0x61   : > { %871 = vmatpush1.bf16.msra.mxu0 %v816_v36  ;;  %v838_v36 = vpack.c.bf16 %v7948_v29, %v7946_v20  ;;  %v867_v52 = vpack.c.bf16 %v8005_v46, %v8003_v45  ;;  %v7927_v13 = vld [vmem:[%s12397_s0 + $0x588] sm:$0xff]  ;;  %v7990_v28 = vld [vmem:[%s12397_s0 + $0x780] sm:$0xff]  ;;  %v7992_v29 = vld [vmem:[%s12397_s0 + $0x790] sm:$0xff] }
  0x62   : > { %912 = vmatpush1.bf16.msra.mxu1 %v848_v37  ;;  %872 = vmatprep.subr.bf16.mxu0 %v815_v38  ;;  %v805_v37 = vpack.c.bf16 %v7881_v31, %v7879_v21  ;;  %v7878_v38 = vld [vmem:[%s12397_s0 + $0x400] sm:$0xff]  ;;  %v7991_v15 = vld [vmem:[%s12397_s0 + $0x788] sm:$0xff]  ;;  %v829_v22 = vpack.c.bf16 %v7929_v14, %v7927_v13  ;;  %v7925_v21 = vld [vmem:[%s12397_s0 + $0x578] sm:$0xff]  ;;  %v860_v34 = vpack.c.bf16 %v7992_v29, %v7990_v28 }
  0x63   : > { %913 = vmatprep.subr.bf16.mxu1 %v847_v42  ;;  %v7944_v42 = vld [vmem:[%s12397_s0 + $0x610] sm:$0xff]  ;;  %v804_v47 = vpack.c.bf16 %v7880_v39, %v7878_v38  ;;  %v861_v20 = vpack.c.bf16 %v7993_v16, %v7991_v15  ;;  %v7987_v31 = vld [vmem:[%s12397_s0 + $0x768] sm:$0xff]  ;;  %v7989_v32 = vld [vmem:[%s12397_s0 + $0x778] sm:$0xff] }
  0x64   : > { %v7986_v38 = vld [vmem:[%s12397_s0 + $0x760] sm:$0xff]  ;;  %v859_v39 = vpack.c.bf16 %v7989_v32, %v7987_v31 }
  0x65   : > { %873 = vmatpush1.bf16.msra.mxu0 %v814_v48  ;;  %v836_v48 = vpack.c.bf16 %v7944_v42, %v7942_v40  ;;  %v7988_v40 = vld [vmem:[%s12397_s0 + $0x770] sm:$0xff]  ;;  %v7921_v42 = vld [vmem:[%s12397_s0 + $0x558] sm:$0xff] }
  0x66   : > { %914 = vmatpush1.bf16.msra.mxu1 %v846_v49  ;;  %874 = vmatprep.subr.bf16.mxu0 %v813_v50  ;;  %v835_v49 = vpack.c.bf16 %v7941_v44, %v7939_v43  ;;  %v7938_v50 = vld [vmem:[%s12397_s0 + $0x5e0] sm:$0xff]  ;;  %v7983_v43 = vld [vmem:[%s12397_s0 + $0x748] sm:$0xff]  ;;  %v7985_v44 = vld [vmem:[%s12397_s0 + $0x758] sm:$0xff]  ;;  %v858_v46 = vpack.c.bf16 %v7988_v40, %v7986_v38 }
  0x67   : > { %915 = vmatprep.subr.bf16.mxu1 %v845_v24  ;;  %v8004_v24 = vld [vmem:[%s12397_s0 + $0x7f0] sm:$0xff]  ;;  %v834_v57 = vpack.c.bf16 %v7940_v23, %v7938_v50  ;;  %v7982_v50 = vld [vmem:[%s12397_s0 + $0x740] sm:$0xff]  ;;  %v857_v23 = vpack.c.bf16 %v7985_v44, %v7983_v43 }
  0x69   : > { %875 = vmatpush1.bf16.msra.mxu0 %v812_v58  ;;  %v866_v58 = vpack.c.bf16 %v8004_v24, %v8002_v51  ;;  %v7984_v51 = vld [vmem:[%s12397_s0 + $0x750] sm:$0xff]  ;;  %v7917_v24 = vld [vmem:[%s12397_s0 + $0x538] sm:$0xff] }
  0x6a   : > { %916 = vmatpush1.bf16.msra.mxu1 %v844_v59  ;;  %876 = vmatprep.subr.bf16.mxu0 %v811_v60  ;;  %v833_v59 = vpack.c.bf16 %v7937_v54, %v7935_v53  ;;  %v7934_v60 = vld [vmem:[%s12397_s0 + $0x5c0] sm:$0xff]  ;;  %v7979_v53 = vld [vmem:[%s12397_s0 + $0x728] sm:$0xff]  ;;  %v7981_v54 = vld [vmem:[%s12397_s0 + $0x738] sm:$0xff]  ;;  %v856_v56 = vpack.c.bf16 %v7984_v51, %v7982_v50 }
  0x6b   : > { %917 = vmatprep.subr.bf16.mxu1 %v843_v0  ;;  %v8000_v0 = vld [vmem:[%s12397_s0 + $0x7d0] sm:$0xff]  ;;  %v832_v5 = vpack.c.bf16 %v7936_v61, %v7934_v60  ;;  %v7978_v60 = vld [vmem:[%s12397_s0 + $0x720] sm:$0xff]  ;;  %v855_v61 = vpack.c.bf16 %v7981_v54, %v7979_v53 }
  0x6d   : > { %877 = vmatpush1.bf16.msra.mxu0 %v810_v6  ;;  %v864_v6 = vpack.c.bf16 %v8000_v0, %v7998_v62  ;;  %v7980_v62 = vld [vmem:[%s12397_s0 + $0x730] sm:$0xff]  ;;  %v7913_v0 = vld [vmem:[%s12397_s0 + $0x518] sm:$0xff] }
  0x6e   : > { %918 = vmatpush1.bf16.msra.mxu1 %v842_v7  ;;  %878 = vmatprep.subr.bf16.mxu0 %v809_v8  ;;  %v831_v7 = vpack.c.bf16 %v7933_v2, %v7931_v1  ;;  %v7930_v8 = vld [vmem:[%s12397_s0 + $0x5a0] sm:$0xff]  ;;  %v7975_v1 = vld [vmem:[%s12397_s0 + $0x708] sm:$0xff]  ;;  %v7977_v2 = vld [vmem:[%s12397_s0 + $0x718] sm:$0xff]  ;;  %v854_v4 = vpack.c.bf16 %v7980_v62, %v7978_v60 }
  0x6f   : > { %919 = vmatprep.subr.bf16.mxu1 %v841_v12  ;;  %v7996_v12 = vld [vmem:[%s12397_s0 + $0x7b0] sm:$0xff]  ;;  %v830_v17 = vpack.c.bf16 %v7932_v9, %v7930_v8  ;;  %v853_v8 = vpack.c.bf16 %v7977_v2, %v7975_v1  ;;  %v7974_v9 = vld [vmem:[%s12397_s0 + $0x700] sm:$0xff] }
  0x71   : > { %879 = vmatpush1.bf16.msra.mxu0 %v808_v19  ;;  %v862_v19 = vpack.c.bf16 %v7996_v12, %v7994_v10  ;;  %v7976_v10 = vld [vmem:[%s12397_s0 + $0x710] sm:$0xff] }
  0x72   : > { %920 = vmatpush1.bf16.msra.mxu1 %v840_v26  ;;  %880 = vmatprep.subr.bf16.mxu0 %v807_v27  ;;  %v7926_v26 = vld [vmem:[%s12397_s0 + $0x580] sm:$0xff]  ;;  %v7928_v27 = vld [vmem:[%s12397_s0 + $0x590] sm:$0xff]  ;;  %v852_v12 = vpack.c.bf16 %v7976_v10, %v7974_v9 }
  0x73   : > { %921 = vmatprep.subr.bf16.mxu1 %v839_v30  ;;  %v7923_v30 = vld [vmem:[%s12397_s0 + $0x568] sm:$0xff]  ;;  %v828_v33 = vpack.c.bf16 %v7928_v27, %v7926_v26 }
  0x75   : > { %881 = vmatpush1.bf16.msra.mxu0 %v806_v35  ;;  %v827_v35 = vpack.c.bf16 %v7925_v21, %v7923_v30 }
  0x76   : > { %922 = vmatpush1.bf16.msra.mxu1 %v838_v36  ;;  %882 = vmatprep.subr.bf16.mxu0 %v805_v37  ;;  %v7922_v36 = vld [vmem:[%s12397_s0 + $0x560] sm:$0xff]  ;;  %v7924_v37 = vld [vmem:[%s12397_s0 + $0x570] sm:$0xff] }
  0x77   : > { %923 = vmatprep.subr.bf16.mxu1 %v837_v41  ;;  %v7919_v41 = vld [vmem:[%s12397_s0 + $0x548] sm:$0xff]  ;;  %v826_v45 = vpack.c.bf16 %v7924_v37, %v7922_v36 }
  0x79   : > { %883 = vmatpush1.bf16.msra.mxu0 %v804_v47  ;;  %v825_v47 = vpack.c.bf16 %v7921_v42, %v7919_v41 }
  0x7a   : > { %924 = vmatpush1.bf16.msra.mxu1 %v836_v48  ;;  %884 = vmatprep.subr.bf16.mxu0 %v835_v49  ;;  %v7918_v48 = vld [vmem:[%s12397_s0 + $0x540] sm:$0xff]  ;;  %v7920_v49 = vld [vmem:[%s12397_s0 + $0x550] sm:$0xff] }
  0x7b   : > { %925 = vmatprep.subr.bf16.mxu1 %v867_v52  ;;  %v7915_v52 = vld [vmem:[%s12397_s0 + $0x528] sm:$0xff]  ;;  %v824_v55 = vpack.c.bf16 %v7920_v49, %v7918_v48 }
  0x7d   : > { %885 = vmatpush2.bf16.msra.mxu0 %v834_v57  ;;  %v823_v57 = vpack.c.bf16 %v7917_v24, %v7915_v52 }
  0x7e   : > { %926 = vmatpush2.bf16.msra.mxu1 %v866_v58  ;;  %886 = vmatprep.subr.bf16.mxu0 %v833_v59  ;;  %v7914_v58 = vld [vmem:[%s12397_s0 + $0x520] sm:$0xff]  ;;  %v7916_v59 = vld [vmem:[%s12397_s0 + $0x530] sm:$0xff] }
  0x7f   : > { %927 = vmatprep.subr.bf16.mxu1 %v865_v63  ;;  %v7911_v63 = vld [vmem:[%s12397_s0 + $0x508] sm:$0xff]  ;;  %v822_v3 = vpack.c.bf16 %v7916_v59, %v7914_v58 }
  0x81   : > { %887 = vmatpush2.bf16.msra.mxu0 %v832_v5  ;;  %v821_v5 = vpack.c.bf16 %v7913_v0, %v7911_v63 }
  0x82   : > { %928 = vmatpush2.bf16.msra.mxu1 %v864_v6  ;;  %888 = vmatprep.subr.bf16.mxu0 %v831_v7  ;;  %v7910_v6 = vld [vmem:[%s12397_s0 + $0x500] sm:$0xff]  ;;  %v7912_v7 = vld [vmem:[%s12397_s0 + $0x510] sm:$0xff] }
  0x83   : > { %929 = vmatprep.subr.bf16.mxu1 %v863_v11  ;;  %v820_v11 = vpack.c.bf16 %v7912_v7, %v7910_v6 }
  0x85   : > { %889 = vmatpush2.bf16.msra.mxu0 %v830_v17 }
  0x86   : > { %930 = vmatpush2.bf16.msra.mxu1 %v862_v19  ;;  %890 = vmatprep.subr.bf16.mxu0 %v829_v22 }
  0x87   : > { %931 = vmatprep.subr.bf16.mxu1 %v861_v20 }
  0x89   : > { %891 = vmatpush2.bf16.msra.mxu0 %v828_v33 }
  0x8a   : > { %932 = vmatpush2.bf16.msra.mxu1 %v860_v34  ;;  %892 = vmatprep.subr.bf16.mxu0 %v827_v35 }
  0x8b   : > { %933 = vmatprep.subr.bf16.mxu1 %v859_v39 }
  0x8d   : > { %893 = vmatpush2.bf16.msra.mxu0 %v826_v45 }
  0x8e   : > { %934 = vmatpush2.bf16.msra.mxu1 %v858_v46  ;;  %894 = vmatprep.subr.bf16.mxu0 %v825_v47 }
  0x8f   : > { %935 = vmatprep.subr.bf16.mxu1 %v857_v23 }
  0x91   : > { %895 = vmatpush2.bf16.msra.mxu0 %v824_v55 }
  0x92   : > { %936 = vmatpush2.bf16.msra.mxu1 %v856_v56  ;;  %896 = vmatprep.subr.bf16.mxu0 %v823_v57 }
  0x93   : > { %937 = vmatprep.subr.bf16.mxu1 %v855_v61 }
  0x95   : > { %897 = vmatpush2.bf16.msra.mxu0 %v822_v3 }
  0x96   : > { %938 = vmatpush2.bf16.msra.mxu1 %v854_v4  ;;  %898 = vmatprep.subr.bf16.mxu0 %v821_v5 }
  0x97   : > { %939 = vmatprep.subr.bf16.mxu1 %v853_v8 }
  0x99   : > { %899 = vmatpush2.bf16.msra.mxu0 %v820_v11 }
  0x9a   : > { %940 = vmatpush2.bf16.msra.mxu1 %v852_v12 }
  0x9c   : > { %901 = vmatmul.mubr.bf16.vlgmr.msra.gmra.mxu0 %v10906_v18 }
  0x9d   : > { %942 = vmatmul.mubr.bf16.vlgmr.msra.gmra.mxu1 %v10916_v25 }
  0xd2   : > { %v565_v13 = vpop.permute.xlu0 %564 }
 0x11c   : > { %v615_v14 = vpop.f32.mrf.mxu0 }
 0x11d   : > { %v656_v15 = vpop.f32.mrf.mxu1  ;;  %v616_v16 = vadd.f32 %v615_v14, %v565_v13 }
 0x11e   : > { %v617_v17 = vpop.f32.mrf.mxu0 }
 0x11f   : > { %v618_v19 = vadd.f32 %v617_v17, %v565_v13  ;;  %v657_v22 = vadd.f32 %v656_v15, %v616_v16  ;;  %v658_v26 = vpop.f32.mrf.mxu1 }
 0x120   : > { %v619_v27 = vpop.f32.mrf.mxu0 }
 0x121   : > { %v659_v28 = vadd.f32 %v658_v26, %v618_v19  ;;  %v660_v20 = vpop.f32.mrf.mxu1 }
 0x122   : > { %v620_v18 = vpop.f32.mrf.mxu0 }
 0x123   : > { %v8922_v30 = vpack.c.bf16 %v659_v28, %v657_v22  ;;  %v661_v25 = vpop.f32.mrf.mxu1 }
 0x125   : > { %674 = vst.msk [vmem:[#allocation2] sm:$0xff] %vm11275_vm9, %v8922_v30 }
 0x15c   : > { %v902_v21 = vpop.f32.mrf.mxu0 }
 0x15d   : > { %v903_v31 = vadd.f32 %v902_v21, %v565_v13  ;;  %v943_v32 = vpop.f32.mrf.mxu1 }
 0x15e   : > { %v904_v33 = vpop.f32.mrf.mxu0 }
 0x15f   : > { %v905_v34 = vadd.f32 %v904_v33, %v565_v13  ;;  %v945_v35 = vpop.f32.mrf.mxu1  ;;  %v944_v37 = vadd.f32 %v943_v32, %v903_v31 }
 0x160   : > { %v906_v36 = vpop.f32.mrf.mxu0 }
 0x161   : > { %v946_v38 = vadd.f32 %v945_v35, %v905_v34  ;;  %v947_v39 = vpop.f32.mrf.mxu1 }
 0x162   : > { %v907_v40 = vpop.f32.mrf.mxu0 }
 0x163   : > { %v8923_v41 = vpack.c.bf16 %v946_v38, %v944_v37  ;;  %v948_v42 = vpop.f32.mrf.mxu1 }
 0x165   : > { %959 = vst.msk [vmem:[#allocation2 + $0x8] sm:$0xff] %vm11275_vm9, %v8923_v41 }
 0x166 PF: > { %v8974_v43 = vld [vmem:[%s10450_s11 + $0x2e4] ss:$16 sps:$4 sm:$0xff]   ;;  %v8976_v44 = vld [vmem:[%s10450_s11 + $0x2ec] ss:$16 sps:$4 sm:$0xff]   ;;  %v8978_v45 = vld [vmem:[%s10450_s11 + $0x2e0] ss:$16 sps:$4 sm:$0xff]  }
 0x167   : > { %1433 = vmatprep.subr.bf16.mxu0 %v8974_v43  ;;  %v8979_v46 = vld [vmem:[%s10450_s11 + $0x2e8] ss:$16 sps:$4 sm:$0xff]   ;;  %1474 = vmatprep.subr.bf16.mxu1 %v8976_v44  ;;  %v8980_v47 = vld [vmem:[%s10450_s11 + $0x2c4] ss:$16 sps:$4 sm:$0xff]   ;;  %v8982_v48 = vld [vmem:[%s10450_s11 + $0x2cc] ss:$16 sps:$4 sm:$0xff]  }
 0x168   : > { %1434 = vmatpush1.bf16.msra.mxu0 %v8978_v45  ;;  %1475 = vmatpush1.bf16.msra.mxu1 %v8979_v46  ;;  %v8984_v49 = vld [vmem:[%s10450_s11 + $0x2c0] ss:$16 sps:$4 sm:$0xff]   ;;  %v8985_v50 = vld [vmem:[%s10450_s11 + $0x2c8] ss:$16 sps:$4 sm:$0xff]   ;;  %v8986_v23 = vld [vmem:[%s10450_s11 + $0x2a4] ss:$16 sps:$4 sm:$0xff]  }
 0x169   : > { %1435 = vmatprep.subr.bf16.mxu0 %v8980_v47  ;;  %1476 = vmatprep.subr.bf16.mxu1 %v8982_v48  ;;  %v8988_v51 = vld [vmem:[%s10450_s11 + $0x2ac] ss:$16 sps:$4 sm:$0xff]   ;;  %v8990_v52 = vld [vmem:[%s10450_s11 + $0x2a0] ss:$16 sps:$4 sm:$0xff]   ;;  %v8991_v24 = vld [vmem:[%s10450_s11 + $0x2a8] ss:$16 sps:$4 sm:$0xff]  }
 0x16a   : > { %v8992_v53 = vld [vmem:[%s10450_s11 + $0x284] ss:$16 sps:$4 sm:$0xff]   ;;  %v8994_v54 = vld [vmem:[%s10450_s11 + $0x28c] ss:$16 sps:$4 sm:$0xff]   ;;  %v8996_v55 = vld [vmem:[%s10450_s11 + $0x280] ss:$16 sps:$4 sm:$0xff]  }
 0x16b   : > { %v8997_v56 = vld [vmem:[%s10450_s11 + $0x288] ss:$16 sps:$4 sm:$0xff]   ;;  %v8998_v57 = vld [vmem:[%s10450_s11 + $0x264] ss:$16 sps:$4 sm:$0xff]   ;;  %v9000_v58 = vld [vmem:[%s10450_s11 + $0x26c] ss:$16 sps:$4 sm:$0xff]  }
 0x16c   : > { %1436 = vmatpush1.bf16.msra.mxu0 %v8984_v49  ;;  %1477 = vmatpush1.bf16.msra.mxu1 %v8985_v50  ;;  %v9002_v59 = vld [vmem:[%s10450_s11 + $0x260] ss:$16 sps:$4 sm:$0xff]   ;;  %v9003_v60 = vld [vmem:[%s10450_s11 + $0x268] ss:$16 sps:$4 sm:$0xff]   ;;  %v9004_v61 = vld [vmem:[%s10450_s11 + $0x244] ss:$16 sps:$4 sm:$0xff]  }
 0x16d   : > { %1437 = vmatprep.subr.bf16.mxu0 %v8986_v23  ;;  %1478 = vmatprep.subr.bf16.mxu1 %v8988_v51  ;;  %v9006_v62 = vld [vmem:[%s10450_s11 + $0x24c] ss:$16 sps:$4 sm:$0xff]   ;;  %v9008_v63 = vld [vmem:[%s10450_s11 + $0x240] ss:$16 sps:$4 sm:$0xff]   ;;  %v9009_v0 = vld [vmem:[%s10450_s11 + $0x248] ss:$16 sps:$4 sm:$0xff]  }
 0x16e   : > { %v9010_v1 = vld [vmem:[%s10450_s11 + $0x224] ss:$16 sps:$4 sm:$0xff]   ;;  %v9012_v2 = vld [vmem:[%s10450_s11 + $0x22c] ss:$16 sps:$4 sm:$0xff]   ;;  %v9014_v3 = vld [vmem:[%s10450_s11 + $0x220] ss:$16 sps:$4 sm:$0xff]  }
 0x16f   : > { %v9015_v4 = vld [vmem:[%s10450_s11 + $0x228] ss:$16 sps:$4 sm:$0xff]   ;;  %v9016_v5 = vld [vmem:[%s10450_s11 + $0x204] ss:$16 sps:$4 sm:$0xff]   ;;  %v9018_v6 = vld [vmem:[%s10450_s11 + $0x20c] ss:$16 sps:$4 sm:$0xff]  }
 0x170   : > { %1438 = vmatpush1.bf16.msra.mxu0 %v8990_v52  ;;  %1479 = vmatpush1.bf16.msra.mxu1 %v8991_v24  ;;  %v9020_v7 = vld [vmem:[%s10450_s11 + $0x200] ss:$16 sps:$4 sm:$0xff]   ;;  %v9021_v8 = vld [vmem:[%s10450_s11 + $0x208] ss:$16 sps:$4 sm:$0xff]   ;;  %v9022_v9 = vld [vmem:[%s10450_s11 + $0x3e4] ss:$16 sps:$4 sm:$0xff]  }
 0x171   : > { %1439 = vmatprep.subr.bf16.mxu0 %v8992_v53  ;;  %1480 = vmatprep.subr.bf16.mxu1 %v8994_v54  ;;  %v9024_v10 = vld [vmem:[%s10450_s11 + $0x3ec] ss:$16 sps:$4 sm:$0xff]   ;;  %v9026_v11 = vld [vmem:[%s10450_s11 + $0x3e0] ss:$16 sps:$4 sm:$0xff]   ;;  %v9027_v12 = vld [vmem:[%s10450_s11 + $0x3e8] ss:$16 sps:$4 sm:$0xff]  }
 0x172   : > { %v9028_v13 = vld [vmem:[%s10450_s11 + $0x3c4] ss:$16 sps:$4 sm:$0xff]   ;;  %v9030_v14 = vld [vmem:[%s10450_s11 + $0x3cc] ss:$16 sps:$4 sm:$0xff]   ;;  %v9032_v15 = vld [vmem:[%s10450_s11 + $0x3c0] ss:$16 sps:$4 sm:$0xff]  }
 0x173   : > { %v9033_v16 = vld [vmem:[%s10450_s11 + $0x3c8] ss:$16 sps:$4 sm:$0xff]   ;;  %v9034_v17 = vld [vmem:[%s10450_s11 + $0x3a4] ss:$16 sps:$4 sm:$0xff]   ;;  %v9036_v19 = vld [vmem:[%s10450_s11 + $0x3ac] ss:$16 sps:$4 sm:$0xff]  }
 0x174   : > { %1440 = vmatpush1.bf16.msra.mxu0 %v8996_v55  ;;  %1481 = vmatpush1.bf16.msra.mxu1 %v8997_v56  ;;  %v9038_v22 = vld [vmem:[%s10450_s11 + $0x3a0] ss:$16 sps:$4 sm:$0xff]   ;;  %v9039_v26 = vld [vmem:[%s10450_s11 + $0x3a8] ss:$16 sps:$4 sm:$0xff]   ;;  %v9040_v27 = vld [vmem:[%s10450_s11 + $0x384] ss:$16 sps:$4 sm:$0xff]  }
 0x175   : > { %1441 = vmatprep.subr.bf16.mxu0 %v8998_v57  ;;  %1482 = vmatprep.subr.bf16.mxu1 %v9000_v58  ;;  %v9042_v28 = vld [vmem:[%s10450_s11 + $0x38c] ss:$16 sps:$4 sm:$0xff]   ;;  %v960_v20 = vld [vmem:[#allocation2] sm:$0x11]  ;;  %v9045_v25 = vld [vmem:[%s10450_s11 + $0x388] ss:$16 sps:$4 sm:$0xff]  }
 0x176   : > { %v961_v29 = vld [vmem:[#allocation2 + $0x8] sm:$0x11]  ;;  %v8008_v18 = vcombine.high %v960_v20, %v960_v20  ;;  %v9044_v30 = vld [vmem:[%s10450_s11 + $0x380] ss:$16 sps:$4 sm:$0xff]   ;;  %v9046_v31 = vld [vmem:[%s10450_s11 + $0x364] ss:$16 sps:$4 sm:$0xff]   ;;  %v8007_v39 = vcombine.low %v960_v20, %v960_v20 }
 0x177   : > { %v8010_v21 = vcombine.high %v961_v29, %v961_v29  ;;  %v9048_v32 = vld [vmem:[%s10450_s11 + $0x36c] ss:$16 sps:$4 sm:$0xff]   ;;  %vm1105_vm10 = vcmask 1041409   ;;  %v9050_v36 = vld [vmem:[%s10450_s11 + $0x360] ss:$16 sps:$4 sm:$0xff]   ;;  %v8009_v46 = vcombine.low %v961_v29, %v961_v29  ;;  %vm7757_vm11 = vcmask 1041408  }
 0x178   : > { %1442 = vmatpush1.bf16.msra.mxu0 %v9002_v59  ;;  %1483 = vmatpush1.bf16.msra.mxu1 %v9003_v60  ;;  %v1101_v33 = vunpack.c.l.b16 %v8008_v18  ;;  %v9051_v37 = vld [vmem:[%s10450_s11 + $0x368] ss:$16 sps:$4 sm:$0xff]   ;;  %v9052_v38 = vld [vmem:[%s10450_s11 + $0x344] ss:$16 sps:$4 sm:$0xff]   ;;  %v9054_v40 = vld [vmem:[%s10450_s11 + $0x34c] ss:$16 sps:$4 sm:$0xff]   ;;  %v11341_v47 = vunpack.c.l.b16 %v8007_v39 }
 0x179   : > { %1443 = vmatprep.subr.bf16.mxu0 %v9004_v61  ;;  %1484 = vmatprep.subr.bf16.mxu1 %v9006_v62  ;;  %v1103_v34 = vunpack.c.l.b16 %v8010_v21  ;;  %v9056_v43 = vld [vmem:[%s10450_s11 + $0x340] ss:$16 sps:$4 sm:$0xff]   ;;  %v9057_v44 = vld [vmem:[%s10450_s11 + $0x348] ss:$16 sps:$4 sm:$0xff]   ;;  %v9058_v45 = vld [vmem:[%s10450_s11 + $0x324] ss:$16 sps:$4 sm:$0xff]   ;;  %v11347_v51 = vunpack.c.l.b16 %v8009_v46 }
 0x17a   : > { %v1107_v35 = vrot.slane %v1101_v33, 1  ;;  %v9060_v48 = vld [vmem:[%s10450_s11 + $0x32c] ss:$16 sps:$4 sm:$0xff]   ;;  %v9062_v49 = vld [vmem:[%s10450_s11 + $0x320] ss:$16 sps:$4 sm:$0xff]   ;;  %v1104_v52 = vrot.slane %v11341_v47, 1 }
 0x17b   : > { %v9063_v50 = vld [vmem:[%s10450_s11 + $0x328] ss:$16 sps:$4 sm:$0xff]   ;;  %v9064_v23 = vld [vmem:[%s10450_s11 + $0x304] ss:$16 sps:$4 sm:$0xff]   ;;  %v9066_v24 = vld [vmem:[%s10450_s11 + $0x30c] ss:$16 sps:$4 sm:$0xff]  }
 0x17c   : > { %1444 = vmatpush1.bf16.msra.mxu0 %v9008_v63  ;;  %1485 = vmatpush1.bf16.msra.mxu1 %v9009_v0  ;;  %v1108_v41 = vsel %vm1105_vm10, %v1103_v34, %v1107_v35  ;;  %v9068_v53 = vld [vmem:[%s10450_s11 + $0x300] ss:$16 sps:$4 sm:$0xff]   ;;  %v1517_v54 = vrot.slane %v1103_v34, 7  ;;  %v9069_v55 = vld [vmem:[%s10450_s11 + $0x308] ss:$16 sps:$4 sm:$0xff]   ;;  %v1106_v56 = vsel %vm1105_vm10, %v11347_v51, %v1104_v52  ;;  %vm7758_vm12 = vcmask 1043458  }
 0x17d   : > { %1445 = vmatprep.subr.bf16.mxu0 %v9010_v1  ;;  %1486 = vmatprep.subr.bf16.mxu1 %v9012_v2  ;;  %v1110_v42 = vpack.c.b16 %v1108_v41, %v1108_v41  ;;  %v9076_v57 = vld [vmem:[%s10450_s11 + $0xe4] ss:$16 sps:$4 sm:$0xff]   ;;  %v9079_v58 = vld [vmem:[%s10450_s11 + $0xec] ss:$16 sps:$4 sm:$0xff]   ;;  %v1109_v59 = vpack.c.b16 %v1106_v56, %v1106_v56  ;;  %v9074_v60 = vld [vmem:[%s10450_s11 + $0xe0] ss:$16 sps:$4 sm:$0xff]  }
 0x17e   : > { %v1518_v61 = vsel %vm1105_vm10, %v1517_v54, %v1101_v33  ;;  %v9077_v62 = vld [vmem:[%s10450_s11 + $0xe8] ss:$16 sps:$4 sm:$0xff]   ;;  %v9082_v63 = vld [vmem:[%s10450_s11 + $0xc4] ss:$16 sps:$4 sm:$0xff]   ;;  %v9085_v0 = vld [vmem:[%s10450_s11 + $0xcc] ss:$16 sps:$4 sm:$0xff]  }
 0x17f   : > { %1465 = vmatprep.mubr.bf16.mxu0 %v1110_v42  ;;  %1506 = vmatprep.mubr.bf16.mxu1 %v1110_v42  ;;  %v1520_v1 = vpack.c.b16 %v1518_v61, %v1518_v61  ;;  %v9080_v2 = vld [vmem:[%s10450_s11 + $0xc0] ss:$16 sps:$4 sm:$0xff]   ;;  %v9113_v20 = vld [vmem:[%s10450_s11 + $0x28] ss:$16 sps:$4 sm:$0xff]   ;;  %v9118_v29 = vld [vmem:[%s10450_s11 + $0x4] ss:$16 sps:$4 sm:$0xff]  }
 0x180   : > { %1446 = vmatpush1.bf16.msra.mxu0 %v9014_v3  ;;  %1487 = vmatpush1.bf16.msra.mxu1 %v9015_v4  ;;  %v9083_v3 = vld [vmem:[%s10450_s11 + $0xc8] ss:$16 sps:$4 sm:$0xff]   ;;  %v9088_v4 = vld [vmem:[%s10450_s11 + $0xa4] ss:$16 sps:$4 sm:$0xff]   ;;  %v9121_v18 = vld [vmem:[%s10450_s11 + $0xc] ss:$16 sps:$4 sm:$0xff]  }
 0x181   : > { %1447 = vmatprep.subr.bf16.mxu0 %v9016_v5  ;;  %1488 = vmatprep.subr.bf16.mxu1 %v9018_v6  ;;  %v9091_v5 = vld [vmem:[%s10450_s11 + $0xac] ss:$16 sps:$4 sm:$0xff]   ;;  %v9086_v6 = vld [vmem:[%s10450_s11 + $0xa0] ss:$16 sps:$4 sm:$0xff]   ;;  %v9124_v21 = vld [vmem:[%s10450_s11 + $0x1e4] ss:$16 sps:$4 sm:$0xff]  }
 0x182   : > { %v9125_v33 = vld [vmem:[%s10450_s11 + $0x1e8] ss:$16 sps:$4 sm:$0xff]   ;;  %v9130_v34 = vld [vmem:[%s10450_s11 + $0x1c4] ss:$16 sps:$4 sm:$0xff]   ;;  %v9133_v35 = vld [vmem:[%s10450_s11 + $0x1cc] ss:$16 sps:$4 sm:$0xff]  }
 0x183   : > { %v9139_v39 = vld [vmem:[%s10450_s11 + $0x1ac] ss:$16 sps:$4 sm:$0xff]   ;;  %v9137_v41 = vld [vmem:[%s10450_s11 + $0x1a8] ss:$16 sps:$4 sm:$0xff]   ;;  %v9142_v42 = vld [vmem:[%s10450_s11 + $0x184] ss:$16 sps:$4 sm:$0xff]  }
 0x184   : > { %1448 = vmatpush1.bf16.msra.mxu0 %v9020_v7  ;;  %1489 = vmatpush1.bf16.msra.mxu1 %v9021_v8  ;;  %v9089_v7 = vld [vmem:[%s10450_s11 + $0xa8] ss:$16 sps:$4 sm:$0xff]   ;;  %v9094_v8 = vld [vmem:[%s10450_s11 + $0x84] ss:$16 sps:$4 sm:$0xff]   ;;  %v9157_v52 = vld [vmem:[%s10450_s11 + $0x14c] ss:$16 sps:$4 sm:$0xff]  }
 0x185   : > { %1449 = vmatprep.subr.bf16.mxu0 %v9022_v9  ;;  %1490 = vmatprep.subr.bf16.mxu1 %v9024_v10  ;;  %v9097_v9 = vld [vmem:[%s10450_s11 + $0x8c] ss:$16 sps:$4 sm:$0xff]   ;;  %v9092_v10 = vld [vmem:[%s10450_s11 + $0x80] ss:$16 sps:$4 sm:$0xff]   ;;  %v9148_v46 = vld [vmem:[%s10450_s11 + $0x164] ss:$16 sps:$4 sm:$0xff]  }
 0x186   : > { %v9160_v54 = vld [vmem:[%s10450_s11 + $0x124] ss:$16 sps:$4 sm:$0xff]   ;;  %v9158_v56 = vld [vmem:[%s10450_s11 + $0x120] ss:$16 sps:$4 sm:$0xff]   ;;  %vm7759_vm13 = vmor %vm7758_vm12, %vm7757_vm11  ;;  %vm7760_vm14 = vcmask 1045508   ;;  %vm7762_vm0 = vcmask 588806  }
 0x187   : > { %v9164_v61 = vld [vmem:[%s10450_s11 + $0x100] ss:$16 sps:$4 sm:$0xff]   ;;  %vm7761_vm15 = vmor %vm7760_vm14, %vm7759_vm13 }
 0x188   : > { %1450 = vmatpush2.bf16.msra.mxu0 %v9026_v11  ;;  %1491 = vmatpush2.bf16.msra.mxu1 %v9027_v12  ;;  %v9095_v11 = vld [vmem:[%s10450_s11 + $0x88] ss:$16 sps:$4 sm:$0xff]   ;;  %v9100_v12 = vld [vmem:[%s10450_s11 + $0x64] ss:$16 sps:$4 sm:$0xff]   ;;  %vm7763_vm1 = vmor %vm7762_vm0, %vm7761_vm15 }
 0x189   : > { %1451 = vmatprep.subr.bf16.mxu0 %v9028_v13  ;;  %1492 = vmatprep.subr.bf16.mxu1 %v9030_v14  ;;  %v9103_v13 = vld [vmem:[%s10450_s11 + $0x6c] ss:$16 sps:$4 sm:$0xff]   ;;  %v9098_v14 = vld [vmem:[%s10450_s11 + $0x60] ss:$16 sps:$4 sm:$0xff]  }
 0x18c   : > { %1452 = vmatpush2.bf16.msra.mxu0 %v9032_v15  ;;  %1493 = vmatpush2.bf16.msra.mxu1 %v9033_v16  ;;  %v9101_v15 = vld [vmem:[%s10450_s11 + $0x68] ss:$16 sps:$4 sm:$0xff]   ;;  %v9106_v16 = vld [vmem:[%s10450_s11 + $0x44] ss:$16 sps:$4 sm:$0xff]  }
 0x18d   : > { %1453 = vmatprep.subr.bf16.mxu0 %v9034_v17  ;;  %1494 = vmatprep.subr.bf16.mxu1 %v9036_v19  ;;  %v9109_v17 = vld [vmem:[%s10450_s11 + $0x4c] ss:$16 sps:$4 sm:$0xff]   ;;  %v9104_v19 = vld [vmem:[%s10450_s11 + $0x40] ss:$16 sps:$4 sm:$0xff]  }
 0x190   : > { %1454 = vmatpush2.bf16.msra.mxu0 %v9038_v22  ;;  %1495 = vmatpush2.bf16.msra.mxu1 %v9039_v26  ;;  %v9107_v22 = vld [vmem:[%s10450_s11 + $0x48] ss:$16 sps:$4 sm:$0xff]   ;;  %v9112_v26 = vld [vmem:[%s10450_s11 + $0x24] ss:$16 sps:$4 sm:$0xff]  }
 0x191   : > { %1455 = vmatprep.subr.bf16.mxu0 %v9040_v27  ;;  %1496 = vmatprep.subr.bf16.mxu1 %v9042_v28  ;;  %v9115_v27 = vld [vmem:[%s10450_s11 + $0x2c] ss:$16 sps:$4 sm:$0xff]   ;;  %v9110_v28 = vld [vmem:[%s10450_s11 + $0x20] ss:$16 sps:$4 sm:$0xff]  }
 0x194   : > { %1456 = vmatpush2.bf16.msra.mxu0 %v9044_v30  ;;  %1497 = vmatpush2.bf16.msra.mxu1 %v9045_v25  ;;  %v9116_v30 = vld [vmem:[%s10450_s11] ss:$16 sps:$4 sm:$0xff]   ;;  %v9119_v25 = vld [vmem:[%s10450_s11 + $0x8] ss:$16 sps:$4 sm:$0xff]  }
 0x195   : > { %1457 = vmatprep.subr.bf16.mxu0 %v9046_v31  ;;  %1498 = vmatprep.subr.bf16.mxu1 %v9048_v32  ;;  %v9127_v31 = vld [vmem:[%s10450_s11 + $0x1ec] ss:$16 sps:$4 sm:$0xff]   ;;  %v9122_v32 = vld [vmem:[%s10450_s11 + $0x1e0] ss:$16 sps:$4 sm:$0xff]  }
 0x198   : > { %1458 = vmatpush2.bf16.msra.mxu0 %v9050_v36  ;;  %1499 = vmatpush2.bf16.msra.mxu1 %v9051_v37  ;;  %v9128_v36 = vld [vmem:[%s10450_s11 + $0x1c0] ss:$16 sps:$4 sm:$0xff]   ;;  %v9131_v37 = vld [vmem:[%s10450_s11 + $0x1c8] ss:$16 sps:$4 sm:$0xff]  }
 0x199   : > { %1459 = vmatprep.subr.bf16.mxu0 %v9052_v38  ;;  %1500 = vmatprep.subr.bf16.mxu1 %v9054_v40  ;;  %v9136_v38 = vld [vmem:[%s10450_s11 + $0x1a4] ss:$16 sps:$4 sm:$0xff]   ;;  %v9134_v40 = vld [vmem:[%s10450_s11 + $0x1a0] ss:$16 sps:$4 sm:$0xff]  }
 0x19c   : > { %1460 = vmatpush2.bf16.msra.mxu0 %v9056_v43  ;;  %1501 = vmatpush2.bf16.msra.mxu1 %v9057_v44  ;;  %v9145_v43 = vld [vmem:[%s10450_s11 + $0x18c] ss:$16 sps:$4 sm:$0xff]   ;;  %v9140_v44 = vld [vmem:[%s10450_s11 + $0x180] ss:$16 sps:$4 sm:$0xff]  }
 0x19d   : > { %1461 = vmatprep.subr.bf16.mxu0 %v9058_v45  ;;  %1502 = vmatprep.subr.bf16.mxu1 %v9060_v48  ;;  %v9143_v45 = vld [vmem:[%s10450_s11 + $0x188] ss:$16 sps:$4 sm:$0xff]   ;;  %v9151_v48 = vld [vmem:[%s10450_s11 + $0x16c] ss:$16 sps:$4 sm:$0xff]  }
 0x1a0   : > { %1462 = vmatpush2.bf16.msra.mxu0 %v9062_v49  ;;  %1503 = vmatpush2.bf16.msra.mxu1 %v9063_v50  ;;  %v9146_v49 = vld [vmem:[%s10450_s11 + $0x160] ss:$16 sps:$4 sm:$0xff]   ;;  %v9149_v50 = vld [vmem:[%s10450_s11 + $0x168] ss:$16 sps:$4 sm:$0xff]  }
 0x1a1   : > { %1463 = vmatprep.subr.bf16.mxu0 %v9064_v23  ;;  %1504 = vmatprep.subr.bf16.mxu1 %v9066_v24  ;;  %v9154_v23 = vld [vmem:[%s10450_s11 + $0x144] ss:$16 sps:$4 sm:$0xff]   ;;  %v9152_v24 = vld [vmem:[%s10450_s11 + $0x140] ss:$16 sps:$4 sm:$0xff]  }
 0x1a4   : > { %1464 = vmatpush2.bf16.msra.mxu0 %v9068_v53  ;;  %1505 = vmatpush2.bf16.msra.mxu1 %v9069_v55  ;;  %v9155_v53 = vld [vmem:[%s10450_s11 + $0x148] ss:$16 sps:$4 sm:$0xff]   ;;  %v9163_v55 = vld [vmem:[%s10450_s11 + $0x12c] ss:$16 sps:$4 sm:$0xff]  }
 0x1a5   : > { %1843 = vmatprep.subr.bf16.mxu0 %v9076_v57  ;;  %1884 = vmatprep.subr.bf16.mxu1 %v9079_v58  ;;  %v1515_v57 = vrot.slane %v11347_v51, 7  ;;  %v9161_v58 = vld [vmem:[%s10450_s11 + $0x128] ss:$16 sps:$4 sm:$0xff]   ;;  %v9172_v51 = vld [vmem:[%s10450_s11 + $0x4e4] ss:$16 sps:$4 sm:$0xff]  }
 0x1a7   : > { %1466 = vmatmul.mubr.bf16.vlgmr.msra.gmra.mxu0 %v1109_v59  ;;  %1507 = vmatmul.mubr.bf16.vlgmr.msra.gmra.mxu1 %v1109_v59  ;;  %v9166_v59 = vld [vmem:[%s10450_s11 + $0x104] ss:$16 sps:$4 sm:$0xff]  }
 0x1a8   : > { %1844 = vmatpush1.bf16.msra.mxu0 %v9074_v60  ;;  %1885 = vmatpush1.bf16.msra.mxu1 %v9077_v62  ;;  %v9169_v60 = vld [vmem:[%s10450_s11 + $0x10c] ss:$16 sps:$4 sm:$0xff]   ;;  %v9167_v62 = vld [vmem:[%s10450_s11 + $0x108] ss:$16 sps:$4 sm:$0xff]  }
 0x1a9   : > { %1845 = vmatprep.subr.bf16.mxu0 %v9082_v63  ;;  %1886 = vmatprep.subr.bf16.mxu1 %v9085_v0  ;;  %v1516_v63 = vsel %vm1105_vm10, %v1515_v57, %v11341_v47  ;;  %v9175_v0 = vld [vmem:[%s10450_s11 + $0x4ec] ss:$16 sps:$4 sm:$0xff]   ;;  %v9227_v57 = vld [vmem:[%s10450_s11 + $0x5c8] ss:$16 sps:$4 sm:$0xff]  }
 0x1aa   : > { %1875 = vmatprep.mubr.bf16.mxu0 %v1520_v1  ;;  %1916 = vmatprep.mubr.bf16.mxu1 %v1520_v1  ;;  %v1519_v1 = vpack.c.b16 %v1516_v63, %v1516_v63  ;;  %v9241_v63 = vld [vmem:[%s10450_s11 + $0x58c] ss:$16 sps:$4 sm:$0xff]  }
 0x1ac   : > { %1846 = vmatpush1.bf16.msra.mxu0 %v9080_v2  ;;  %1887 = vmatpush1.bf16.msra.mxu1 %v9083_v3  ;;  %v9170_v2 = vld [vmem:[%s10450_s11 + $0x4e0] ss:$16 sps:$4 sm:$0xff]   ;;  %v9173_v3 = vld [vmem:[%s10450_s11 + $0x4e8] ss:$16 sps:$4 sm:$0xff]  }
 0x1ad   : > { %1847 = vmatprep.subr.bf16.mxu0 %v9088_v4  ;;  %1888 = vmatprep.subr.bf16.mxu1 %v9091_v5  ;;  %v9178_v4 = vld [vmem:[%s10450_s11 + $0x4c4] ss:$16 sps:$4 sm:$0xff]   ;;  %v9181_v5 = vld [vmem:[%s10450_s11 + $0x4cc] ss:$16 sps:$4 sm:$0xff]  }
 0x1b0   : > { %1848 = vmatpush1.bf16.msra.mxu0 %v9086_v6  ;;  %1889 = vmatpush1.bf16.msra.mxu1 %v9089_v7  ;;  %v1925_v6 = vld [vmem:[#allocation2] sm:$0x22]  ;;  %v1926_v7 = vld [vmem:[#allocation2 + $0x8] sm:$0x22] }
 0x1b1   : > { %1849 = vmatprep.subr.bf16.mxu0 %v9094_v8  ;;  %1890 = vmatprep.subr.bf16.mxu1 %v9097_v9  ;;  %v8140_v47 = vcombine.high %v1925_v6, %v1925_v6  ;;  %v8142_v8 = vcombine.high %v1926_v7, %v1926_v7  ;;  %v9176_v9 = vld [vmem:[%s10450_s11 + $0x4c0] ss:$16 sps:$4 sm:$0xff]  }
 0x1b4   : > { %1850 = vmatpush1.bf16.msra.mxu0 %v9092_v10  ;;  %1891 = vmatpush1.bf16.msra.mxu1 %v9095_v11  ;;  %v8139_v10 = vcombine.low %v1925_v6, %v1925_v6  ;;  %v9179_v11 = vld [vmem:[%s10450_s11 + $0x4c8] ss:$16 sps:$4 sm:$0xff]   ;;  %v9253_v6 = vld [vmem:[%s10450_s11 + $0x54c] ss:$16 sps:$4 sm:$0xff]  }
 0x1b5   : > { %1851 = vmatprep.subr.bf16.mxu0 %v9100_v12  ;;  %1892 = vmatprep.subr.bf16.mxu1 %v9103_v13  ;;  %v8141_v12 = vcombine.low %v1926_v7, %v1926_v7  ;;  %v11431_v13 = vunpack.c.l.b16 %v8140_v47  ;;  %v9248_v7 = vld [vmem:[%s10450_s11 + $0x540] ss:$16 sps:$4 sm:$0xff]   ;;  %v9251_v47 = vld [vmem:[%s10450_s11 + $0x548] ss:$16 sps:$4 sm:$0xff]  }
 0x1b8   : > { %1852 = vmatpush1.bf16.msra.mxu0 %v9098_v14  ;;  %1893 = vmatpush1.bf16.msra.mxu1 %v9101_v15  ;;  %v11433_v14 = vunpack.c.l.b16 %v8142_v8  ;;  %v9184_v15 = vld [vmem:[%s10450_s11 + $0x4a4] ss:$16 sps:$4 sm:$0xff]  }
 0x1b9   : > { %1853 = vmatprep.subr.bf16.mxu0 %v9106_v16  ;;  %1894 = vmatprep.subr.bf16.mxu1 %v9109_v17  ;;  %v9187_v16 = vld [vmem:[%s10450_s11 + $0x4ac] ss:$16 sps:$4 sm:$0xff]   ;;  %v2008_v17 = vrot.slane %v11431_v13, 2  ;;  %v9256_v8 = vld [vmem:[%s10450_s11 + $0x524] ss:$16 sps:$4 sm:$0xff]  }
 0x1bc   : > { %1854 = vmatpush1.bf16.msra.mxu0 %v9104_v19  ;;  %1895 = vmatpush1.bf16.msra.mxu1 %v9107_v22  ;;  %v2009_v19 = vrot.slane %v11433_v14, 1  ;;  %v11439_v22 = vunpack.c.l.b16 %v8139_v10  ;;  %v9254_v10 = vld [vmem:[%s10450_s11 + $0x520] ss:$16 sps:$4 sm:$0xff]  }
 0x1bd   : > { %1855 = vmatprep.subr.bf16.mxu0 %v9112_v26  ;;  %1896 = vmatprep.subr.bf16.mxu1 %v9115_v27  ;;  %v9182_v26 = vld [vmem:[%s10450_s11 + $0x4a0] ss:$16 sps:$4 sm:$0xff]   ;;  %v9185_v27 = vld [vmem:[%s10450_s11 + $0x4a8] ss:$16 sps:$4 sm:$0xff]  }
 0x1c0   : > { %1856 = vmatpush1.bf16.msra.mxu0 %v9110_v28  ;;  %1897 = vmatpush1.bf16.msra.mxu1 %v9113_v20  ;;  %v11443_v28 = vunpack.c.l.b16 %v8141_v12  ;;  %v2010_v20 = vsel %vm1105_vm10, %v2009_v19, %v2008_v17  ;;  %v2005_v12 = vrot.slane %v11439_v22, 2  ;;  %v9265_v17 = vld [vmem:[%s10450_s11 + $0x50c] ss:$16 sps:$4 sm:$0xff]   ;;  %v2488_v19 = vrot.slane %v11431_v13, 3 }
 0x1c1   : > { %1857 = vmatprep.subr.bf16.mxu0 %v9118_v29  ;;  %1898 = vmatprep.subr.bf16.mxu1 %v9121_v18  ;;  %v9190_v29 = vld [vmem:[%s10450_s11 + $0x484] ss:$16 sps:$4 sm:$0xff]   ;;  %v9193_v18 = vld [vmem:[%s10450_s11 + $0x48c] ss:$16 sps:$4 sm:$0xff]  }
 0x1c4   : > { %1858 = vmatpush1.bf16.msra.mxu0 %v9116_v30  ;;  %1899 = vmatpush1.bf16.msra.mxu1 %v9119_v25  ;;  %v2012_v30 = vpack.c.b16 %v2010_v20, %v2010_v20  ;;  %v2485_v25 = vrot.slane %v11439_v22, 3  ;;  %v9263_v20 = vld [vmem:[%s10450_s11 + $0x508] ss:$16 sps:$4 sm:$0xff]  }
 0x1c5   : > { %1859 = vmatprep.subr.bf16.mxu0 %v9124_v21  ;;  %1900 = vmatprep.subr.bf16.mxu1 %v9127_v31  ;;  %v2486_v21 = vrot.slane %v11443_v28, 2  ;;  %v9188_v31 = vld [vmem:[%s10450_s11 + $0x480] ss:$16 sps:$4 sm:$0xff]  }
 0x1c8   : > { %1860 = vmatpush2.bf16.msra.mxu0 %v9122_v32  ;;  %1901 = vmatpush2.bf16.msra.mxu1 %v9125_v33  ;;  %v9191_v32 = vld [vmem:[%s10450_s11 + $0x488] ss:$16 sps:$4 sm:$0xff]   ;;  %v11453_v33 = vsel %vm1105_vm10, %v2486_v21, %v2485_v25  ;;  %v9278_v25 = vld [vmem:[%s10450_s11 + $0x6c4] ss:$16 sps:$4 sm:$0xff]   ;;  %v9281_v21 = vld [vmem:[%s10450_s11 + $0x6cc] ss:$16 sps:$4 sm:$0xff]  }
 0x1c9   : > { %1861 = vmatprep.subr.bf16.mxu0 %v9130_v34  ;;  %1902 = vmatprep.subr.bf16.mxu1 %v9133_v35  ;;  %v9196_v34 = vld [vmem:[%s10450_s11 + $0x464] ss:$16 sps:$4 sm:$0xff]   ;;  %v9199_v35 = vld [vmem:[%s10450_s11 + $0x46c] ss:$16 sps:$4 sm:$0xff]  }
 0x1cc   : > { %1862 = vmatpush2.bf16.msra.mxu0 %v9128_v36  ;;  %1903 = vmatpush2.bf16.msra.mxu1 %v9131_v37  ;;  %v9194_v36 = vld [vmem:[%s10450_s11 + $0x460] ss:$16 sps:$4 sm:$0xff]   ;;  %v9197_v37 = vld [vmem:[%s10450_s11 + $0x468] ss:$16 sps:$4 sm:$0xff]  }
 0x1cd   : > { %1863 = vmatprep.subr.bf16.mxu0 %v9136_v38  ;;  %1904 = vmatprep.subr.bf16.mxu1 %v9139_v39  ;;  %v9202_v38 = vld [vmem:[%s10450_s11 + $0x444] ss:$16 sps:$4 sm:$0xff]   ;;  %v9205_v39 = vld [vmem:[%s10450_s11 + $0x44c] ss:$16 sps:$4 sm:$0xff]  }
 0x1d0   : > { %1864 = vmatpush2.bf16.msra.mxu0 %v9134_v40  ;;  %1905 = vmatpush2.bf16.msra.mxu1 %v9137_v41  ;;  %v9200_v40 = vld [vmem:[%s10450_s11 + $0x440] ss:$16 sps:$4 sm:$0xff]   ;;  %v9203_v41 = vld [vmem:[%s10450_s11 + $0x448] ss:$16 sps:$4 sm:$0xff]  }
 0x1d1   : > { %1865 = vmatprep.subr.bf16.mxu0 %v9142_v42  ;;  %1906 = vmatprep.subr.bf16.mxu1 %v9145_v43  ;;  %v9208_v42 = vld [vmem:[%s10450_s11 + $0x424] ss:$16 sps:$4 sm:$0xff]   ;;  %v9211_v43 = vld [vmem:[%s10450_s11 + $0x42c] ss:$16 sps:$4 sm:$0xff]  }
 0x1d4   : > { %1866 = vmatpush2.bf16.msra.mxu0 %v9140_v44  ;;  %1907 = vmatpush2.bf16.msra.mxu1 %v9143_v45  ;;  %v9206_v44 = vld [vmem:[%s10450_s11 + $0x420] ss:$16 sps:$4 sm:$0xff]   ;;  %v9209_v45 = vld [vmem:[%s10450_s11 + $0x428] ss:$16 sps:$4 sm:$0xff]  }
 0x1d5   : > { %1867 = vmatprep.subr.bf16.mxu0 %v9148_v46  ;;  %1908 = vmatprep.subr.bf16.mxu1 %v9151_v48  ;;  %v9214_v46 = vld [vmem:[%s10450_s11 + $0x404] ss:$16 sps:$4 sm:$0xff]   ;;  %v9217_v48 = vld [vmem:[%s10450_s11 + $0x40c] ss:$16 sps:$4 sm:$0xff]  }
 0x1d8   : > { %1868 = vmatpush2.bf16.msra.mxu0 %v9146_v49  ;;  %1909 = vmatpush2.bf16.msra.mxu1 %v9149_v50  ;;  %v9212_v49 = vld [vmem:[%s10450_s11 + $0x400] ss:$16 sps:$4 sm:$0xff]   ;;  %v9215_v50 = vld [vmem:[%s10450_s11 + $0x408] ss:$16 sps:$4 sm:$0xff]  }
 0x1d9   : > { %1869 = vmatprep.subr.bf16.mxu0 %v9154_v23  ;;  %1910 = vmatprep.subr.bf16.mxu1 %v9157_v52  ;;  %v9220_v23 = vld [vmem:[%s10450_s11 + $0x5e4] ss:$16 sps:$4 sm:$0xff]   ;;  %v9223_v52 = vld [vmem:[%s10450_s11 + $0x5ec] ss:$16 sps:$4 sm:$0xff]  }
 0x1dc   : > { %1870 = vmatpush2.bf16.msra.mxu0 %v9152_v24  ;;  %1911 = vmatpush2.bf16.msra.mxu1 %v9155_v53  ;;  %v9218_v24 = vld [vmem:[%s10450_s11 + $0x5e0] ss:$16 sps:$4 sm:$0xff]   ;;  %v9221_v53 = vld [vmem:[%s10450_s11 + $0x5e8] ss:$16 sps:$4 sm:$0xff]  }
 0x1dd   : > { %1871 = vmatprep.subr.bf16.mxu0 %v9160_v54  ;;  %1912 = vmatprep.subr.bf16.mxu1 %v9163_v55  ;;  %v9226_v54 = vld [vmem:[%s10450_s11 + $0x5c4] ss:$16 sps:$4 sm:$0xff]   ;;  %v9229_v55 = vld [vmem:[%s10450_s11 + $0x5cc] ss:$16 sps:$4 sm:$0xff]  }
 0x1e0   : > { %1872 = vmatpush2.bf16.msra.mxu0 %v9158_v56  ;;  %1913 = vmatpush2.bf16.msra.mxu1 %v9161_v58  ;;  %v9224_v56 = vld [vmem:[%s10450_s11 + $0x5c0] ss:$16 sps:$4 sm:$0xff]   ;;  %v9232_v58 = vld [vmem:[%s10450_s11 + $0x5a4] ss:$16 sps:$4 sm:$0xff]  }
 0x1e1   : > { %1873 = vmatprep.subr.bf16.mxu0 %v9166_v59  ;;  %1914 = vmatprep.subr.bf16.mxu1 %v9169_v60  ;;  %v9235_v59 = vld [vmem:[%s10450_s11 + $0x5ac] ss:$16 sps:$4 sm:$0xff]   ;;  %v9230_v60 = vld [vmem:[%s10450_s11 + $0x5a0] ss:$16 sps:$4 sm:$0xff]  }
 0x1e4   : > { %1874 = vmatpush2.bf16.msra.mxu0 %v9164_v61  ;;  %1915 = vmatpush2.bf16.msra.mxu1 %v9167_v62  ;;  %v9233_v61 = vld [vmem:[%s10450_s11 + $0x5a8] ss:$16 sps:$4 sm:$0xff]   ;;  %v9238_v62 = vld [vmem:[%s10450_s11 + $0x584] ss:$16 sps:$4 sm:$0xff]  }
 0x1e5   : > { %2335 = vmatprep.subr.bf16.mxu0 %v9172_v51  ;;  %2376 = vmatprep.subr.bf16.mxu1 %v9175_v0  ;;  %v9236_v51 = vld [vmem:[%s10450_s11 + $0x580] ss:$16 sps:$4 sm:$0xff]   ;;  %v9239_v0 = vld [vmem:[%s10450_s11 + $0x588] ss:$16 sps:$4 sm:$0xff]  }
 0x1e7   : > { %1876 = vmatmul.mubr.bf16.vlgmr.msra.gmra.mxu0 %v1519_v1  ;;  %1917 = vmatmul.mubr.bf16.vlgmr.msra.gmra.mxu1 %v1519_v1  ;;  %v9244_v1 = vld [vmem:[%s10450_s11 + $0x564] ss:$16 sps:$4 sm:$0xff]  }
 0x1e8   : > { %2336 = vmatpush1.bf16.msra.mxu0 %v9170_v2  ;;  %2377 = vmatpush1.bf16.msra.mxu1 %v9173_v3  ;;  %v9247_v2 = vld [vmem:[%s10450_s11 + $0x56c] ss:$16 sps:$4 sm:$0xff]   ;;  %v9242_v3 = vld [vmem:[%s10450_s11 + $0x560] ss:$16 sps:$4 sm:$0xff]  }
 0x1e9   : > { %2337 = vmatprep.subr.bf16.mxu0 %v9178_v4  ;;  %2378 = vmatprep.subr.bf16.mxu1 %v9181_v5  ;;  %v9245_v4 = vld [vmem:[%s10450_s11 + $0x568] ss:$16 sps:$4 sm:$0xff]   ;;  %v9250_v5 = vld [vmem:[%s10450_s11 + $0x544] ss:$16 sps:$4 sm:$0xff]  }
 0x1ea   : > { %2367 = vmatprep.mubr.bf16.mxu0 %v2012_v30  ;;  %2408 = vmatprep.mubr.bf16.mxu1 %v2012_v30  ;;  %v9273_v30 = vld [vmem:[%s10450_s11 + $0x6e8] ss:$16 sps:$4 sm:$0xff]  }
 0x1ec   : > { %2338 = vmatpush1.bf16.msra.mxu0 %v9176_v9  ;;  %2379 = vmatpush1.bf16.msra.mxu1 %v9179_v11  ;;  %v9259_v9 = vld [vmem:[%s10450_s11 + $0x52c] ss:$16 sps:$4 sm:$0xff]   ;;  %v9257_v11 = vld [vmem:[%s10450_s11 + $0x528] ss:$16 sps:$4 sm:$0xff]  }
 0x1ed   : > { %2339 = vmatprep.subr.bf16.mxu0 %v9184_v15  ;;  %2380 = vmatprep.subr.bf16.mxu1 %v9187_v16  ;;  %v2006_v15 = vrot.slane %v11443_v28, 1  ;;  %v9262_v16 = vld [vmem:[%s10450_s11 + $0x504] ss:$16 sps:$4 sm:$0xff]  }
 0x1ee   : > { %v9272_v28 = vld [vmem:[%s10450_s11 + $0x6e4] ss:$16 sps:$4 sm:$0xff]  }
 0x1ef   : > { %v2007_v22 = vsel %vm1105_vm10, %v2006_v15, %v2005_v12  ;;  %v9345_v12 = vld [vmem:[%s10450_s11 + $0x768] ss:$16 sps:$4 sm:$0xff]   ;;  %v9350_v15 = vld [vmem:[%s10450_s11 + $0x744] ss:$16 sps:$4 sm:$0xff]  }
 0x1f0   : > { %2340 = vmatpush1.bf16.msra.mxu0 %v9182_v26  ;;  %2381 = vmatpush1.bf16.msra.mxu1 %v9185_v27  ;;  %v2489_v26 = vrot.slane %v11433_v14, 2  ;;  %v9260_v27 = vld [vmem:[%s10450_s11 + $0x500] ss:$16 sps:$4 sm:$0xff]  }
 0x1f1   : > { %2341 = vmatprep.subr.bf16.mxu0 %v9190_v29  ;;  %2382 = vmatprep.subr.bf16.mxu1 %v9193_v18  ;;  %v9275_v29 = vld [vmem:[%s10450_s11 + $0x6ec] ss:$16 sps:$4 sm:$0xff]   ;;  %v2011_v18 = vpack.c.b16 %v2007_v22, %v2007_v22  ;;  %v9270_v14 = vld [vmem:[%s10450_s11 + $0x6e0] ss:$16 sps:$4 sm:$0xff]  }
 0x1f2   : > { %v2490_v13 = vsel %vm1105_vm10, %v2489_v26, %v2488_v19  ;;  %v9353_v19 = vld [vmem:[%s10450_s11 + $0x74c] ss:$16 sps:$4 sm:$0xff]   ;;  %v9348_v26 = vld [vmem:[%s10450_s11 + $0x740] ss:$16 sps:$4 sm:$0xff]  }
 0x1f4   : > { %2342 = vmatpush1.bf16.msra.mxu0 %v9188_v31  ;;  %2383 = vmatpush1.bf16.msra.mxu1 %v9191_v32  ;;  %v2492_v31 = vpack.c.b16 %v2490_v13, %v2490_v13  ;;  %v9276_v32 = vld [vmem:[%s10450_s11 + $0x6c0] ss:$16 sps:$4 sm:$0xff]   ;;  %v9357_v13 = vld [vmem:[%s10450_s11 + $0x728] ss:$16 sps:$4 sm:$0xff]  }
 0x1f5   : > { %2343 = vmatprep.subr.bf16.mxu0 %v9196_v34  ;;  %2384 = vmatprep.subr.bf16.mxu1 %v9199_v35  ;;  %v9279_v34 = vld [vmem:[%s10450_s11 + $0x6c8] ss:$16 sps:$4 sm:$0xff]   ;;  %v9284_v35 = vld [vmem:[%s10450_s11 + $0x6a4] ss:$16 sps:$4 sm:$0xff]  }
 0x1f8   : > { %2344 = vmatpush1.bf16.msra.mxu0 %v9194_v36  ;;  %2385 = vmatpush1.bf16.msra.mxu1 %v9197_v37  ;;  %v9287_v36 = vld [vmem:[%s10450_s11 + $0x6ac] ss:$16 sps:$4 sm:$0xff]   ;;  %v9282_v37 = vld [vmem:[%s10450_s11 + $0x6a0] ss:$16 sps:$4 sm:$0xff]  }
 0x1f9   : > { %2345 = vmatprep.subr.bf16.mxu0 %v9202_v38  ;;  %2386 = vmatprep.subr.bf16.mxu1 %v9205_v39  ;;  %v9285_v38 = vld [vmem:[%s10450_s11 + $0x6a8] ss:$16 sps:$4 sm:$0xff]   ;;  %v9290_v39 = vld [vmem:[%s10450_s11 + $0x684] ss:$16 sps:$4 sm:$0xff]  }
 0x1fc   : > { %2346 = vmatpush1.bf16.msra.mxu0 %v9200_v40  ;;  %2387 = vmatpush1.bf16.msra.mxu1 %v9203_v41  ;;  %v9293_v40 = vld [vmem:[%s10450_s11 + $0x68c] ss:$16 sps:$4 sm:$0xff]   ;;  %v9288_v41 = vld [vmem:[%s10450_s11 + $0x680] ss:$16 sps:$4 sm:$0xff]  }
 0x1fd   : > { %2347 = vmatprep.subr.bf16.mxu0 %v9208_v42  ;;  %2388 = vmatprep.subr.bf16.mxu1 %v9211_v43  ;;  %v9291_v42 = vld [vmem:[%s10450_s11 + $0x688] ss:$16 sps:$4 sm:$0xff]   ;;  %v9296_v43 = vld [vmem:[%s10450_s11 + $0x664] ss:$16 sps:$4 sm:$0xff]  }
 0x200   : > { %2348 = vmatpush1.bf16.msra.mxu0 %v9206_v44  ;;  %2389 = vmatpush1.bf16.msra.mxu1 %v9209_v45  ;;  %v9299_v44 = vld [vmem:[%s10450_s11 + $0x66c] ss:$16 sps:$4 sm:$0xff]   ;;  %v9294_v45 = vld [vmem:[%s10450_s11 + $0x660] ss:$16 sps:$4 sm:$0xff]  }
 0x201   : > { %2349 = vmatprep.subr.bf16.mxu0 %v9214_v46  ;;  %2390 = vmatprep.subr.bf16.mxu1 %v9217_v48  ;;  %v9297_v46 = vld [vmem:[%s10450_s11 + $0x668] ss:$16 sps:$4 sm:$0xff]   ;;  %v9302_v48 = vld [vmem:[%s10450_s11 + $0x644] ss:$16 sps:$4 sm:$0xff]  }
 0x204   : > { %2350 = vmatpush1.bf16.msra.mxu0 %v9212_v49  ;;  %2391 = vmatpush1.bf16.msra.mxu1 %v9215_v50  ;;  %v9305_v49 = vld [vmem:[%s10450_s11 + $0x64c] ss:$16 sps:$4 sm:$0xff]   ;;  %v9300_v50 = vld [vmem:[%s10450_s11 + $0x640] ss:$16 sps:$4 sm:$0xff]  }
 0x205   : > { %2351 = vmatprep.subr.bf16.mxu0 %v9220_v23  ;;  %2392 = vmatprep.subr.bf16.mxu1 %v9223_v52  ;;  %v9303_v23 = vld [vmem:[%s10450_s11 + $0x648] ss:$16 sps:$4 sm:$0xff]   ;;  %v9308_v52 = vld [vmem:[%s10450_s11 + $0x624] ss:$16 sps:$4 sm:$0xff]  }
 0x208   : > { %2352 = vmatpush2.bf16.msra.mxu0 %v9218_v24  ;;  %2393 = vmatpush2.bf16.msra.mxu1 %v9221_v53  ;;  %v9311_v24 = vld [vmem:[%s10450_s11 + $0x62c] ss:$16 sps:$4 sm:$0xff]   ;;  %v9306_v53 = vld [vmem:[%s10450_s11 + $0x620] ss:$16 sps:$4 sm:$0xff]  }
 0x209   : > { %2353 = vmatprep.subr.bf16.mxu0 %v9226_v54  ;;  %2394 = vmatprep.subr.bf16.mxu1 %v9229_v55  ;;  %v9309_v54 = vld [vmem:[%s10450_s11 + $0x628] ss:$16 sps:$4 sm:$0xff]   ;;  %v9314_v55 = vld [vmem:[%s10450_s11 + $0x604] ss:$16 sps:$4 sm:$0xff]  }
 0x20c   : > { %2354 = vmatpush2.bf16.msra.mxu0 %v9224_v56  ;;  %2395 = vmatpush2.bf16.msra.mxu1 %v9227_v57  ;;  %v9317_v56 = vld [vmem:[%s10450_s11 + $0x60c] ss:$16 sps:$4 sm:$0xff]   ;;  %v9312_v57 = vld [vmem:[%s10450_s11 + $0x600] ss:$16 sps:$4 sm:$0xff]  }
 0x20d   : > { %2355 = vmatprep.subr.bf16.mxu0 %v9232_v58  ;;  %2396 = vmatprep.subr.bf16.mxu1 %v9235_v59  ;;  %v9315_v58 = vld [vmem:[%s10450_s11 + $0x608] ss:$16 sps:$4 sm:$0xff]   ;;  %v9320_v59 = vld [vmem:[%s10450_s11 + $0x7e4] ss:$16 sps:$4 sm:$0xff]  }
 0x210   : > { %2356 = vmatpush2.bf16.msra.mxu0 %v9230_v60  ;;  %2397 = vmatpush2.bf16.msra.mxu1 %v9233_v61  ;;  %v9323_v60 = vld [vmem:[%s10450_s11 + $0x7ec] ss:$16 sps:$4 sm:$0xff]   ;;  %v9318_v61 = vld [vmem:[%s10450_s11 + $0x7e0] ss:$16 sps:$4 sm:$0xff]  }
 0x211   : > { %2357 = vmatprep.subr.bf16.mxu0 %v9238_v62  ;;  %2398 = vmatprep.subr.bf16.mxu1 %v9241_v63  ;;  %v9321_v62 = vld [vmem:[%s10450_s11 + $0x7e8] ss:$16 sps:$4 sm:$0xff]   ;;  %v9326_v63 = vld [vmem:[%s10450_s11 + $0x7c4] ss:$16 sps:$4 sm:$0xff]  }
 0x214   : > { %2358 = vmatpush2.bf16.msra.mxu0 %v9236_v51  ;;  %2399 = vmatpush2.bf16.msra.mxu1 %v9239_v0  ;;  %v9329_v51 = vld [vmem:[%s10450_s11 + $0x7cc] ss:$16 sps:$4 sm:$0xff]   ;;  %v9324_v0 = vld [vmem:[%s10450_s11 + $0x7c0] ss:$16 sps:$4 sm:$0xff]  }
 0x215   : > { %2359 = vmatprep.subr.bf16.mxu0 %v9244_v1  ;;  %2400 = vmatprep.subr.bf16.mxu1 %v9247_v2  ;;  %v9327_v1 = vld [vmem:[%s10450_s11 + $0x7c8] ss:$16 sps:$4 sm:$0xff]   ;;  %v9332_v2 = vld [vmem:[%s10450_s11 + $0x7a4] ss:$16 sps:$4 sm:$0xff]  }
 0x218   : > { %2360 = vmatpush2.bf16.msra.mxu0 %v9242_v3  ;;  %2401 = vmatpush2.bf16.msra.mxu1 %v9245_v4  ;;  %v9335_v3 = vld [vmem:[%s10450_s11 + $0x7ac] ss:$16 sps:$4 sm:$0xff]   ;;  %v9330_v4 = vld [vmem:[%s10450_s11 + $0x7a0] ss:$16 sps:$4 sm:$0xff]  }
 0x219   : > { %2361 = vmatprep.subr.bf16.mxu0 %v9250_v5  ;;  %2402 = vmatprep.subr.bf16.mxu1 %v9253_v6  ;;  %v9333_v5 = vld [vmem:[%s10450_s11 + $0x7a8] ss:$16 sps:$4 sm:$0xff]   ;;  %v9338_v6 = vld [vmem:[%s10450_s11 + $0x784] ss:$16 sps:$4 sm:$0xff]  }
 0x21c   : > { %2362 = vmatpush2.bf16.msra.mxu0 %v9248_v7  ;;  %2403 = vmatpush2.bf16.msra.mxu1 %v9251_v47  ;;  %v9341_v7 = vld [vmem:[%s10450_s11 + $0x78c] ss:$16 sps:$4 sm:$0xff]   ;;  %v9336_v47 = vld [vmem:[%s10450_s11 + $0x780] ss:$16 sps:$4 sm:$0xff]  }
 0x21d   : > { %2363 = vmatprep.subr.bf16.mxu0 %v9256_v8  ;;  %2404 = vmatprep.subr.bf16.mxu1 %v9259_v9  ;;  %v9339_v8 = vld [vmem:[%s10450_s11 + $0x788] ss:$16 sps:$4 sm:$0xff]   ;;  %v9344_v9 = vld [vmem:[%s10450_s11 + $0x764] ss:$16 sps:$4 sm:$0xff]  }
 0x220   : > { %2364 = vmatpush2.bf16.msra.mxu0 %v9254_v10  ;;  %2405 = vmatpush2.bf16.msra.mxu1 %v9257_v11  ;;  %v9347_v10 = vld [vmem:[%s10450_s11 + $0x76c] ss:$16 sps:$4 sm:$0xff]   ;;  %v9342_v11 = vld [vmem:[%s10450_s11 + $0x760] ss:$16 sps:$4 sm:$0xff]  }
 0x221   : > { %2365 = vmatprep.subr.bf16.mxu0 %v9262_v16  ;;  %2406 = vmatprep.subr.bf16.mxu1 %v9265_v17  ;;  %v2901_v16 = vld [vmem:[#allocation2] sm:$0x44]  ;;  %v2902_v17 = vld [vmem:[#allocation2 + $0x8] sm:$0x44] }
 0x222   : > { %v8274_v22 = vcombine.high %v2902_v17, %v2902_v17 }
 0x224   : > { %2366 = vmatpush2.bf16.msra.mxu0 %v9260_v27  ;;  %2407 = vmatpush2.bf16.msra.mxu1 %v9263_v20  ;;  %v9351_v27 = vld [vmem:[%s10450_s11 + $0x748] ss:$16 sps:$4 sm:$0xff]   ;;  %v8272_v20 = vcombine.high %v2901_v16, %v2901_v16 }
 0x225   : > { %2815 = vmatprep.subr.bf16.mxu0 %v9272_v28  ;;  %2856 = vmatprep.subr.bf16.mxu1 %v9275_v29  ;;  %v9356_v28 = vld [vmem:[%s10450_s11 + $0x724] ss:$16 sps:$4 sm:$0xff]   ;;  %v9359_v29 = vld [vmem:[%s10450_s11 + $0x72c] ss:$16 sps:$4 sm:$0xff]  }
 0x227   : > { %2368 = vmatmul.mubr.bf16.vlgmr.msra.gmra.mxu0 %v2011_v18  ;;  %2409 = vmatmul.mubr.bf16.vlgmr.msra.gmra.mxu1 %v2011_v18  ;;  %v9354_v18 = vld [vmem:[%s10450_s11 + $0x720] ss:$16 sps:$4 sm:$0xff]  }
 0x228   : > { %2816 = vmatpush1.bf16.msra.mxu0 %v9270_v14  ;;  %2857 = vmatpush1.bf16.msra.mxu1 %v9273_v30  ;;  %v2978_v14 = vunpack.c.l.b16 %v8272_v20  ;;  %v2980_v30 = vunpack.c.l.b16 %v8274_v22  ;;  %v9413_v20 = vld [vmem:[%s10450_s11 + $0x80c] ss:$16 sps:$4 sm:$0xff]   ;;  %v9408_v22 = vld [vmem:[%s10450_s11 + $0x800] ss:$16 sps:$4 sm:$0xff]  }
 0x229   : > { %2817 = vmatprep.subr.bf16.mxu0 %v9278_v25  ;;  %2858 = vmatprep.subr.bf16.mxu1 %v9281_v21  ;;  %v9362_v25 = vld [vmem:[%s10450_s11 + $0x704] ss:$16 sps:$4 sm:$0xff]   ;;  %v8271_v21 = vcombine.low %v2901_v16, %v2901_v16 }
 0x22a   : > { %2847 = vmatprep.mubr.bf16.mxu0 %v2492_v31  ;;  %2888 = vmatprep.mubr.bf16.mxu1 %v2492_v31  ;;  %v9365_v31 = vld [vmem:[%s10450_s11 + $0x70c] ss:$16 sps:$4 sm:$0xff]   ;;  %v9404_v16 = vld [vmem:[%s10450_s11 + $0x824] ss:$16 sps:$4 sm:$0xff]  }
 0x22c   : > { %2818 = vmatpush1.bf16.msra.mxu0 %v9276_v32  ;;  %2859 = vmatpush1.bf16.msra.mxu1 %v9279_v34  ;;  %v8273_v32 = vcombine.low %v2902_v17, %v2902_v17  ;;  %v9360_v34 = vld [vmem:[%s10450_s11 + $0x700] ss:$16 sps:$4 sm:$0xff]   ;;  %v9407_v17 = vld [vmem:[%s10450_s11 + $0x82c] ss:$16 sps:$4 sm:$0xff]  }
 0x22d   : > { %2819 = vmatprep.subr.bf16.mxu0 %v9284_v35  ;;  %2860 = vmatprep.subr.bf16.mxu1 %v9287_v36  ;;  %v9363_v35 = vld [vmem:[%s10450_s11 + $0x708] ss:$16 sps:$4 sm:$0xff]   ;;  %v2984_v36 = vrot.slane %v2978_v14, 4 }
 0x230   : > { %2820 = vmatpush1.bf16.msra.mxu0 %v9282_v37  ;;  %2861 = vmatpush1.bf16.msra.mxu1 %v9285_v38  ;;  %v2985_v37 = vrot.slane %v2980_v30, 3  ;;  %v9368_v38 = vld [vmem:[%s10450_s11 + $0x8e4] ss:$16 sps:$4 sm:$0xff]  }
 0x231   : > { %2821 = vmatprep.subr.bf16.mxu0 %v9290_v39  ;;  %2862 = vmatprep.subr.bf16.mxu1 %v9293_v40  ;;  %v11574_v39 = vunpack.c.l.b16 %v8271_v21  ;;  %v9371_v40 = vld [vmem:[%s10450_s11 + $0x8ec] ss:$16 sps:$4 sm:$0xff]   ;;  %v9420_v21 = vld [vmem:[%s10450_s11 + $0x9c0] ss:$16 sps:$4 sm:$0xff]  }
 0x234   : > { %2822 = vmatpush1.bf16.msra.mxu0 %v9288_v41  ;;  %2863 = vmatpush1.bf16.msra.mxu1 %v9291_v42  ;;  %v11577_v41 = vunpack.c.l.b16 %v8273_v32  ;;  %v3464_v42 = vrot.slane %v2978_v14, 5  ;;  %v9417_v14 = vld [vmem:[%s10450_s11 + $0x9e8] ss:$16 sps:$4 sm:$0xff]   ;;  %v9428_v32 = vld [vmem:[%s10450_s11 + $0x9a4] ss:$16 sps:$4 sm:$0xff]  }
 0x235   : > { %2823 = vmatprep.subr.bf16.mxu0 %v9296_v43  ;;  %2864 = vmatprep.subr.bf16.mxu1 %v9299_v44  ;;  %v3465_v43 = vrot.slane %v2980_v30, 4  ;;  %v3461_v44 = vrot.slane %v11574_v39, 5  ;;  %v9422_v30 = vld [vmem:[%s10450_s11 + $0x9c4] ss:$16 sps:$4 sm:$0xff]  }
 0x238   : > { %2824 = vmatpush1.bf16.msra.mxu0 %v9294_v45  ;;  %2865 = vmatpush1.bf16.msra.mxu1 %v9297_v46  ;;  %v2491_v45 = vpack.c.b16 %v11453_v33, %v11453_v33  ;;  %v9366_v46 = vld [vmem:[%s10450_s11 + $0x8e0] ss:$16 sps:$4 sm:$0xff]  }
 0x239   : > { %2825 = vmatprep.subr.bf16.mxu0 %v9302_v48  ;;  %2866 = vmatprep.subr.bf16.mxu1 %v9305_v49  ;;  %v9369_v48 = vld [vmem:[%s10450_s11 + $0x8e8] ss:$16 sps:$4 sm:$0xff]   ;;  %v2986_v49 = vsel %vm1105_vm10, %v2985_v37, %v2984_v36  ;;  %v9434_v37 = vld [vmem:[%s10450_s11 + $0x984] ss:$16 sps:$4 sm:$0xff]  }
 0x23a   : > { %v9429_v36 = vld [vmem:[%s10450_s11 + $0x9a8] ss:$16 sps:$4 sm:$0xff]  }
 0x23c   : > { %2826 = vmatpush1.bf16.msra.mxu0 %v9300_v50  ;;  %2867 = vmatpush1.bf16.msra.mxu1 %v9303_v23  ;;  %v11586_v50 = vsel %vm1105_vm10, %v3465_v43, %v3464_v42  ;;  %v3462_v23 = vrot.slane %v11577_v41, 4  ;;  %v9435_v42 = vld [vmem:[%s10450_s11 + $0x988] ss:$16 sps:$4 sm:$0xff]   ;;  %v9440_v43 = vld [vmem:[%s10450_s11 + $0x964] ss:$16 sps:$4 sm:$0xff]  }
 0x23d   : > { %2827 = vmatprep.subr.bf16.mxu0 %v9308_v52  ;;  %2868 = vmatprep.subr.bf16.mxu1 %v9311_v24  ;;  %v9374_v52 = vld [vmem:[%s10450_s11 + $0x8c4] ss:$16 sps:$4 sm:$0xff]   ;;  %v9377_v24 = vld [vmem:[%s10450_s11 + $0x8cc] ss:$16 sps:$4 sm:$0xff]  }
 0x23e   : > { %v11592_v33 = vsel %vm1105_vm10, %v3462_v23, %v3461_v44  ;;  %v9443_v44 = vld [vmem:[%s10450_s11 + $0x96c] ss:$16 sps:$4 sm:$0xff]   ;;  %v9444_v23 = vld [vmem:[%s10450_s11 + $0x940] ss:$16 sps:$4 sm:$0xff]  }
 0x240   : > { %2828 = vmatpush1.bf16.msra.mxu0 %v9306_v53  ;;  %2869 = vmatpush1.bf16.msra.mxu1 %v9309_v54  ;;  %v2988_v53 = vpack.c.b16 %v2986_v49, %v2986_v49  ;;  %v9449_v49 = vld [vmem:[%s10450_s11 + $0x94c] ss:$16 sps:$4 sm:$0xff]  }
 0x241   : > { %2829 = vmatprep.subr.bf16.mxu0 %v9314_v55  ;;  %2870 = vmatprep.subr.bf16.mxu1 %v9317_v56  ;;  %v9372_v56 = vld [vmem:[%s10450_s11 + $0x8c0] ss:$16 sps:$4 sm:$0xff]  }
 0x244   : > { %2830 = vmatpush1.bf16.msra.mxu0 %v9312_v57  ;;  %2871 = vmatpush1.bf16.msra.mxu1 %v9315_v58  ;;  %v9375_v57 = vld [vmem:[%s10450_s11 + $0x8c8] ss:$16 sps:$4 sm:$0xff]   ;;  %v9380_v58 = vld [vmem:[%s10450_s11 + $0x8a4] ss:$16 sps:$4 sm:$0xff]  }
 0x245   : > { %2831 = vmatprep.subr.bf16.mxu0 %v9320_v59  ;;  %2872 = vmatprep.subr.bf16.mxu1 %v9323_v60 }
 0x248   : > { %2832 = vmatpush2.bf16.msra.mxu0 %v9318_v61  ;;  %2873 = vmatpush2.bf16.msra.mxu1 %v9321_v62  ;;  %v9383_v61 = vld [vmem:[%s10450_s11 + $0x8ac] ss:$16 sps:$4 sm:$0xff]  }
 0x249   : > { %2833 = vmatprep.subr.bf16.mxu0 %v9326_v63  ;;  %2874 = vmatprep.subr.bf16.mxu1 %v9329_v51  ;;  %v9378_v51 = vld [vmem:[%s10450_s11 + $0x8a0] ss:$16 sps:$4 sm:$0xff]  }
 0x24c   : > { %2834 = vmatpush2.bf16.msra.mxu0 %v9324_v0  ;;  %2875 = vmatpush2.bf16.msra.mxu1 %v9327_v1  ;;  %v9381_v0 = vld [vmem:[%s10450_s11 + $0x8a8] ss:$16 sps:$4 sm:$0xff]  }
 0x24d   : > { %2835 = vmatprep.subr.bf16.mxu0 %v9332_v2  ;;  %2876 = vmatprep.subr.bf16.mxu1 %v9335_v3  ;;  %v9386_v3 = vld [vmem:[%s10450_s11 + $0x884] ss:$16 sps:$4 sm:$0xff]  }
 0x250   : > { %2836 = vmatpush2.bf16.msra.mxu0 %v9330_v4  ;;  %2877 = vmatpush2.bf16.msra.mxu1 %v9333_v5  ;;  %v9389_v4 = vld [vmem:[%s10450_s11 + $0x88c] ss:$16 sps:$4 sm:$0xff]   ;;  %v9384_v5 = vld [vmem:[%s10450_s11 + $0x880] ss:$16 sps:$4 sm:$0xff]  }
 0x251   : > { %2837 = vmatprep.subr.bf16.mxu0 %v9338_v6  ;;  %2878 = vmatprep.subr.bf16.mxu1 %v9341_v7  ;;  %v9387_v6 = vld [vmem:[%s10450_s11 + $0x888] ss:$16 sps:$4 sm:$0xff]   ;;  %v9392_v7 = vld [vmem:[%s10450_s11 + $0x864] ss:$16 sps:$4 sm:$0xff]  }
 0x254   : > { %2838 = vmatpush2.bf16.msra.mxu0 %v9336_v47  ;;  %2879 = vmatpush2.bf16.msra.mxu1 %v9339_v8  ;;  %v9395_v47 = vld [vmem:[%s10450_s11 + $0x86c] ss:$16 sps:$4 sm:$0xff]   ;;  %v9390_v8 = vld [vmem:[%s10450_s11 + $0x860] ss:$16 sps:$4 sm:$0xff]  }
 0x255   : > { %2839 = vmatprep.subr.bf16.mxu0 %v9344_v9  ;;  %2880 = vmatprep.subr.bf16.mxu1 %v9347_v10  ;;  %v9393_v9 = vld [vmem:[%s10450_s11 + $0x868] ss:$16 sps:$4 sm:$0xff]   ;;  %v9398_v10 = vld [vmem:[%s10450_s11 + $0x844] ss:$16 sps:$4 sm:$0xff]  }
 0x258   : > { %2840 = vmatpush2.bf16.msra.mxu0 %v9342_v11  ;;  %2881 = vmatpush2.bf16.msra.mxu1 %v9345_v12  ;;  %v9401_v11 = vld [vmem:[%s10450_s11 + $0x84c] ss:$16 sps:$4 sm:$0xff]   ;;  %v9396_v12 = vld [vmem:[%s10450_s11 + $0x840] ss:$16 sps:$4 sm:$0xff]  }
 0x259   : > { %2841 = vmatprep.subr.bf16.mxu0 %v9350_v15  ;;  %2882 = vmatprep.subr.bf16.mxu1 %v9353_v19  ;;  %v9399_v15 = vld [vmem:[%s10450_s11 + $0x848] ss:$16 sps:$4 sm:$0xff]   ;;  %v9402_v19 = vld [vmem:[%s10450_s11 + $0x820] ss:$16 sps:$4 sm:$0xff]  }
 0x25c   : > { %2842 = vmatpush2.bf16.msra.mxu0 %v9348_v26  ;;  %2883 = vmatpush2.bf16.msra.mxu1 %v9351_v27  ;;  %v9405_v26 = vld [vmem:[%s10450_s11 + $0x828] ss:$16 sps:$4 sm:$0xff]   ;;  %v9410_v27 = vld [vmem:[%s10450_s11 + $0x804] ss:$16 sps:$4 sm:$0xff]  }
 0x25d   : > { %2843 = vmatprep.subr.bf16.mxu0 %v9356_v28  ;;  %2884 = vmatprep.subr.bf16.mxu1 %v9359_v29  ;;  %v9411_v28 = vld [vmem:[%s10450_s11 + $0x808] ss:$16 sps:$4 sm:$0xff]   ;;  %v9416_v29 = vld [vmem:[%s10450_s11 + $0x9e4] ss:$16 sps:$4 sm:$0xff]  }
 0x260   : > { %2844 = vmatpush2.bf16.msra.mxu0 %v9354_v18  ;;  %2885 = vmatpush2.bf16.msra.mxu1 %v9357_v13  ;;  %v9419_v18 = vld [vmem:[%s10450_s11 + $0x9ec] ss:$16 sps:$4 sm:$0xff]   ;;  %v9414_v13 = vld [vmem:[%s10450_s11 + $0x9e0] ss:$16 sps:$4 sm:$0xff]  }
 0x261   : > { %2845 = vmatprep.subr.bf16.mxu0 %v9362_v25  ;;  %2886 = vmatprep.subr.bf16.mxu1 %v9365_v31  ;;  %v9425_v25 = vld [vmem:[%s10450_s11 + $0x9cc] ss:$16 sps:$4 sm:$0xff]   ;;  %v9423_v31 = vld [vmem:[%s10450_s11 + $0x9c8] ss:$16 sps:$4 sm:$0xff]  }
 0x264   : > { %2846 = vmatpush2.bf16.msra.mxu0 %v9360_v34  ;;  %2887 = vmatpush2.bf16.msra.mxu1 %v9363_v35  ;;  %v9431_v34 = vld [vmem:[%s10450_s11 + $0x9ac] ss:$16 sps:$4 sm:$0xff]   ;;  %v9426_v35 = vld [vmem:[%s10450_s11 + $0x9a0] ss:$16 sps:$4 sm:$0xff]  }
 0x265   : > { %3311 = vmatprep.subr.bf16.mxu0 %v9368_v38  ;;  %3352 = vmatprep.subr.bf16.mxu1 %v9371_v40  ;;  %v9437_v38 = vld [vmem:[%s10450_s11 + $0x98c] ss:$16 sps:$4 sm:$0xff]   ;;  %v9432_v40 = vld [vmem:[%s10450_s11 + $0x980] ss:$16 sps:$4 sm:$0xff]  }
 0x267   : > { %v11594_v54 = vpop.f32.mrf.mxu0  ;;  %v11596_v55 = vpop.f32.mrf.mxu1  ;;  %2848 = vmatmul.mubr.bf16.vlgmr.msra.gmra.mxu0 %v2491_v45  ;;  %2889 = vmatmul.mubr.bf16.vlgmr.msra.gmra.mxu1 %v2491_v45  ;;  %v9438_v45 = vld [vmem:[%s10450_s11 + $0x960] ss:$16 sps:$4 sm:$0xff]  }
 0x268   : > { %3312 = vmatpush1.bf16.msra.mxu0 %v9366_v46  ;;  %3353 = vmatpush1.bf16.msra.mxu1 %v9369_v48  ;;  %v9441_v46 = vld [vmem:[%s10450_s11 + $0x968] ss:$16 sps:$4 sm:$0xff]   ;;  %v9446_v48 = vld [vmem:[%s10450_s11 + $0x944] ss:$16 sps:$4 sm:$0xff]  }
 0x269   : > { %v11601_v59 = vpop.f32.mrf.mxu0  ;;  %v11603_v60 = vpop.f32.mrf.mxu1  ;;  %3313 = vmatprep.subr.bf16.mxu0 %v9374_v52  ;;  %3354 = vmatprep.subr.bf16.mxu1 %v9377_v24  ;;  %v9447_v52 = vld [vmem:[%s10450_s11 + $0x948] ss:$16 sps:$4 sm:$0xff]   ;;  %v9452_v24 = vld [vmem:[%s10450_s11 + $0x924] ss:$16 sps:$4 sm:$0xff]  }
 0x26a   : > { %3343 = vmatprep.mubr.bf16.mxu0 %v2988_v53  ;;  %3384 = vmatprep.mubr.bf16.mxu1 %v2988_v53  ;;  %v9455_v53 = vld [vmem:[%s10450_s11 + $0x92c] ss:$16 sps:$4 sm:$0xff]  }
 0x26b   : > { %v1471_v62 = vpop.f32.mrf.mxu0  ;;  %v1512_v63 = vpop.f32.mrf.mxu1 }
 0x26c   : > { %3314 = vmatpush1.bf16.msra.mxu0 %v9372_v56  ;;  %3355 = vmatpush1.bf16.msra.mxu1 %v9375_v57  ;;  %v9450_v56 = vld [vmem:[%s10450_s11 + $0x920] ss:$16 sps:$4 sm:$0xff]   ;;  %v9453_v57 = vld [vmem:[%s10450_s11 + $0x928] ss:$16 sps:$4 sm:$0xff]   ;;  %v9458_v62 = vld [vmem:[%s10450_s11 + $0x904] ss:$16 sps:$4 sm:$0xff]  }
 0x26d   : > { %v1472_v1 = vpop.f32.mrf.mxu0  ;;  %v1513_v2 = vpop.f32.mrf.mxu1  ;;  %3315 = vmatprep.subr.bf16.mxu0 %v9380_v58  ;;  %3356 = vmatprep.subr.bf16.mxu1 %v9383_v61  ;;  %v2981_v58 = vrot.slane %v11574_v39, 4  ;;  %v2982_v61 = vrot.slane %v11577_v41, 3  ;;  %v9461_v63 = vld [vmem:[%s10450_s11 + $0x90c] ss:$16 sps:$4 sm:$0xff]   ;;  %v9468_v39 = vld [vmem:[%s10450_s11 + $0xae4] ss:$16 sps:$4 sm:$0xff]  }
 0x26e   : > { %v9471_v2 = vld [vmem:[%s10450_s11 + $0xaec] ss:$16 sps:$4 sm:$0xff]   ;;  %v9469_v41 = vld [vmem:[%s10450_s11 + $0xae8] ss:$16 sps:$4 sm:$0xff]  }
 0x26f   : > { %v2983_v1 = vsel %vm1105_vm10, %v2982_v61, %v2981_v58  ;;  %v9526_v58 = vld [vmem:[%s10450_s11 + $0xba0] ss:$16 sps:$4 sm:$0xff]   ;;  %v9529_v61 = vld [vmem:[%s10450_s11 + $0xba8] ss:$16 sps:$4 sm:$0xff]  }
 0x270   : > { %3316 = vmatpush1.bf16.msra.mxu0 %v9378_v51  ;;  %3357 = vmatpush1.bf16.msra.mxu1 %v9381_v0  ;;  %v9456_v51 = vld [vmem:[%s10450_s11 + $0x900] ss:$16 sps:$4 sm:$0xff]   ;;  %v9459_v0 = vld [vmem:[%s10450_s11 + $0x908] ss:$16 sps:$4 sm:$0xff]  }
 0x271   : > { %3317 = vmatprep.subr.bf16.mxu0 %v9386_v3  ;;  %3358 = vmatprep.subr.bf16.mxu1 %v9389_v4  ;;  %v9466_v3 = vld [vmem:[%s10450_s11 + $0xae0] ss:$16 sps:$4 sm:$0xff]   ;;  %v2987_v4 = vpack.c.b16 %v2983_v1, %v2983_v1  ;;  %v9540_v1 = vld [vmem:[%s10450_s11 + $0xb64] ss:$16 sps:$4 sm:$0xff]  }
 0x274   : > { %3318 = vmatpush1.bf16.msra.mxu0 %v9384_v5  ;;  %3359 = vmatpush1.bf16.msra.mxu1 %v9387_v6  ;;  %v9474_v5 = vld [vmem:[%s10450_s11 + $0xac4] ss:$16 sps:$4 sm:$0xff]   ;;  %v9477_v6 = vld [vmem:[%s10450_s11 + $0xacc] ss:$16 sps:$4 sm:$0xff]  }
 0x275   : > { %3319 = vmatprep.subr.bf16.mxu0 %v9392_v7  ;;  %3360 = vmatprep.subr.bf16.mxu1 %v9395_v47  ;;  %v9472_v7 = vld [vmem:[%s10450_s11 + $0xac0] ss:$16 sps:$4 sm:$0xff]   ;;  %v9475_v47 = vld [vmem:[%s10450_s11 + $0xac8] ss:$16 sps:$4 sm:$0xff]  }
 0x278   : > { %3320 = vmatpush1.bf16.msra.mxu0 %v9390_v8  ;;  %3361 = vmatpush1.bf16.msra.mxu1 %v9393_v9  ;;  %v3468_v8 = vpack.c.b16 %v11586_v50, %v11586_v50  ;;  %v9483_v50 = vld [vmem:[%s10450_s11 + $0xaac] ss:$16 sps:$4 sm:$0xff]  }
 0x279   : > { %3321 = vmatprep.subr.bf16.mxu0 %v9398_v10  ;;  %3362 = vmatprep.subr.bf16.mxu1 %v9401_v11 }
 0x27c   : > { %3322 = vmatpush1.bf16.msra.mxu0 %v9396_v12  ;;  %3363 = vmatpush1.bf16.msra.mxu1 %v9399_v15 }
 0x27d   : > { %3323 = vmatprep.subr.bf16.mxu0 %v9404_v16  ;;  %3364 = vmatprep.subr.bf16.mxu1 %v9407_v17  ;;  %v9480_v17 = vld [vmem:[%s10450_s11 + $0xaa4] ss:$16 sps:$4 sm:$0xff]  }
 0x280   : > { %3324 = vmatpush1.bf16.msra.mxu0 %v9402_v19  ;;  %3365 = vmatpush1.bf16.msra.mxu1 %v9405_v26 }
 0x281   : > { %3325 = vmatprep.subr.bf16.mxu0 %v9410_v27  ;;  %3366 = vmatprep.subr.bf16.mxu1 %v9413_v20 }
 0x284   : > { %3326 = vmatpush1.bf16.msra.mxu0 %v9408_v22  ;;  %3367 = vmatpush1.bf16.msra.mxu1 %v9411_v28 }
 0x285   : > { %3327 = vmatprep.subr.bf16.mxu0 %v9416_v29  ;;  %3368 = vmatprep.subr.bf16.mxu1 %v9419_v18  ;;  %v9484_v29 = vld [vmem:[%s10450_s11 + $0xa80] ss:$16 sps:$4 sm:$0xff]   ;;  %v9487_v18 = vld [vmem:[%s10450_s11 + $0xa88] ss:$16 sps:$4 sm:$0xff]  }
 0x288   : > { %3328 = vmatpush2.bf16.msra.mxu0 %v9414_v13  ;;  %3369 = vmatpush2.bf16.msra.mxu1 %v9417_v14  ;;  %v9492_v13 = vld [vmem:[%s10450_s11 + $0xa64] ss:$16 sps:$4 sm:$0xff]   ;;  %v9495_v14 = vld [vmem:[%s10450_s11 + $0xa6c] ss:$16 sps:$4 sm:$0xff]  }
 0x289   : > { %3329 = vmatprep.subr.bf16.mxu0 %v9422_v30  ;;  %3370 = vmatprep.subr.bf16.mxu1 %v9425_v25  ;;  %v9490_v30 = vld [vmem:[%s10450_s11 + $0xa60] ss:$16 sps:$4 sm:$0xff]   ;;  %v9493_v25 = vld [vmem:[%s10450_s11 + $0xa68] ss:$16 sps:$4 sm:$0xff]  }
 0x28c   : > { %3330 = vmatpush2.bf16.msra.mxu0 %v9420_v21  ;;  %3371 = vmatpush2.bf16.msra.mxu1 %v9423_v31  ;;  %v9498_v21 = vld [vmem:[%s10450_s11 + $0xa44] ss:$16 sps:$4 sm:$0xff]   ;;  %v9501_v31 = vld [vmem:[%s10450_s11 + $0xa4c] ss:$16 sps:$4 sm:$0xff]  }
 0x28d   : > { %3331 = vmatprep.subr.bf16.mxu0 %v9428_v32  ;;  %3372 = vmatprep.subr.bf16.mxu1 %v9431_v34  ;;  %v9496_v32 = vld [vmem:[%s10450_s11 + $0xa40] ss:$16 sps:$4 sm:$0xff]   ;;  %v9499_v34 = vld [vmem:[%s10450_s11 + $0xa48] ss:$16 sps:$4 sm:$0xff]  }
 0x290   : > { %3332 = vmatpush2.bf16.msra.mxu0 %v9426_v35  ;;  %3373 = vmatpush2.bf16.msra.mxu1 %v9429_v36  ;;  %v9504_v35 = vld [vmem:[%s10450_s11 + $0xa24] ss:$16 sps:$4 sm:$0xff]   ;;  %v9507_v36 = vld [vmem:[%s10450_s11 + $0xa2c] ss:$16 sps:$4 sm:$0xff]  }
 0x291   : > { %3333 = vmatprep.subr.bf16.mxu0 %v9434_v37  ;;  %3374 = vmatprep.subr.bf16.mxu1 %v9437_v38  ;;  %v9502_v37 = vld [vmem:[%s10450_s11 + $0xa20] ss:$16 sps:$4 sm:$0xff]   ;;  %v9505_v38 = vld [vmem:[%s10450_s11 + $0xa28] ss:$16 sps:$4 sm:$0xff]  }
 0x294   : > { %3334 = vmatpush2.bf16.msra.mxu0 %v9432_v40  ;;  %3375 = vmatpush2.bf16.msra.mxu1 %v9435_v42  ;;  %v9510_v40 = vld [vmem:[%s10450_s11 + $0xa04] ss:$16 sps:$4 sm:$0xff]   ;;  %v9513_v42 = vld [vmem:[%s10450_s11 + $0xa0c] ss:$16 sps:$4 sm:$0xff]  }
 0x295   : > { %3335 = vmatprep.subr.bf16.mxu0 %v9440_v43  ;;  %3376 = vmatprep.subr.bf16.mxu1 %v9443_v44  ;;  %v9508_v43 = vld [vmem:[%s10450_s11 + $0xa00] ss:$16 sps:$4 sm:$0xff]   ;;  %v9511_v44 = vld [vmem:[%s10450_s11 + $0xa08] ss:$16 sps:$4 sm:$0xff]  }
 0x298   : > { %3336 = vmatpush2.bf16.msra.mxu0 %v9438_v45  ;;  %3377 = vmatpush2.bf16.msra.mxu1 %v9441_v46  ;;  %v9516_v45 = vld [vmem:[%s10450_s11 + $0xbe4] ss:$16 sps:$4 sm:$0xff]   ;;  %v9519_v46 = vld [vmem:[%s10450_s11 + $0xbec] ss:$16 sps:$4 sm:$0xff]  }
 0x299   : > { %3337 = vmatprep.subr.bf16.mxu0 %v9446_v48  ;;  %3378 = vmatprep.subr.bf16.mxu1 %v9449_v49  ;;  %v9514_v48 = vld [vmem:[%s10450_s11 + $0xbe0] ss:$16 sps:$4 sm:$0xff]   ;;  %v9517_v49 = vld [vmem:[%s10450_s11 + $0xbe8] ss:$16 sps:$4 sm:$0xff]  }
 0x29c   : > { %3338 = vmatpush2.bf16.msra.mxu0 %v9444_v23  ;;  %3379 = vmatpush2.bf16.msra.mxu1 %v9447_v52  ;;  %v9522_v23 = vld [vmem:[%s10450_s11 + $0xbc4] ss:$16 sps:$4 sm:$0xff]   ;;  %v9525_v52 = vld [vmem:[%s10450_s11 + $0xbcc] ss:$16 sps:$4 sm:$0xff]  }
 0x29d   : > { %3339 = vmatprep.subr.bf16.mxu0 %v9452_v24  ;;  %3380 = vmatprep.subr.bf16.mxu1 %v9455_v53  ;;  %v9520_v24 = vld [vmem:[%s10450_s11 + $0xbc0] ss:$16 sps:$4 sm:$0xff]   ;;  %v9523_v53 = vld [vmem:[%s10450_s11 + $0xbc8] ss:$16 sps:$4 sm:$0xff]  }
 0x2a0   : > { %3340 = vmatpush2.bf16.msra.mxu0 %v9450_v56  ;;  %3381 = vmatpush2.bf16.msra.mxu1 %v9453_v57  ;;  %v9528_v56 = vld [vmem:[%s10450_s11 + $0xba4] ss:$16 sps:$4 sm:$0xff]   ;;  %v9531_v57 = vld [vmem:[%s10450_s11 + $0xbac] ss:$16 sps:$4 sm:$0xff]  }
 0x2a1   : > { %3341 = vmatprep.subr.bf16.mxu0 %v9458_v62  ;;  %3382 = vmatprep.subr.bf16.mxu1 %v9461_v63  ;;  %v9534_v62 = vld [vmem:[%s10450_s11 + $0xb84] ss:$16 sps:$4 sm:$0xff]   ;;  %v9537_v63 = vld [vmem:[%s10450_s11 + $0xb8c] ss:$16 sps:$4 sm:$0xff]  }
 0x2a4   : > { %3342 = vmatpush2.bf16.msra.mxu0 %v9456_v51  ;;  %3383 = vmatpush2.bf16.msra.mxu1 %v9459_v0  ;;  %v9532_v51 = vld [vmem:[%s10450_s11 + $0xb80] ss:$16 sps:$4 sm:$0xff]   ;;  %v9535_v0 = vld [vmem:[%s10450_s11 + $0xb88] ss:$16 sps:$4 sm:$0xff]  }
 0x2a5   : > { %3791 = vmatprep.subr.bf16.mxu0 %v9468_v39  ;;  %3832 = vmatprep.subr.bf16.mxu1 %v9471_v2  ;;  %v9543_v39 = vld [vmem:[%s10450_s11 + $0xb6c] ss:$16 sps:$4 sm:$0xff]   ;;  %v9538_v2 = vld [vmem:[%s10450_s11 + $0xb60] ss:$16 sps:$4 sm:$0xff]  }
 0x2a7   : > { %v1877_v9 = vpop.f32.mrf.mxu0  ;;  %v1918_v10 = vpop.f32.mrf.mxu1  ;;  %3344 = vmatmul.mubr.bf16.vlgmr.msra.gmra.mxu0 %v2987_v4  ;;  %3385 = vmatmul.mubr.bf16.vlgmr.msra.gmra.mxu1 %v2987_v4  ;;  %v3878_v4 = vld [vmem:[#allocation2 + $0x8] sm:$0x88] }
 0x2a8   : > { %v11674_v11 = vadd.f32 %v1877_v9, %v11594_v54  ;;  %v11677_v12 = vadd.f32 %v1918_v10, %v11596_v55  ;;  %3792 = vmatpush1.bf16.msra.mxu0 %v9466_v3  ;;  %3833 = vmatpush1.bf16.msra.mxu1 %v9469_v41  ;;  %v9478_v54 = vld [vmem:[%s10450_s11 + $0xaa0] ss:$16 sps:$4 sm:$0xff]   ;;  %v9481_v55 = vld [vmem:[%s10450_s11 + $0xaa8] ss:$16 sps:$4 sm:$0xff]   ;;  %v9552_v10 = vld [vmem:[%s10450_s11 + $0xb24] ss:$16 sps:$4 sm:$0xff]  }
 0x2a9   : > { %v1879_v15 = vpop.f32.mrf.mxu0  ;;  %v1920_v16 = vpop.f32.mrf.mxu1  ;;  %3793 = vmatprep.subr.bf16.mxu0 %v9474_v5  ;;  %3834 = vmatprep.subr.bf16.mxu1 %v9477_v6  ;;  %v9541_v3 = vld [vmem:[%s10450_s11 + $0xb68] ss:$16 sps:$4 sm:$0xff]   ;;  %v3877_v41 = vld [vmem:[#allocation2] sm:$0x88]  ;;  %v9549_v6 = vld [vmem:[%s10450_s11 + $0xb4c] ss:$16 sps:$4 sm:$0xff]  }
 0x2aa   : > { %v11682_v19 = vadd.f32 %v1879_v15, %v11601_v59  ;;  %v11685_v26 = vadd.f32 %v1920_v16, %v11603_v60  ;;  %3823 = vmatprep.mubr.bf16.mxu0 %v3468_v8  ;;  %3864 = vmatprep.mubr.bf16.mxu1 %v3468_v8  ;;  %v9486_v59 = vld [vmem:[%s10450_s11 + $0xa84] ss:$16 sps:$4 sm:$0xff]   ;;  %v9489_v60 = vld [vmem:[%s10450_s11 + $0xa8c] ss:$16 sps:$4 sm:$0xff]   ;;  %v9544_v8 = vld [vmem:[%s10450_s11 + $0xb40] ss:$16 sps:$4 sm:$0xff]  }
 0x2ab   : > { %v1881_v27 = vpop.f32.mrf.mxu0  ;;  %v1922_v20 = vpop.f32.mrf.mxu1  ;;  %v9546_v5 = vld [vmem:[%s10450_s11 + $0xb44] ss:$16 sps:$4 sm:$0xff]   ;;  %v9547_v9 = vld [vmem:[%s10450_s11 + $0xb48] ss:$16 sps:$4 sm:$0xff]   ;;  %v9555_v15 = vld [vmem:[%s10450_s11 + $0xb2c] ss:$16 sps:$4 sm:$0xff]  }
 0x2ac   : > { %3794 = vmatpush1.bf16.msra.mxu0 %v9472_v7  ;;  %3835 = vmatpush1.bf16.msra.mxu1 %v9475_v47  ;;  %v8404_v7 = vcombine.high %v3877_v41, %v3877_v41  ;;  %v8406_v47 = vcombine.high %v3878_v4, %v3878_v4  ;;  %v8405_v27 = vcombine.low %v3878_v4, %v3878_v4  ;;  %v9558_v20 = vld [vmem:[%s10450_s11 + $0xb04] ss:$16 sps:$4 sm:$0xff]  }
 0x2ad   : > { %v1882_v22 = vpop.f32.mrf.mxu0  ;;  %v1923_v28 = vpop.f32.mrf.mxu1  ;;  %3795 = vmatprep.subr.bf16.mxu0 %v9480_v17  ;;  %3836 = vmatprep.subr.bf16.mxu1 %v9483_v50  ;;  %v9550_v50 = vld [vmem:[%s10450_s11 + $0xb20] ss:$16 sps:$4 sm:$0xff]   ;;  %v9594_v4 = vld [vmem:[%s10450_s11 + $0xc44] ss:$16 sps:$4 sm:$0xff]  }
 0x2ae   : > { %v3954_v16 = vunpack.c.l.b16 %v8404_v7  ;;  %v3956_v17 = vunpack.c.l.b16 %v8406_v47  ;;  %v9561_v22 = vld [vmem:[%s10450_s11 + $0xb0c] ss:$16 sps:$4 sm:$0xff]   ;;  %v9595_v7 = vld [vmem:[%s10450_s11 + $0xc48] ss:$16 sps:$4 sm:$0xff]   ;;  %v9600_v47 = vld [vmem:[%s10450_s11 + $0xc24] ss:$16 sps:$4 sm:$0xff]  }
 0x2b0   : > { %3796 = vmatpush1.bf16.msra.mxu0 %v9478_v54  ;;  %3837 = vmatpush1.bf16.msra.mxu1 %v9481_v55  ;;  %v9553_v54 = vld [vmem:[%s10450_s11 + $0xb28] ss:$16 sps:$4 sm:$0xff]   ;;  %v8403_v55 = vcombine.low %v3877_v41, %v3877_v41  ;;  %v3960_v28 = vrot.slane %v3954_v16, 6 }
 0x2b1   : > { %3797 = vmatprep.subr.bf16.mxu0 %v9486_v59  ;;  %3838 = vmatprep.subr.bf16.mxu1 %v9489_v60  ;;  %v3961_v59 = vrot.slane %v3956_v17, 5  ;;  %v9556_v60 = vld [vmem:[%s10450_s11 + $0xb00] ss:$16 sps:$4 sm:$0xff]   ;;  %v9589_v41 = vld [vmem:[%s10450_s11 + $0xc68] ss:$16 sps:$4 sm:$0xff]  }
 0x2b4   : > { %3798 = vmatpush1.bf16.msra.mxu0 %v9484_v29  ;;  %3839 = vmatpush1.bf16.msra.mxu1 %v9487_v18  ;;  %v9559_v29 = vld [vmem:[%s10450_s11 + $0xb08] ss:$16 sps:$4 sm:$0xff]   ;;  %v11741_v18 = vunpack.c.l.b16 %v8403_v55  ;;  %v9615_v55 = vld [vmem:[%s10450_s11 + $0xdec] ss:$16 sps:$4 sm:$0xff]  }
 0x2b5   : > { %3799 = vmatprep.subr.bf16.mxu0 %v9492_v13  ;;  %3840 = vmatprep.subr.bf16.mxu1 %v9495_v14  ;;  %v11743_v13 = vunpack.c.l.b16 %v8405_v27  ;;  %v9564_v14 = vld [vmem:[%s10450_s11 + $0xce4] ss:$16 sps:$4 sm:$0xff]   ;;  %v9610_v27 = vld [vmem:[%s10450_s11 + $0xde0] ss:$16 sps:$4 sm:$0xff]  }
 0x2b8   : > { %3800 = vmatpush1.bf16.msra.mxu0 %v9490_v30  ;;  %3841 = vmatpush1.bf16.msra.mxu1 %v9493_v25  ;;  %v9567_v30 = vld [vmem:[%s10450_s11 + $0xcec] ss:$16 sps:$4 sm:$0xff]   ;;  %v4440_v25 = vrot.slane %v3954_v16, 7 }
 0x2b9   : > { %3801 = vmatprep.subr.bf16.mxu0 %v9498_v21  ;;  %3842 = vmatprep.subr.bf16.mxu1 %v9501_v31  ;;  %v4441_v21 = vrot.slane %v3956_v17, 6  ;;  %v9562_v31 = vld [vmem:[%s10450_s11 + $0xce0] ss:$16 sps:$4 sm:$0xff]   ;;  %v9609_v16 = vld [vmem:[%s10450_s11 + $0xc0c] ss:$16 sps:$4 sm:$0xff]  }
 0x2ba   : > { %v9604_v17 = vld [vmem:[%s10450_s11 + $0xc00] ss:$16 sps:$4 sm:$0xff]  }
 0x2bc   : > { %3802 = vmatpush1.bf16.msra.mxu0 %v9496_v32  ;;  %3843 = vmatpush1.bf16.msra.mxu1 %v9499_v34  ;;  %v9565_v32 = vld [vmem:[%s10450_s11 + $0xce8] ss:$16 sps:$4 sm:$0xff]   ;;  %v4437_v34 = vrot.slane %v11741_v18, 7 }
 0x2bd   : > { %3803 = vmatprep.subr.bf16.mxu0 %v9504_v35  ;;  %3844 = vmatprep.subr.bf16.mxu1 %v9507_v36  ;;  %v4438_v35 = vrot.slane %v11743_v13, 6  ;;  %v3467_v36 = vpack.c.b16 %v11592_v33, %v11592_v33 }
 0x2c0   : > { %3804 = vmatpush1.bf16.msra.mxu0 %v9502_v37  ;;  %3845 = vmatpush1.bf16.msra.mxu1 %v9505_v38  ;;  %v9570_v37 = vld [vmem:[%s10450_s11 + $0xcc4] ss:$16 sps:$4 sm:$0xff]   ;;  %v9573_v38 = vld [vmem:[%s10450_s11 + $0xccc] ss:$16 sps:$4 sm:$0xff]  }
 0x2c1   : > { %3805 = vmatprep.subr.bf16.mxu0 %v9510_v40  ;;  %3846 = vmatprep.subr.bf16.mxu1 %v9513_v42  ;;  %v3962_v40 = vsel %vm1105_vm10, %v3961_v59, %v3960_v28  ;;  %v11757_v42 = vsel %vm1105_vm10, %v4441_v21, %v4440_v25  ;;  %v9621_v28 = vld [vmem:[%s10450_s11 + $0xdcc] ss:$16 sps:$4 sm:$0xff]   ;;  %v9616_v59 = vld [vmem:[%s10450_s11 + $0xdc0] ss:$16 sps:$4 sm:$0xff]   ;;  %v9625_v25 = vld [vmem:[%s10450_s11 + $0xda8] ss:$16 sps:$4 sm:$0xff]  }
 0x2c2   : > { %v9630_v21 = vld [vmem:[%s10450_s11 + $0xd84] ss:$16 sps:$4 sm:$0xff]  }
 0x2c4   : > { %3806 = vmatpush1.bf16.msra.mxu0 %v9508_v43  ;;  %3847 = vmatpush1.bf16.msra.mxu1 %v9511_v44  ;;  %v11760_v43 = vsel %vm1105_vm10, %v4438_v35, %v4437_v34  ;;  %v9568_v44 = vld [vmem:[%s10450_s11 + $0xcc0] ss:$16 sps:$4 sm:$0xff]   ;;  %v9631_v34 = vld [vmem:[%s10450_s11 + $0xd88] ss:$16 sps:$4 sm:$0xff]   ;;  %v9636_v35 = vld [vmem:[%s10450_s11 + $0xd64] ss:$16 sps:$4 sm:$0xff]  }
 0x2c5   : > { %3807 = vmatprep.subr.bf16.mxu0 %v9516_v45  ;;  %3848 = vmatprep.subr.bf16.mxu1 %v9519_v46  ;;  %v9571_v45 = vld [vmem:[%s10450_s11 + $0xcc8] ss:$16 sps:$4 sm:$0xff]   ;;  %v3964_v46 = vpack.c.b16 %v3962_v40, %v3962_v40  ;;  %v9642_v40 = vld [vmem:[%s10450_s11 + $0xd44] ss:$16 sps:$4 sm:$0xff]  }
 0x2c8   : > { %3808 = vmatpush2.bf16.msra.mxu0 %v9514_v48  ;;  %3849 = vmatpush2.bf16.msra.mxu1 %v9517_v49  ;;  %v9576_v49 = vld [vmem:[%s10450_s11 + $0xca4] ss:$16 sps:$4 sm:$0xff]  }
 0x2c9   : > { %3809 = vmatprep.subr.bf16.mxu0 %v9522_v23  ;;  %3850 = vmatprep.subr.bf16.mxu1 %v9525_v52  ;;  %v9579_v23 = vld [vmem:[%s10450_s11 + $0xcac] ss:$16 sps:$4 sm:$0xff]  }
 0x2cc   : > { %3810 = vmatpush2.bf16.msra.mxu0 %v9520_v24  ;;  %3851 = vmatpush2.bf16.msra.mxu1 %v9523_v53 }
 0x2cd   : > { %3811 = vmatprep.subr.bf16.mxu0 %v9528_v56  ;;  %3852 = vmatprep.subr.bf16.mxu1 %v9531_v57 }
 0x2d0   : > { %3812 = vmatpush2.bf16.msra.mxu0 %v9526_v58  ;;  %3853 = vmatpush2.bf16.msra.mxu1 %v9529_v61  ;;  %v9577_v61 = vld [vmem:[%s10450_s11 + $0xca8] ss:$16 sps:$4 sm:$0xff]  }
 0x2d1   : > { %3813 = vmatprep.subr.bf16.mxu0 %v9534_v62  ;;  %3854 = vmatprep.subr.bf16.mxu1 %v9537_v63  ;;  %v9582_v63 = vld [vmem:[%s10450_s11 + $0xc84] ss:$16 sps:$4 sm:$0xff]  }
 0x2d4   : > { %3814 = vmatpush2.bf16.msra.mxu0 %v9532_v51  ;;  %3855 = vmatpush2.bf16.msra.mxu1 %v9535_v0  ;;  %v9585_v51 = vld [vmem:[%s10450_s11 + $0xc8c] ss:$16 sps:$4 sm:$0xff]   ;;  %v9580_v0 = vld [vmem:[%s10450_s11 + $0xc80] ss:$16 sps:$4 sm:$0xff]  }
 0x2d5   : > { %3815 = vmatprep.subr.bf16.mxu0 %v9540_v1  ;;  %3856 = vmatprep.subr.bf16.mxu1 %v9543_v39  ;;  %v9583_v1 = vld [vmem:[%s10450_s11 + $0xc88] ss:$16 sps:$4 sm:$0xff]   ;;  %v9588_v39 = vld [vmem:[%s10450_s11 + $0xc64] ss:$16 sps:$4 sm:$0xff]  }
 0x2d8   : > { %3816 = vmatpush2.bf16.msra.mxu0 %v9538_v2  ;;  %3857 = vmatpush2.bf16.msra.mxu1 %v9541_v3  ;;  %v9591_v2 = vld [vmem:[%s10450_s11 + $0xc6c] ss:$16 sps:$4 sm:$0xff]   ;;  %v9586_v3 = vld [vmem:[%s10450_s11 + $0xc60] ss:$16 sps:$4 sm:$0xff]  }
 0x2d9   : > { %3817 = vmatprep.subr.bf16.mxu0 %v9546_v5  ;;  %3858 = vmatprep.subr.bf16.mxu1 %v9549_v6  ;;  %v9597_v5 = vld [vmem:[%s10450_s11 + $0xc4c] ss:$16 sps:$4 sm:$0xff]   ;;  %v9592_v6 = vld [vmem:[%s10450_s11 + $0xc40] ss:$16 sps:$4 sm:$0xff]  }
 0x2dc   : > { %3818 = vmatpush2.bf16.msra.mxu0 %v9544_v8  ;;  %3859 = vmatpush2.bf16.msra.mxu1 %v9547_v9  ;;  %v9603_v8 = vld [vmem:[%s10450_s11 + $0xc2c] ss:$16 sps:$4 sm:$0xff]   ;;  %v9598_v9 = vld [vmem:[%s10450_s11 + $0xc20] ss:$16 sps:$4 sm:$0xff]  }
 0x2dd   : > { %3819 = vmatprep.subr.bf16.mxu0 %v9552_v10  ;;  %3860 = vmatprep.subr.bf16.mxu1 %v9555_v15  ;;  %v9601_v10 = vld [vmem:[%s10450_s11 + $0xc28] ss:$16 sps:$4 sm:$0xff]   ;;  %v9606_v15 = vld [vmem:[%s10450_s11 + $0xc04] ss:$16 sps:$4 sm:$0xff]  }
 0x2e0   : > { %3820 = vmatpush2.bf16.msra.mxu0 %v9550_v50  ;;  %3861 = vmatpush2.bf16.msra.mxu1 %v9553_v54  ;;  %v9607_v50 = vld [vmem:[%s10450_s11 + $0xc08] ss:$16 sps:$4 sm:$0xff]   ;;  %v9612_v54 = vld [vmem:[%s10450_s11 + $0xde4] ss:$16 sps:$4 sm:$0xff]  }
 0x2e1   : > { %3821 = vmatprep.subr.bf16.mxu0 %v9558_v20  ;;  %3862 = vmatprep.subr.bf16.mxu1 %v9561_v22  ;;  %v9613_v20 = vld [vmem:[%s10450_s11 + $0xde8] ss:$16 sps:$4 sm:$0xff]   ;;  %v9618_v22 = vld [vmem:[%s10450_s11 + $0xdc4] ss:$16 sps:$4 sm:$0xff]  }
 0x2e4   : > { %3822 = vmatpush2.bf16.msra.mxu0 %v9556_v60  ;;  %3863 = vmatpush2.bf16.msra.mxu1 %v9559_v29  ;;  %v9619_v60 = vld [vmem:[%s10450_s11 + $0xdc8] ss:$16 sps:$4 sm:$0xff]   ;;  %v9624_v29 = vld [vmem:[%s10450_s11 + $0xda4] ss:$16 sps:$4 sm:$0xff]  }
 0x2e5   : > { %4287 = vmatprep.subr.bf16.mxu0 %v9564_v14  ;;  %4328 = vmatprep.subr.bf16.mxu1 %v9567_v30  ;;  %v9627_v14 = vld [vmem:[%s10450_s11 + $0xdac] ss:$16 sps:$4 sm:$0xff]   ;;  %v9622_v30 = vld [vmem:[%s10450_s11 + $0xda0] ss:$16 sps:$4 sm:$0xff]  }
 0x2e7   : > { %v2369_v33 = vpop.f32.mrf.mxu0  ;;  %v2410_v48 = vpop.f32.mrf.mxu1  ;;  %3824 = vmatmul.mubr.bf16.vlgmr.msra.gmra.mxu0 %v3467_v36  ;;  %3865 = vmatmul.mubr.bf16.vlgmr.msra.gmra.mxu1 %v3467_v36  ;;  %v9639_v36 = vld [vmem:[%s10450_s11 + $0xd6c] ss:$16 sps:$4 sm:$0xff]  }
 0x2e8   : > { %v11767_v52 = vadd.f32 %v2369_v33, %v11674_v11  ;;  %v11770_v24 = vadd.f32 %v2410_v48, %v11677_v12  ;;  %4288 = vmatpush1.bf16.msra.mxu0 %v9562_v31  ;;  %4329 = vmatpush1.bf16.msra.mxu1 %v9565_v32  ;;  %v9574_v11 = vld [vmem:[%s10450_s11 + $0xca0] ss:$16 sps:$4 sm:$0xff]   ;;  %v9633_v31 = vld [vmem:[%s10450_s11 + $0xd8c] ss:$16 sps:$4 sm:$0xff]   ;;  %v9648_v33 = vld [vmem:[%s10450_s11 + $0xd24] ss:$16 sps:$4 sm:$0xff]  }
 0x2e9   : > { %v2371_v53 = vpop.f32.mrf.mxu0  ;;  %v2412_v56 = vpop.f32.mrf.mxu1  ;;  %4289 = vmatprep.subr.bf16.mxu0 %v9570_v37  ;;  %4330 = vmatprep.subr.bf16.mxu1 %v9573_v38  ;;  %v9628_v32 = vld [vmem:[%s10450_s11 + $0xd80] ss:$16 sps:$4 sm:$0xff]   ;;  %v9637_v38 = vld [vmem:[%s10450_s11 + $0xd68] ss:$16 sps:$4 sm:$0xff]   ;;  %v9651_v48 = vld [vmem:[%s10450_s11 + $0xd2c] ss:$16 sps:$4 sm:$0xff]  }
 0x2ea   : > { %v11773_v57 = vadd.f32 %v2371_v53, %v11682_v19  ;;  %v11776_v58 = vadd.f32 %v2412_v56, %v11685_v26  ;;  %4319 = vmatprep.mubr.bf16.mxu0 %v3964_v46  ;;  %4360 = vmatprep.mubr.bf16.mxu1 %v3964_v46  ;;  %v9634_v37 = vld [vmem:[%s10450_s11 + $0xd60] ss:$16 sps:$4 sm:$0xff]   ;;  %v9643_v46 = vld [vmem:[%s10450_s11 + $0xd48] ss:$16 sps:$4 sm:$0xff]   ;;  %v9654_v53 = vld [vmem:[%s10450_s11 + $0xd04] ss:$16 sps:$4 sm:$0xff]  }
 0x2eb   : > { %v2373_v12 = vpop.f32.mrf.mxu0  ;;  %v2414_v62 = vpop.f32.mrf.mxu1  ;;  %v9657_v56 = vld [vmem:[%s10450_s11 + $0xd0c] ss:$16 sps:$4 sm:$0xff]  }
 0x2ec   : > { %4290 = vmatpush1.bf16.msra.mxu0 %v9568_v44  ;;  %4331 = vmatpush1.bf16.msra.mxu1 %v9571_v45  ;;  %v9645_v44 = vld [vmem:[%s10450_s11 + $0xd4c] ss:$16 sps:$4 sm:$0xff]   ;;  %v9640_v45 = vld [vmem:[%s10450_s11 + $0xd40] ss:$16 sps:$4 sm:$0xff]   ;;  %v9655_v62 = vld [vmem:[%s10450_s11 + $0xd08] ss:$16 sps:$4 sm:$0xff]  }
 0x2ed   : > { %v2374_v19 = vpop.f32.mrf.mxu0  ;;  %v2415_v26 = vpop.f32.mrf.mxu1  ;;  %4291 = vmatprep.subr.bf16.mxu0 %v9576_v49  ;;  %4332 = vmatprep.subr.bf16.mxu1 %v9579_v23  ;;  %v9646_v49 = vld [vmem:[%s10450_s11 + $0xd20] ss:$16 sps:$4 sm:$0xff]   ;;  %v9649_v23 = vld [vmem:[%s10450_s11 + $0xd28] ss:$16 sps:$4 sm:$0xff]  }
 0x2ee   : > { %v9652_v12 = vld [vmem:[%s10450_s11 + $0xd00] ss:$16 sps:$4 sm:$0xff]  }
 0x2ef   : > { %v9662_v26 = vld [vmem:[%s10450_s11 + $0xee0] ss:$16 sps:$4 sm:$0xff]  }
 0x2f0   : > { %4292 = vmatpush1.bf16.msra.mxu0 %v9574_v11  ;;  %4333 = vmatpush1.bf16.msra.mxu1 %v9577_v61  ;;  %v3957_v11 = vrot.slane %v11741_v18, 6  ;;  %v3958_v61 = vrot.slane %v11743_v13, 5  ;;  %v9665_v18 = vld [vmem:[%s10450_s11 + $0xee8] ss:$16 sps:$4 sm:$0xff]  }
 0x2f1   : > { %4293 = vmatprep.subr.bf16.mxu0 %v9582_v63  ;;  %4334 = vmatprep.subr.bf16.mxu1 %v9585_v51  ;;  %v9664_v63 = vld [vmem:[%s10450_s11 + $0xee4] ss:$16 sps:$4 sm:$0xff]   ;;  %v9667_v51 = vld [vmem:[%s10450_s11 + $0xeec] ss:$16 sps:$4 sm:$0xff]  }
 0x2f2   : > { %v3959_v19 = vsel %vm1105_vm10, %v3958_v61, %v3957_v11  ;;  %v9730_v11 = vld [vmem:[%s10450_s11 + $0xf84] ss:$16 sps:$4 sm:$0xff]   ;;  %v9733_v61 = vld [vmem:[%s10450_s11 + $0xf8c] ss:$16 sps:$4 sm:$0xff]  }
 0x2f3   : > { %v3963_v13 = vpack.c.b16 %v3959_v19, %v3959_v19  ;;  %v9734_v19 = vld [vmem:[%s10450_s11 + $0xf60] ss:$16 sps:$4 sm:$0xff]  }
 0x2f4   : > { %4294 = vmatpush1.bf16.msra.mxu0 %v9580_v0  ;;  %4335 = vmatpush1.bf16.msra.mxu1 %v9583_v1  ;;  %v9670_v0 = vld [vmem:[%s10450_s11 + $0xec4] ss:$16 sps:$4 sm:$0xff]   ;;  %v9673_v1 = vld [vmem:[%s10450_s11 + $0xecc] ss:$16 sps:$4 sm:$0xff]  }
 0x2f5   : > { %4295 = vmatprep.subr.bf16.mxu0 %v9588_v39  ;;  %4336 = vmatprep.subr.bf16.mxu1 %v9591_v2  ;;  %v9668_v39 = vld [vmem:[%s10450_s11 + $0xec0] ss:$16 sps:$4 sm:$0xff]   ;;  %v9671_v2 = vld [vmem:[%s10450_s11 + $0xec8] ss:$16 sps:$4 sm:$0xff]  }
 0x2f8   : > { %4296 = vmatpush1.bf16.msra.mxu0 %v9586_v3  ;;  %4337 = vmatpush1.bf16.msra.mxu1 %v9589_v41  ;;  %v4444_v3 = vpack.c.b16 %v11757_v42, %v11757_v42 }
 0x2f9   : > { %4297 = vmatprep.subr.bf16.mxu0 %v9594_v4  ;;  %4338 = vmatprep.subr.bf16.mxu1 %v9597_v5  ;;  %v9676_v5 = vld [vmem:[%s10450_s11 + $0xea4] ss:$16 sps:$4 sm:$0xff]  }
 0x2fc   : > { %4298 = vmatpush1.bf16.msra.mxu0 %v9592_v6  ;;  %4339 = vmatpush1.bf16.msra.mxu1 %v9595_v7  ;;  %v9679_v6 = vld [vmem:[%s10450_s11 + $0xeac] ss:$16 sps:$4 sm:$0xff]  }
 0x2fd   : > { %4299 = vmatprep.subr.bf16.mxu0 %v9600_v47  ;;  %4340 = vmatprep.subr.bf16.mxu1 %v9603_v8 }
 0x300   : > { %4300 = vmatpush1.bf16.msra.mxu0 %v9598_v9  ;;  %4341 = vmatpush1.bf16.msra.mxu1 %v9601_v10 }
 0x301   : > { %4301 = vmatprep.subr.bf16.mxu0 %v9606_v15  ;;  %4342 = vmatprep.subr.bf16.mxu1 %v9609_v16  ;;  %v9677_v15 = vld [vmem:[%s10450_s11 + $0xea8] ss:$16 sps:$4 sm:$0xff]  }
 0x304   : > { %4302 = vmatpush1.bf16.msra.mxu0 %v9604_v17  ;;  %4343 = vmatpush1.bf16.msra.mxu1 %v9607_v50  ;;  %v9682_v17 = vld [vmem:[%s10450_s11 + $0xe84] ss:$16 sps:$4 sm:$0xff]   ;;  %v9685_v50 = vld [vmem:[%s10450_s11 + $0xe8c] ss:$16 sps:$4 sm:$0xff]  }
 0x305   : > { %4303 = vmatprep.subr.bf16.mxu0 %v9612_v54  ;;  %4344 = vmatprep.subr.bf16.mxu1 %v9615_v55  ;;  %v9680_v54 = vld [vmem:[%s10450_s11 + $0xe80] ss:$16 sps:$4 sm:$0xff]   ;;  %v9683_v55 = vld [vmem:[%s10450_s11 + $0xe88] ss:$16 sps:$4 sm:$0xff]  }
 0x308   : > { %4304 = vmatpush2.bf16.msra.mxu0 %v9610_v27  ;;  %4345 = vmatpush2.bf16.msra.mxu1 %v9613_v20  ;;  %v9688_v27 = vld [vmem:[%s10450_s11 + $0xe64] ss:$16 sps:$4 sm:$0xff]   ;;  %v9691_v20 = vld [vmem:[%s10450_s11 + $0xe6c] ss:$16 sps:$4 sm:$0xff]  }
 0x309   : > { %4305 = vmatprep.subr.bf16.mxu0 %v9618_v22  ;;  %4346 = vmatprep.subr.bf16.mxu1 %v9621_v28  ;;  %v9686_v22 = vld [vmem:[%s10450_s11 + $0xe60] ss:$16 sps:$4 sm:$0xff]   ;;  %v9689_v28 = vld [vmem:[%s10450_s11 + $0xe68] ss:$16 sps:$4 sm:$0xff]  }
 0x30c   : > { %4306 = vmatpush2.bf16.msra.mxu0 %v9616_v59  ;;  %4347 = vmatpush2.bf16.msra.mxu1 %v9619_v60  ;;  %v9694_v59 = vld [vmem:[%s10450_s11 + $0xe44] ss:$16 sps:$4 sm:$0xff]   ;;  %v9697_v60 = vld [vmem:[%s10450_s11 + $0xe4c] ss:$16 sps:$4 sm:$0xff]  }
 0x30d   : > { %4307 = vmatprep.subr.bf16.mxu0 %v9624_v29  ;;  %4348 = vmatprep.subr.bf16.mxu1 %v9627_v14  ;;  %v9692_v29 = vld [vmem:[%s10450_s11 + $0xe40] ss:$16 sps:$4 sm:$0xff]   ;;  %v9695_v14 = vld [vmem:[%s10450_s11 + $0xe48] ss:$16 sps:$4 sm:$0xff]  }
 0x310   : > { %4308 = vmatpush2.bf16.msra.mxu0 %v9622_v30  ;;  %4349 = vmatpush2.bf16.msra.mxu1 %v9625_v25  ;;  %v9700_v30 = vld [vmem:[%s10450_s11 + $0xe24] ss:$16 sps:$4 sm:$0xff]   ;;  %v9703_v25 = vld [vmem:[%s10450_s11 + $0xe2c] ss:$16 sps:$4 sm:$0xff]  }
 0x311   : > { %4309 = vmatprep.subr.bf16.mxu0 %v9630_v21  ;;  %4350 = vmatprep.subr.bf16.mxu1 %v9633_v31  ;;  %v9698_v21 = vld [vmem:[%s10450_s11 + $0xe20] ss:$16 sps:$4 sm:$0xff]   ;;  %v9701_v31 = vld [vmem:[%s10450_s11 + $0xe28] ss:$16 sps:$4 sm:$0xff]  }
 0x314   : > { %4310 = vmatpush2.bf16.msra.mxu0 %v9628_v32  ;;  %4351 = vmatpush2.bf16.msra.mxu1 %v9631_v34  ;;  %v9706_v32 = vld [vmem:[%s10450_s11 + $0xe04] ss:$16 sps:$4 sm:$0xff]   ;;  %v9709_v34 = vld [vmem:[%s10450_s11 + $0xe0c] ss:$16 sps:$4 sm:$0xff]  }
 0x315   : > { %4311 = vmatprep.subr.bf16.mxu0 %v9636_v35  ;;  %4352 = vmatprep.subr.bf16.mxu1 %v9639_v36  ;;  %v9704_v35 = vld [vmem:[%s10450_s11 + $0xe00] ss:$16 sps:$4 sm:$0xff]   ;;  %v9707_v36 = vld [vmem:[%s10450_s11 + $0xe08] ss:$16 sps:$4 sm:$0xff]  }
 0x318   : > { %4312 = vmatpush2.bf16.msra.mxu0 %v9634_v37  ;;  %4353 = vmatpush2.bf16.msra.mxu1 %v9637_v38  ;;  %v9712_v37 = vld [vmem:[%s10450_s11 + $0xfe4] ss:$16 sps:$4 sm:$0xff]   ;;  %v9715_v38 = vld [vmem:[%s10450_s11 + $0xfec] ss:$16 sps:$4 sm:$0xff]  }
 0x319   : > { %4313 = vmatprep.subr.bf16.mxu0 %v9642_v40  ;;  %4354 = vmatprep.subr.bf16.mxu1 %v9645_v44  ;;  %v9710_v40 = vld [vmem:[%s10450_s11 + $0xfe0] ss:$16 sps:$4 sm:$0xff]   ;;  %v9713_v44 = vld [vmem:[%s10450_s11 + $0xfe8] ss:$16 sps:$4 sm:$0xff]  }
 0x31c   : > { %4314 = vmatpush2.bf16.msra.mxu0 %v9640_v45  ;;  %4355 = vmatpush2.bf16.msra.mxu1 %v9643_v46  ;;  %v9718_v45 = vld [vmem:[%s10450_s11 + $0xfc4] ss:$16 sps:$4 sm:$0xff]   ;;  %v9721_v46 = vld [vmem:[%s10450_s11 + $0xfcc] ss:$16 sps:$4 sm:$0xff]  }
 0x31d   : > { %4315 = vmatprep.subr.bf16.mxu0 %v9648_v33  ;;  %4356 = vmatprep.subr.bf16.mxu1 %v9651_v48  ;;  %v9716_v33 = vld [vmem:[%s10450_s11 + $0xfc0] ss:$16 sps:$4 sm:$0xff]   ;;  %v9719_v48 = vld [vmem:[%s10450_s11 + $0xfc8] ss:$16 sps:$4 sm:$0xff]  }
 0x320   : > { %4316 = vmatpush2.bf16.msra.mxu0 %v9646_v49  ;;  %4357 = vmatpush2.bf16.msra.mxu1 %v9649_v23  ;;  %v9724_v49 = vld [vmem:[%s10450_s11 + $0xfa4] ss:$16 sps:$4 sm:$0xff]   ;;  %v9727_v23 = vld [vmem:[%s10450_s11 + $0xfac] ss:$16 sps:$4 sm:$0xff]  }
 0x321   : > { %4317 = vmatprep.subr.bf16.mxu0 %v9654_v53  ;;  %4358 = vmatprep.subr.bf16.mxu1 %v9657_v56  ;;  %v9722_v53 = vld [vmem:[%s10450_s11 + $0xfa0] ss:$16 sps:$4 sm:$0xff]   ;;  %v9725_v56 = vld [vmem:[%s10450_s11 + $0xfa8] ss:$16 sps:$4 sm:$0xff]  }
 0x324   : > { %4318 = vmatpush2.bf16.msra.mxu0 %v9652_v12  ;;  %4359 = vmatpush2.bf16.msra.mxu1 %v9655_v62  ;;  %v9728_v12 = vld [vmem:[%s10450_s11 + $0xf80] ss:$16 sps:$4 sm:$0xff]   ;;  %v9731_v62 = vld [vmem:[%s10450_s11 + $0xf88] ss:$16 sps:$4 sm:$0xff]  }
 0x325   : > { %4767 = vmatprep.subr.bf16.mxu0 %v9664_v63  ;;  %4808 = vmatprep.subr.bf16.mxu1 %v9667_v51  ;;  %v9736_v63 = vld [vmem:[%s10450_s11 + $0xf64] ss:$16 sps:$4 sm:$0xff]   ;;  %v9739_v51 = vld [vmem:[%s10450_s11 + $0xf6c] ss:$16 sps:$4 sm:$0xff]  }
 0x327   : > { %v2849_v41 = vpop.f32.mrf.mxu0  ;;  %v2890_v4 = vpop.f32.mrf.mxu1  ;;  %4320 = vmatmul.mubr.bf16.vlgmr.msra.gmra.mxu0 %v3963_v13  ;;  %4361 = vmatmul.mubr.bf16.vlgmr.msra.gmra.mxu1 %v3963_v13  ;;  %v9745_v13 = vld [vmem:[%s10450_s11 + $0xf4c] ss:$16 sps:$4 sm:$0xff]  }
 0x328   : > { %v11848_v7 = vadd.f32 %v2849_v41, %v11767_v52  ;;  %v11851_v47 = vadd.f32 %v2890_v4, %v11770_v24  ;;  %4768 = vmatpush1.bf16.msra.mxu0 %v9662_v26  ;;  %4809 = vmatpush1.bf16.msra.mxu1 %v9665_v18  ;;  %v9674_v52 = vld [vmem:[%s10450_s11 + $0xea0] ss:$16 sps:$4 sm:$0xff]   ;;  %v9737_v26 = vld [vmem:[%s10450_s11 + $0xf68] ss:$16 sps:$4 sm:$0xff]   ;;  %v9742_v18 = vld [vmem:[%s10450_s11 + $0xf44] ss:$16 sps:$4 sm:$0xff]  }
 0x329   : > { %v2851_v8 = vpop.f32.mrf.mxu0  ;;  %v2892_v42 = vpop.f32.mrf.mxu1  ;;  %4769 = vmatprep.subr.bf16.mxu0 %v9670_v0  ;;  %4810 = vmatprep.subr.bf16.mxu1 %v9673_v1  ;;  %v9740_v0 = vld [vmem:[%s10450_s11 + $0xf40] ss:$16 sps:$4 sm:$0xff]   ;;  %v9743_v1 = vld [vmem:[%s10450_s11 + $0xf48] ss:$16 sps:$4 sm:$0xff]   ;;  %v9754_v4 = vld [vmem:[%s10450_s11 + $0xf04] ss:$16 sps:$4 sm:$0xff]  }
 0x32a   : > { %v11854_v9 = vadd.f32 %v2851_v8, %v11773_v57  ;;  %v11857_v10 = vadd.f32 %v2892_v42, %v11776_v58  ;;  %4799 = vmatprep.mubr.bf16.mxu0 %v4444_v3  ;;  %4840 = vmatprep.mubr.bf16.mxu1 %v4444_v3  ;;  %v9746_v3 = vld [vmem:[%s10450_s11 + $0xf20] ss:$16 sps:$4 sm:$0xff]   ;;  %v9749_v41 = vld [vmem:[%s10450_s11 + $0xf28] ss:$16 sps:$4 sm:$0xff]   ;;  %v4443_v42 = vpack.c.b16 %v11760_v43, %v11760_v43 }
 0x32b   : > { %v2853_v24 = vpop.f32.mrf.mxu0  ;;  %v2894_v16 = vpop.f32.mrf.mxu1  ;;  %v9755_v8 = vld [vmem:[%s10450_s11 + $0xf08] ss:$16 sps:$4 sm:$0xff]  }
 0x32c   : > { %4770 = vmatpush1.bf16.msra.mxu0 %v9668_v39  ;;  %4811 = vmatpush1.bf16.msra.mxu1 %v9671_v2  ;;  %v9748_v39 = vld [vmem:[%s10450_s11 + $0xf24] ss:$16 sps:$4 sm:$0xff]   ;;  %v9751_v2 = vld [vmem:[%s10450_s11 + $0xf2c] ss:$16 sps:$4 sm:$0xff]  }
 0x32d   : > { %v2854_v57 = vpop.f32.mrf.mxu0  ;;  %v2895_v58 = vpop.f32.mrf.mxu1  ;;  %4771 = vmatprep.subr.bf16.mxu0 %v9676_v5  ;;  %4812 = vmatprep.subr.bf16.mxu1 %v9679_v6  ;;  %v9757_v5 = vld [vmem:[%s10450_s11 + $0xf0c] ss:$16 sps:$4 sm:$0xff]   ;;  %v9752_v6 = vld [vmem:[%s10450_s11 + $0xf00] ss:$16 sps:$4 sm:$0xff]  }
 0x330   : > { %4772 = vmatpush1.bf16.msra.mxu0 %v9674_v52  ;;  %4813 = vmatpush1.bf16.msra.mxu1 %v9677_v15 }
 0x331   : > { %4773 = vmatprep.subr.bf16.mxu0 %v9682_v17  ;;  %4814 = vmatprep.subr.bf16.mxu1 %v9685_v50 }
 0x334   : > { %4774 = vmatpush1.bf16.msra.mxu0 %v9680_v54  ;;  %4815 = vmatpush1.bf16.msra.mxu1 %v9683_v55 }
 0x335   : > { %4775 = vmatprep.subr.bf16.mxu0 %v9688_v27  ;;  %4816 = vmatprep.subr.bf16.mxu1 %v9691_v20  ;;  %v9758_v27 = vld [vmem:[%s10459_s19 + $0x2a0] ss:$48 sps:$4 sm:$0xff]   ;;  %v9760_v20 = vld [vmem:[%s10459_s19 + $0x2a4] ss:$48 sps:$4 sm:$0xff]  }
 0x338   : > { %4776 = vmatpush1.bf16.msra.mxu0 %v9686_v22  ;;  %4817 = vmatpush1.bf16.msra.mxu1 %v9689_v28  ;;  %v9763_v22 = vld [vmem:[%s10459_s19 + $0x8a4] ss:$48 sps:$4 sm:$0xff]  }
 0x339   : > { %4777 = vmatprep.subr.bf16.mxu0 %v9694_v59  ;;  %4818 = vmatprep.subr.bf16.mxu1 %v9697_v60  ;;  %v9766_v28 = vld [vmem:[%s10459_s19 + $0x244] ss:$48 sps:$4 sm:$0xff]   ;;  %v9767_v59 = vld [vmem:[%s10459_s19 + $0x840] ss:$48 sps:$4 sm:$0xff]  }
 0x33a   : > { %v9772_v60 = vld [vmem:[%s10459_s19 + $0x1e4] ss:$48 sps:$4 sm:$0xff]  }
 0x33c   : > { %4778 = vmatpush1.bf16.msra.mxu0 %v9692_v29  ;;  %4819 = vmatpush1.bf16.msra.mxu1 %v9695_v14  ;;  %v9775_v29 = vld [vmem:[%s10459_s19 + $0x7e4] ss:$48 sps:$4 sm:$0xff]   ;;  %v9770_v14 = vld [vmem:[%s10459_s19 + $0x1e0] ss:$48 sps:$4 sm:$0xff]  }
 0x33d   : > { %4779 = vmatprep.subr.bf16.mxu0 %v9700_v30  ;;  %4820 = vmatprep.subr.bf16.mxu1 %v9703_v25  ;;  %v9773_v30 = vld [vmem:[%s10459_s19 + $0x7e0] ss:$48 sps:$4 sm:$0xff]   ;;  %v9778_v25 = vld [vmem:[%s10459_s19 + $0x184] ss:$48 sps:$4 sm:$0xff]  }
 0x340   : > { %4780 = vmatpush1.bf16.msra.mxu0 %v9698_v21  ;;  %4821 = vmatpush1.bf16.msra.mxu1 %v9701_v31  ;;  %v9781_v21 = vld [vmem:[%s10459_s19 + $0x784] ss:$48 sps:$4 sm:$0xff]   ;;  %v9776_v31 = vld [vmem:[%s10459_s19 + $0x180] ss:$48 sps:$4 sm:$0xff]  }
 0x341   : > { %4781 = vmatprep.subr.bf16.mxu0 %v9706_v32  ;;  %4822 = vmatprep.subr.bf16.mxu1 %v9709_v34  ;;  %v9779_v32 = vld [vmem:[%s10459_s19 + $0x780] ss:$48 sps:$4 sm:$0xff]   ;;  %v9784_v34 = vld [vmem:[%s10459_s19 + $0x124] ss:$48 sps:$4 sm:$0xff]  }
 0x344   : > { %4782 = vmatpush1.bf16.msra.mxu0 %v9704_v35  ;;  %4823 = vmatpush1.bf16.msra.mxu1 %v9707_v36  ;;  %v9787_v35 = vld [vmem:[%s10459_s19 + $0x724] ss:$48 sps:$4 sm:$0xff]   ;;  %v9782_v36 = vld [vmem:[%s10459_s19 + $0x120] ss:$48 sps:$4 sm:$0xff]  }
 0x345   : > { %4783 = vmatprep.subr.bf16.mxu0 %v9712_v37  ;;  %4824 = vmatprep.subr.bf16.mxu1 %v9715_v38  ;;  %v9785_v37 = vld [vmem:[%s10459_s19 + $0x720] ss:$48 sps:$4 sm:$0xff]   ;;  %v9790_v38 = vld [vmem:[%s10459_s19 + $0xc4] ss:$48 sps:$4 sm:$0xff]  }
 0x348   : > { %4784 = vmatpush2.bf16.msra.mxu0 %v9710_v40  ;;  %4825 = vmatpush2.bf16.msra.mxu1 %v9713_v44  ;;  %v9793_v40 = vld [vmem:[%s10459_s19 + $0x6c4] ss:$48 sps:$4 sm:$0xff]   ;;  %v9788_v44 = vld [vmem:[%s10459_s19 + $0xc0] ss:$48 sps:$4 sm:$0xff]  }
 0x349   : > { %4785 = vmatprep.subr.bf16.mxu0 %v9718_v45  ;;  %4826 = vmatprep.subr.bf16.mxu1 %v9721_v46  ;;  %v9791_v45 = vld [vmem:[%s10459_s19 + $0x6c0] ss:$48 sps:$4 sm:$0xff]   ;;  %v9796_v46 = vld [vmem:[%s10459_s19 + $0x64] ss:$48 sps:$4 sm:$0xff]  }
 0x34c   : > { %4786 = vmatpush2.bf16.msra.mxu0 %v9716_v33  ;;  %4827 = vmatpush2.bf16.msra.mxu1 %v9719_v48  ;;  %v9799_v33 = vld [vmem:[%s10459_s19 + $0x664] ss:$48 sps:$4 sm:$0xff]   ;;  %v9794_v48 = vld [vmem:[%s10459_s19 + $0x60] ss:$48 sps:$4 sm:$0xff]  }
 0x34d   : > { %4787 = vmatprep.subr.bf16.mxu0 %v9724_v49  ;;  %4828 = vmatprep.subr.bf16.mxu1 %v9727_v23  ;;  %v9797_v49 = vld [vmem:[%s10459_s19 + $0x660] ss:$48 sps:$4 sm:$0xff]   ;;  %v9802_v23 = vld [vmem:[%s10459_s19 + $0x4] ss:$48 sps:$4 sm:$0xff]  }
 0x350   : > { %4788 = vmatpush2.bf16.msra.mxu0 %v9722_v53  ;;  %4829 = vmatpush2.bf16.msra.mxu1 %v9725_v56  ;;  %v9805_v53 = vld [vmem:[%s10459_s19 + $0x604] ss:$48 sps:$4 sm:$0xff]   ;;  %v9800_v56 = vld [vmem:[%s10459_s19] ss:$48 sps:$4 sm:$0xff]  }
 0x351   : > { %4789 = vmatprep.subr.bf16.mxu0 %v9730_v11  ;;  %4830 = vmatprep.subr.bf16.mxu1 %v9733_v61  ;;  %v9803_v11 = vld [vmem:[%s10459_s19 + $0x600] ss:$48 sps:$4 sm:$0xff]   ;;  %v9808_v61 = vld [vmem:[%s10459_s19 + $0x5a4] ss:$48 sps:$4 sm:$0xff]  }
 0x354   : > { %4790 = vmatpush2.bf16.msra.mxu0 %v9728_v12  ;;  %4831 = vmatpush2.bf16.msra.mxu1 %v9731_v62  ;;  %v9811_v12 = vld [vmem:[%s10459_s19 + $0xba4] ss:$48 sps:$4 sm:$0xff]   ;;  %v9806_v62 = vld [vmem:[%s10459_s19 + $0x5a0] ss:$48 sps:$4 sm:$0xff]  }
 0x355   : > { %4791 = vmatprep.subr.bf16.mxu0 %v9736_v63  ;;  %4832 = vmatprep.subr.bf16.mxu1 %v9739_v51  ;;  %v9809_v63 = vld [vmem:[%s10459_s19 + $0xba0] ss:$48 sps:$4 sm:$0xff]   ;;  %v9814_v51 = vld [vmem:[%s10459_s19 + $0x544] ss:$48 sps:$4 sm:$0xff]  }
 0x358   : > { %4792 = vmatpush2.bf16.msra.mxu0 %v9734_v19  ;;  %4833 = vmatpush2.bf16.msra.mxu1 %v9737_v26  ;;  %v9817_v19 = vld [vmem:[%s10459_s19 + $0xb44] ss:$48 sps:$4 sm:$0xff]   ;;  %v9812_v26 = vld [vmem:[%s10459_s19 + $0x540] ss:$48 sps:$4 sm:$0xff]  }
 0x359   : > { %4793 = vmatprep.subr.bf16.mxu0 %v9742_v18  ;;  %4834 = vmatprep.subr.bf16.mxu1 %v9745_v13  ;;  %v9815_v18 = vld [vmem:[%s10459_s19 + $0xb40] ss:$48 sps:$4 sm:$0xff]   ;;  %v9820_v13 = vld [vmem:[%s10459_s19 + $0x4e4] ss:$48 sps:$4 sm:$0xff]  }
 0x35c   : > { %4794 = vmatpush2.bf16.msra.mxu0 %v9740_v0  ;;  %4835 = vmatpush2.bf16.msra.mxu1 %v9743_v1  ;;  %v9823_v0 = vld [vmem:[%s10459_s19 + $0xae4] ss:$48 sps:$4 sm:$0xff]   ;;  %v9818_v1 = vld [vmem:[%s10459_s19 + $0x4e0] ss:$48 sps:$4 sm:$0xff]  }
 0x35d   : > { %4795 = vmatprep.subr.bf16.mxu0 %v9748_v39  ;;  %4836 = vmatprep.subr.bf16.mxu1 %v9751_v2  ;;  %v9821_v39 = vld [vmem:[%s10459_s19 + $0xae0] ss:$48 sps:$4 sm:$0xff]   ;;  %v9826_v2 = vld [vmem:[%s10459_s19 + $0x484] ss:$48 sps:$4 sm:$0xff]  }
 0x360   : > { %4796 = vmatpush2.bf16.msra.mxu0 %v9746_v3  ;;  %4837 = vmatpush2.bf16.msra.mxu1 %v9749_v41  ;;  %v9829_v3 = vld [vmem:[%s10459_s19 + $0xa84] ss:$48 sps:$4 sm:$0xff]   ;;  %v9824_v41 = vld [vmem:[%s10459_s19 + $0x480] ss:$48 sps:$4 sm:$0xff]  }
 0x361   : > { %4797 = vmatprep.subr.bf16.mxu0 %v9754_v4  ;;  %4838 = vmatprep.subr.bf16.mxu1 %v9757_v5  ;;  %v9827_v4 = vld [vmem:[%s10459_s19 + $0xa80] ss:$48 sps:$4 sm:$0xff]   ;;  %v9832_v5 = vld [vmem:[%s10459_s19 + $0x424] ss:$48 sps:$4 sm:$0xff]  }
 0x364   : > { %4798 = vmatpush2.bf16.msra.mxu0 %v9752_v6  ;;  %4839 = vmatpush2.bf16.msra.mxu1 %v9755_v8  ;;  %v9835_v6 = vld [vmem:[%s10459_s19 + $0xa24] ss:$48 sps:$4 sm:$0xff]   ;;  %v9830_v8 = vld [vmem:[%s10459_s19 + $0x420] ss:$48 sps:$4 sm:$0xff]  }
 0x365   : > { %7194 = vmatprep.subr.bf16.mxu0 %v9760_v20  ;;  %7235 = vmatprep.subr.bf16.mxu1 %v9763_v22  ;;  %v9847_v20 = vld [vmem:[%s10459_s19 + $0x964] ss:$48 sps:$4 sm:$0xff]  }
 0x367   : > { %v3345_v52 = vpop.f32.mrf.mxu0  ;;  %v3386_v15 = vpop.f32.mrf.mxu1  ;;  %4800 = vmatmul.mubr.bf16.vlgmr.msra.gmra.mxu0 %v4443_v42  ;;  %4841 = vmatmul.mubr.bf16.vlgmr.msra.gmra.mxu1 %v4443_v42  ;;  %v9833_v42 = vld [vmem:[%s10459_s19 + $0xa20] ss:$48 sps:$4 sm:$0xff]  }
 0x368   : > { %v11916_v24 = vadd.f32 %v3345_v52, %v11848_v7  ;;  %v11919_v16 = vadd.f32 %v3386_v15, %v11851_v47  ;;  %v9761_v47 = vld [vmem:[%s10459_s19 + $0x8a0] ss:$48 sps:$4 sm:$0xff]   ;;  %7195 = vmatpush1.bf16.msra.mxu0 %v9758_v27  ;;  %v9838_v52 = vld [vmem:[%s10459_s19 + $0x3c4] ss:$48 sps:$4 sm:$0xff]  }
 0x369   : > { %v3347_v17 = vpop.f32.mrf.mxu0  ;;  %v3388_v43 = vpop.f32.mrf.mxu1  ;;  %7236 = vmatpush1.bf16.msra.mxu1 %v9761_v47  ;;  %7196 = vmatprep.subr.bf16.mxu0 %v9766_v28  ;;  %v9841_v15 = vld [vmem:[%s10459_s19 + $0x9c4] ss:$48 sps:$4 sm:$0xff]   ;;  %v9842_v28 = vld [vmem:[%s10459_s19 + $0x360] ss:$48 sps:$4 sm:$0xff]  }
 0x36a   : > { %v11922_v50 = vadd.f32 %v3347_v17, %v11854_v9  ;;  %v11925_v57 = vadd.f32 %v3388_v43, %v11857_v10  ;;  %v9769_v9 = vld [vmem:[%s10459_s19 + $0x844] ss:$48 sps:$4 sm:$0xff]   ;;  %v9764_v10 = vld [vmem:[%s10459_s19 + $0x240] ss:$48 sps:$4 sm:$0xff]  }
 0x36b   : > { %v3349_v58 = vpop.f32.mrf.mxu0  ;;  %v3390_v54 = vpop.f32.mrf.mxu1  ;;  %7237 = vmatprep.subr.bf16.mxu1 %v9769_v9  ;;  %v9836_v17 = vld [vmem:[%s10459_s19 + $0x3c0] ss:$48 sps:$4 sm:$0xff]   ;;  %v9844_v27 = vld [vmem:[%s10459_s19 + $0x364] ss:$48 sps:$4 sm:$0xff]  }
 0x36c   : > { %7197 = vmatpush1.bf16.msra.mxu0 %v9764_v10  ;;  %v9839_v43 = vld [vmem:[%s10459_s19 + $0x9c0] ss:$48 sps:$4 sm:$0xff]  }
 0x36d   : > { %v3350_v55 = vpop.f32.mrf.mxu0  ;;  %v3391_v7 = vpop.f32.mrf.mxu1  ;;  %7238 = vmatpush1.bf16.msra.mxu1 %v9767_v59  ;;  %7198 = vmatprep.subr.bf16.mxu0 %v9772_v60  ;;  %v9845_v9 = vld [vmem:[%s10459_s19 + $0x960] ss:$48 sps:$4 sm:$0xff]  }
 0x36e   : > { %7239 = vmatprep.subr.bf16.mxu1 %v9775_v29  ;;  %v9853_v29 = vld [vmem:[%s10459_s19 + $0x904] ss:$48 sps:$4 sm:$0xff]  }
 0x370   : > { %7199 = vmatpush1.bf16.msra.mxu0 %v9770_v14 }
 0x371   : > { %7240 = vmatpush1.bf16.msra.mxu1 %v9773_v30  ;;  %7200 = vmatprep.subr.bf16.mxu0 %v9778_v25  ;;  %v9848_v25 = vld [vmem:[%s10459_s19 + $0x300] ss:$48 sps:$4 sm:$0xff]  }
 0x372   : > { %7241 = vmatprep.subr.bf16.mxu1 %v9781_v21  ;;  %v9851_v21 = vld [vmem:[%s10459_s19 + $0x900] ss:$48 sps:$4 sm:$0xff]  }
 0x374   : > { %7201 = vmatpush1.bf16.msra.mxu0 %v9776_v31 }
 0x375   : > { %7242 = vmatpush1.bf16.msra.mxu1 %v9779_v32  ;;  %7202 = vmatprep.subr.bf16.mxu0 %v9784_v34 }
 0x376   : > { %7243 = vmatprep.subr.bf16.mxu1 %v9787_v35 }
 0x378   : > { %7203 = vmatpush1.bf16.msra.mxu0 %v9782_v36 }
 0x379   : > { %7244 = vmatpush1.bf16.msra.mxu1 %v9785_v37  ;;  %7204 = vmatprep.subr.bf16.mxu0 %v9790_v38 }
 0x37a   : > { %7245 = vmatprep.subr.bf16.mxu1 %v9793_v40 }
 0x37c   : > { %7205 = vmatpush1.bf16.msra.mxu0 %v9788_v44 }
 0x37d   : > { %7246 = vmatpush1.bf16.msra.mxu1 %v9791_v45  ;;  %7206 = vmatprep.subr.bf16.mxu0 %v9796_v46  ;;  %v4855_v46 = vlaneseq }
 0x37e   : > { %7247 = vmatprep.subr.bf16.mxu1 %v9799_v33 }
 0x37f   : > { %v11997_v33 = vshrl.u32 %v4855_v46, 7  ;;  %v9901_v46 = vld [vmem:[%s10459_s19 + $0x60c] ss:$48 sps:$4 sm:$0xff]  }
 0x380   : > { %7207 = vmatpush1.bf16.msra.mxu0 %v9794_v48 }
 0x381   : > { %7248 = vmatpush1.bf16.msra.mxu1 %v9797_v49  ;;  %7208 = vmatprep.subr.bf16.mxu0 %v9802_v23  ;;  %v4857_v48 = vsub.s32 0, %v11997_v33  ;;  %v4865_v49 = vsub.s32 2, %v11997_v33  ;;  %v4853_v23 = vld [vmem:[%s330_s14] sm:$0xf] }
 0x382   : > { %7249 = vmatprep.subr.bf16.mxu1 %v9805_v53  ;;  %v4861_v53 = vsub.s32 1, %v11997_v33 }
 0x384   : > { %7209 = vmatpush1.bf16.msra.mxu0 %v9800_v56  ;;  %v4869_v56 = vsub.s32 3, %v11997_v33 }
 0x385   : > { %7250 = vmatpush1.bf16.msra.mxu1 %v9803_v11  ;;  %7210 = vmatprep.subr.bf16.mxu0 %v9808_v61  ;;  %v4858_v11 = vrot.slane %v4853_v23, %v4857_v48  ;;  %v4866_v61 = vrot.slane %v4853_v23, %v4865_v49  ;;  %v9896_v48 = vld [vmem:[%s10459_s19 + $0x8] ss:$48 sps:$4 sm:$0xff]  }
 0x386   : > { %7251 = vmatprep.subr.bf16.mxu1 %v9811_v12  ;;  %v9899_v49 = vld [vmem:[%s10459_s19 + $0x608] ss:$48 sps:$4 sm:$0xff]  }
 0x388   : > { %7211 = vmatpush2.bf16.msra.mxu0 %v9806_v62 }
 0x389   : > { %7252 = vmatpush2.bf16.msra.mxu1 %v9809_v63  ;;  %7212 = vmatprep.subr.bf16.mxu0 %v9814_v51  ;;  %v4862_v63 = vrot.slane %v4853_v23, %v4861_v53  ;;  %v4870_v51 = vrot.slane %v4853_v23, %v4869_v56  ;;  %v9904_v23 = vld [vmem:[%s10459_s19 + $0x5ac] ss:$48 sps:$4 sm:$0xff]   ;;  %v9902_v56 = vld [vmem:[%s10459_s19 + $0x5a8] ss:$48 sps:$4 sm:$0xff]  }
 0x38a   : > { %7253 = vmatprep.subr.bf16.mxu1 %v9817_v19  ;;  %v9907_v53 = vld [vmem:[%s10459_s19 + $0xbac] ss:$48 sps:$4 sm:$0xff]  }
 0x38c   : > { %7213 = vmatpush2.bf16.msra.mxu0 %v9812_v26 }
 0x38d   : > { %7254 = vmatpush2.bf16.msra.mxu1 %v9815_v18  ;;  %7214 = vmatprep.subr.bf16.mxu0 %v9820_v13 }
 0x38e   : > { %7255 = vmatprep.subr.bf16.mxu1 %v9823_v0 }
 0x390   : > { %7215 = vmatpush2.bf16.msra.mxu0 %v9818_v1 }
 0x391   : > { %7256 = vmatpush2.bf16.msra.mxu1 %v9821_v39  ;;  %7216 = vmatprep.subr.bf16.mxu0 %v9826_v2 }
 0x392   : > { %7257 = vmatprep.subr.bf16.mxu1 %v9829_v3 }
 0x394   : > { %7217 = vmatpush2.bf16.msra.mxu0 %v9824_v41 }
 0x395   : > { %7258 = vmatpush2.bf16.msra.mxu1 %v9827_v4  ;;  %7218 = vmatprep.subr.bf16.mxu0 %v9832_v5 }
 0x396   : > { %7259 = vmatprep.subr.bf16.mxu1 %v9835_v6 }
 0x398   : > { %7219 = vmatpush2.bf16.msra.mxu0 %v9830_v8 }
 0x399   : > { %7260 = vmatpush2.bf16.msra.mxu1 %v9833_v42  ;;  %7220 = vmatprep.subr.bf16.mxu0 %v9838_v52 }
 0x39a   : > { %7261 = vmatprep.subr.bf16.mxu1 %v9841_v15 }
 0x39c   : > { %7221 = vmatpush2.bf16.msra.mxu0 %v9836_v17 }
 0x39d   : > { %7262 = vmatpush2.bf16.msra.mxu1 %v9839_v43  ;;  %7222 = vmatprep.subr.bf16.mxu0 %v9844_v27  ;;  %v9857_v27 = vld [vmem:[%s10459_s19 + $0x8a8] ss:$48 sps:$4 sm:$0xff]  }
 0x39e   : > { %7263 = vmatprep.subr.bf16.mxu1 %v9847_v20 }
 0x3a0   : > { %7223 = vmatpush2.bf16.msra.mxu0 %v9842_v28  ;;  %v9865_v28 = vld [vmem:[%s10459_s19 + $0x84c] ss:$48 sps:$4 sm:$0xff]  }
 0x3a1   : > { %7264 = vmatpush2.bf16.msra.mxu1 %v9845_v9  ;;  %v9860_v9 = vld [vmem:[%s10459_s19 + $0x248] ss:$48 sps:$4 sm:$0xff]  }
 0x3a2   : > { %7265 = vmatprep.subr.bf16.mxu1 %v9853_v29  ;;  %v9874_v29 = vld [vmem:[%s10459_s19 + $0x18c] ss:$48 sps:$4 sm:$0xff]  }
 0x3a5   : > { %7266 = vmatpush2.bf16.msra.mxu1 %v9851_v21  ;;  %v9880_v21 = vld [vmem:[%s10459_s19 + $0x12c] ss:$48 sps:$4 sm:$0xff]  }
 0x3a7   : > { %v3825_v58 = vpop.f32.mrf.mxu0  ;;  %v3866_v54 = vpop.f32.mrf.mxu1 }
 0x3a8   : > { %v3873_v55 = vadd.f32 %v3825_v58, %v11916_v24  ;;  %v3875_v7 = vadd.f32 %v3866_v54, %v11919_v16  ;;  %v9850_v16 = vld [vmem:[%s10459_s19 + $0x304] ss:$48 sps:$4 sm:$0xff]  }
 0x3a9   : > { %v3827_v47 = vpop.f32.mrf.mxu0  ;;  %v3868_v22 = vpop.f32.mrf.mxu1  ;;  %7224 = vmatprep.subr.bf16.mxu0 %v9850_v16  ;;  %v9869_v16 = vld [vmem:[%s10459_s19 + $0x7e8] ss:$48 sps:$4 sm:$0xff]  }
 0x3aa   : > { %v3874_v10 = vadd.f32 %v3827_v47, %v11922_v50  ;;  %v3876_v59 = vadd.f32 %v3868_v22, %v11925_v57  ;;  %7225 = vmatpush2.bf16.msra.mxu0 %v9848_v25  ;;  %v9856_v50 = vld [vmem:[%s10459_s19 + $0x2ac] ss:$48 sps:$4 sm:$0xff]   ;;  %v9875_v25 = vld [vmem:[%s10459_s19 + $0x788] ss:$48 sps:$4 sm:$0xff]  }
 0x3ab   : > { %v3829_v24 = vpop.f32.mrf.mxu0  ;;  %v3870_v60 = vpop.f32.mrf.mxu1  ;;  %v9859_v57 = vld [vmem:[%s10459_s19 + $0x8ac] ss:$48 sps:$4 sm:$0xff]   ;;  %7276 = vmatprep.subr.bf16.mxu0 %v9856_v50 }
 0x3ac   : > { %7317 = vmatprep.subr.bf16.mxu1 %v9859_v57  ;;  %v9862_v22 = vld [vmem:[%s10459_s19 + $0x24c] ss:$48 sps:$4 sm:$0xff]   ;;  %v9866_v60 = vld [vmem:[%s10459_s19 + $0x1e8] ss:$48 sps:$4 sm:$0xff]  }
 0x3ad   : > { %v3830_v14 = vpop.f32.mrf.mxu0  ;;  %v3871_v30 = vpop.f32.mrf.mxu1  ;;  %v9871_v24 = vld [vmem:[%s10459_s19 + $0x7ec] ss:$48 sps:$4 sm:$0xff]   ;;  %v9878_v57 = vld [vmem:[%s10459_s19 + $0x128] ss:$48 sps:$4 sm:$0xff]  }
 0x3ae   : > { %v9877_v14 = vld [vmem:[%s10459_s19 + $0x78c] ss:$48 sps:$4 sm:$0xff]   ;;  %v9872_v30 = vld [vmem:[%s10459_s19 + $0x188] ss:$48 sps:$4 sm:$0xff]  }
 0x3af   : > { %v9883_v50 = vld [vmem:[%s10459_s19 + $0x72c] ss:$48 sps:$4 sm:$0xff]  }
 0x3e7   : > { %v4321_v31 = vpop.f32.mrf.mxu0  ;;  %v4362_v32 = vpop.f32.mrf.mxu1 }
 0x3e8   : > { %v4369_v34 = vadd.f32 %v4321_v31, %v3873_v55  ;;  %v4371_v35 = vadd.f32 %v4362_v32, %v3875_v7  ;;  %v9854_v7 = vld [vmem:[%s10459_s19 + $0x2a8] ss:$48 sps:$4 sm:$0xff]   ;;  %v9886_v32 = vld [vmem:[%s10459_s19 + $0xcc] ss:$48 sps:$4 sm:$0xff]  }
 0x3e9   : > { %v4323_v36 = vpop.f32.mrf.mxu0  ;;  %v4364_v37 = vpop.f32.mrf.mxu1  ;;  %v9881_v31 = vld [vmem:[%s10459_s19 + $0x728] ss:$48 sps:$4 sm:$0xff]  }
 0x3ea   : > { %v4370_v19 = vadd.f32 %v4323_v36, %v3874_v10  ;;  %v4372_v26 = vadd.f32 %v4364_v37, %v3876_v59  ;;  %v9863_v10 = vld [vmem:[%s10459_s19 + $0x848] ss:$48 sps:$4 sm:$0xff]   ;;  %v9868_v59 = vld [vmem:[%s10459_s19 + $0x1ec] ss:$48 sps:$4 sm:$0xff]  }
 0x3eb   : > { %v4325_v38 = vpop.f32.mrf.mxu0  ;;  %v4366_v40 = vpop.f32.mrf.mxu1  ;;  %v9887_v36 = vld [vmem:[%s10459_s19 + $0x6c8] ss:$48 sps:$4 sm:$0xff]   ;;  %v9892_v37 = vld [vmem:[%s10459_s19 + $0x6c] ss:$48 sps:$4 sm:$0xff]  }
 0x3ec   : > { %v9895_v38 = vld [vmem:[%s10459_s19 + $0x66c] ss:$48 sps:$4 sm:$0xff]   ;;  %v9890_v40 = vld [vmem:[%s10459_s19 + $0x68] ss:$48 sps:$4 sm:$0xff]  }
 0x3ed   : > { %v4326_v44 = vpop.f32.mrf.mxu0  ;;  %v4367_v45 = vpop.f32.mrf.mxu1 }
 0x3ee   : > { %v9893_v44 = vld [vmem:[%s10459_s19 + $0x668] ss:$48 sps:$4 sm:$0xff]   ;;  %v9898_v45 = vld [vmem:[%s10459_s19 + $0xc] ss:$48 sps:$4 sm:$0xff]  }
 0x427   : > { %v4801_v12 = vpop.f32.mrf.mxu0  ;;  %v4842_v62 = vpop.f32.mrf.mxu1 }
 0x428   : > { %v4849_v18 = vadd.f32 %v4801_v12, %v4369_v34  ;;  %v4851_v13 = vadd.f32 %v4842_v62, %v4371_v35  ;;  %v9889_v34 = vld [vmem:[%s10459_s19 + $0x6cc] ss:$48 sps:$4 sm:$0xff]   ;;  %v9884_v35 = vld [vmem:[%s10459_s19 + $0xc8] ss:$48 sps:$4 sm:$0xff]  }
 0x429   : > { %v4803_v0 = vpop.f32.mrf.mxu0  ;;  %v4844_v1 = vpop.f32.mrf.mxu1  ;;  %v9913_v12 = vld [vmem:[%s10459_s19 + $0xb4c] ss:$48 sps:$4 sm:$0xff]   ;;  %v9908_v62 = vld [vmem:[%s10459_s19 + $0x548] ss:$48 sps:$4 sm:$0xff]  }
 0x42a   : > { %v4875_v39 = vadd.f32 %v4858_v11, %v4849_v18  ;;  %v4877_v2 = vadd.f32 %v4866_v61, %v4851_v13  ;;  %v4850_v3 = vadd.f32 %v4803_v0, %v4370_v19  ;;  %v4852_v41 = vadd.f32 %v4844_v1, %v4372_v26  ;;  %v9905_v11 = vld [vmem:[%s10459_s19 + $0xba8] ss:$48 sps:$4 sm:$0xff]   ;;  %v9910_v61 = vld [vmem:[%s10459_s19 + $0x54c] ss:$48 sps:$4 sm:$0xff]  }
 0x42b   : > { %v4805_v4 = vpop.f32.mrf.mxu0  ;;  %v4846_v5 = vpop.f32.mrf.mxu1  ;;  %v9919_v19 = vld [vmem:[%s10459_s19 + $0xaec] ss:$48 sps:$4 sm:$0xff]   ;;  %v9914_v26 = vld [vmem:[%s10459_s19 + $0x4e8] ss:$48 sps:$4 sm:$0xff]  }
 0x42c   : > { %v4876_v6 = vadd.f32 %v4862_v63, %v4850_v3  ;;  %v4878_v8 = vadd.f32 %v4870_v51, %v4852_v41  ;;  %v4879_v42 = vmax.f32 %v4875_v39, 0.0  ;;  %v4881_v52 = vmax.f32 %v4877_v2, 0.0  ;;  %v9911_v63 = vld [vmem:[%s10459_s19 + $0xb48] ss:$48 sps:$4 sm:$0xff]   ;;  %v9916_v51 = vld [vmem:[%s10459_s19 + $0x4ec] ss:$48 sps:$4 sm:$0xff]  }
 0x42d   : > { %v4806_v15 = vpop.f32.mrf.mxu0  ;;  %v4847_v17 = vpop.f32.mrf.mxu1  ;;  %v9917_v18 = vld [vmem:[%s10459_s19 + $0xae8] ss:$48 sps:$4 sm:$0xff]   ;;  %v9922_v13 = vld [vmem:[%s10459_s19 + $0x48c] ss:$48 sps:$4 sm:$0xff]  }
 0x42e   : > { %v4880_v43 = vmax.f32 %v4876_v6, 0.0  ;;  %v4882_v58 = vmax.f32 %v4878_v8, 0.0  ;;  %v12014_v20 = vpack.c.bf16 %v4879_v42, %v4879_v42  ;;  %v12016_v47 = vpack.c.bf16 %v4881_v52, %v4881_v52  ;;  %v9925_v0 = vld [vmem:[%s10459_s19 + $0xa8c] ss:$48 sps:$4 sm:$0xff]   ;;  %v9920_v1 = vld [vmem:[%s10459_s19 + $0x488] ss:$48 sps:$4 sm:$0xff]  }
 0x42f   : > { %v9923_v39 = vld [vmem:[%s10459_s19 + $0xa88] ss:$48 sps:$4 sm:$0xff]   ;;  %v9928_v2 = vld [vmem:[%s10459_s19 + $0x42c] ss:$48 sps:$4 sm:$0xff]  }
 0x430   : > { %v12008_v54 = vpack.c.bf16 %v4880_v43, %v4880_v43  ;;  %v12010_v55 = vpack.c.bf16 %v4882_v58, %v4882_v58  ;;  %v9931_v3 = vld [vmem:[%s10459_s19 + $0xa2c] ss:$48 sps:$4 sm:$0xff]   ;;  %v9926_v41 = vld [vmem:[%s10459_s19 + $0x428] ss:$48 sps:$4 sm:$0xff]  }
 0x431   : > { %v9929_v4 = vld [vmem:[%s10459_s19 + $0xa28] ss:$48 sps:$4 sm:$0xff]   ;;  %v9934_v5 = vld [vmem:[%s10459_s19 + $0x3cc] ss:$48 sps:$4 sm:$0xff]  }
 0x432   : > { %7226 = vmatprep.mubr.bf16.mxu0 %v12008_v54  ;;  %7267 = vmatprep.mubr.bf16.mxu1 %v12010_v55  ;;  %v9937_v6 = vld [vmem:[%s10459_s19 + $0x9cc] ss:$48 sps:$4 sm:$0xff]   ;;  %v9932_v8 = vld [vmem:[%s10459_s19 + $0x3c8] ss:$48 sps:$4 sm:$0xff]  }
 0x433   : > { %7227 = vmatmul.mubr.bf16.vlgmr.msra.gmra.mxu0 %v12014_v20  ;;  %7268 = vmatmul.mubr.bf16.vlgmr.msra.gmra.mxu1 %v12016_v47  ;;  %v9935_v42 = vld [vmem:[%s10459_s19 + $0x9c8] ss:$48 sps:$4 sm:$0xff]   ;;  %v9940_v52 = vld [vmem:[%s10459_s19 + $0x36c] ss:$48 sps:$4 sm:$0xff]  }
 0x434   : > { %7277 = vmatpush1.bf16.msra.mxu0 %v9854_v7  ;;  %7318 = vmatpush1.bf16.msra.mxu1 %v9857_v27  ;;  %v9943_v15 = vld [vmem:[%s10459_s19 + $0x96c] ss:$48 sps:$4 sm:$0xff]   ;;  %v9938_v17 = vld [vmem:[%s10459_s19 + $0x368] ss:$48 sps:$4 sm:$0xff]  }
 0x435   : > { %7308 = vmatprep.mubr.bf16.mxu0 %v12008_v54  ;;  %7349 = vmatprep.mubr.bf16.mxu1 %v12010_v55  ;;  %v9941_v43 = vld [vmem:[%s10459_s19 + $0x968] ss:$48 sps:$4 sm:$0xff]   ;;  %v9946_v58 = vld [vmem:[%s10459_s19 + $0x30c] ss:$48 sps:$4 sm:$0xff]  }
 0x436   : > { %7278 = vmatprep.subr.bf16.mxu0 %v9862_v22  ;;  %7319 = vmatprep.subr.bf16.mxu1 %v9865_v28  ;;  %v9949_v7 = vld [vmem:[%s10459_s19 + $0x90c] ss:$48 sps:$4 sm:$0xff]   ;;  %v9944_v27 = vld [vmem:[%s10459_s19 + $0x308] ss:$48 sps:$4 sm:$0xff]   ;;  %v9952_v28 = vld [vmem:[%s10459_s19 + $0x2b4] ss:$48 sps:$4 sm:$0xff]  }
 0x437   : > { %v9947_v22 = vld [vmem:[%s10459_s19 + $0x908] ss:$48 sps:$4 sm:$0xff]  }
 0x438   : > { %7279 = vmatpush1.bf16.msra.mxu0 %v9860_v9  ;;  %7320 = vmatpush1.bf16.msra.mxu1 %v9863_v10  ;;  %v9955_v9 = vld [vmem:[%s10459_s19 + $0x8b4] ss:$48 sps:$4 sm:$0xff]   ;;  %v9950_v10 = vld [vmem:[%s10459_s19 + $0x2b0] ss:$48 sps:$4 sm:$0xff]  }
 0x439   : > { %7280 = vmatprep.subr.bf16.mxu0 %v9868_v59  ;;  %7321 = vmatprep.subr.bf16.mxu1 %v9871_v24  ;;  %v9953_v59 = vld [vmem:[%s10459_s19 + $0x8b0] ss:$48 sps:$4 sm:$0xff]   ;;  %v9958_v24 = vld [vmem:[%s10459_s19 + $0x254] ss:$48 sps:$4 sm:$0xff]  }
 0x43c   : > { %7281 = vmatpush1.bf16.msra.mxu0 %v9866_v60  ;;  %7322 = vmatpush1.bf16.msra.mxu1 %v9869_v16  ;;  %v9961_v60 = vld [vmem:[%s10459_s19 + $0x854] ss:$48 sps:$4 sm:$0xff]   ;;  %v9956_v16 = vld [vmem:[%s10459_s19 + $0x250] ss:$48 sps:$4 sm:$0xff]  }
 0x43d   : > { %7282 = vmatprep.subr.bf16.mxu0 %v9874_v29  ;;  %7323 = vmatprep.subr.bf16.mxu1 %v9877_v14  ;;  %v9959_v29 = vld [vmem:[%s10459_s19 + $0x850] ss:$48 sps:$4 sm:$0xff]   ;;  %v9964_v14 = vld [vmem:[%s10459_s19 + $0x1f4] ss:$48 sps:$4 sm:$0xff]  }
 0x440   : > { %7283 = vmatpush1.bf16.msra.mxu0 %v9872_v30  ;;  %7324 = vmatpush1.bf16.msra.mxu1 %v9875_v25  ;;  %v9967_v30 = vld [vmem:[%s10459_s19 + $0x7f4] ss:$48 sps:$4 sm:$0xff]   ;;  %v9962_v25 = vld [vmem:[%s10459_s19 + $0x1f0] ss:$48 sps:$4 sm:$0xff]  }
 0x441   : > { %7284 = vmatprep.subr.bf16.mxu0 %v9880_v21  ;;  %7325 = vmatprep.subr.bf16.mxu1 %v9883_v50  ;;  %v9965_v21 = vld [vmem:[%s10459_s19 + $0x7f0] ss:$48 sps:$4 sm:$0xff]   ;;  %v9970_v50 = vld [vmem:[%s10459_s19 + $0x194] ss:$48 sps:$4 sm:$0xff]  }
 0x444   : > { %7285 = vmatpush1.bf16.msra.mxu0 %v9878_v57  ;;  %7326 = vmatpush1.bf16.msra.mxu1 %v9881_v31  ;;  %v9973_v57 = vld [vmem:[%s10459_s19 + $0x794] ss:$48 sps:$4 sm:$0xff]   ;;  %v9968_v31 = vld [vmem:[%s10459_s19 + $0x190] ss:$48 sps:$4 sm:$0xff]  }
 0x445   : > { %7286 = vmatprep.subr.bf16.mxu0 %v9886_v32  ;;  %7327 = vmatprep.subr.bf16.mxu1 %v9889_v34  ;;  %v9971_v32 = vld [vmem:[%s10459_s19 + $0x790] ss:$48 sps:$4 sm:$0xff]   ;;  %v9976_v34 = vld [vmem:[%s10459_s19 + $0x134] ss:$48 sps:$4 sm:$0xff]  }
 0x448   : > { %7287 = vmatpush1.bf16.msra.mxu0 %v9884_v35  ;;  %7328 = vmatpush1.bf16.msra.mxu1 %v9887_v36  ;;  %v9979_v35 = vld [vmem:[%s10459_s19 + $0x734] ss:$48 sps:$4 sm:$0xff]   ;;  %v9974_v36 = vld [vmem:[%s10459_s19 + $0x130] ss:$48 sps:$4 sm:$0xff]  }
 0x449   : > { %7288 = vmatprep.subr.bf16.mxu0 %v9892_v37  ;;  %7329 = vmatprep.subr.bf16.mxu1 %v9895_v38  ;;  %v9977_v37 = vld [vmem:[%s10459_s19 + $0x730] ss:$48 sps:$4 sm:$0xff]   ;;  %v9982_v38 = vld [vmem:[%s10459_s19 + $0xd4] ss:$48 sps:$4 sm:$0xff]  }
 0x44c   : > { %7289 = vmatpush1.bf16.msra.mxu0 %v9890_v40  ;;  %7330 = vmatpush1.bf16.msra.mxu1 %v9893_v44  ;;  %v9985_v40 = vld [vmem:[%s10459_s19 + $0x6d4] ss:$48 sps:$4 sm:$0xff]   ;;  %v9980_v44 = vld [vmem:[%s10459_s19 + $0xd0] ss:$48 sps:$4 sm:$0xff]  }
 0x44d   : > { %7290 = vmatprep.subr.bf16.mxu0 %v9898_v45  ;;  %7331 = vmatprep.subr.bf16.mxu1 %v9901_v46  ;;  %v9983_v45 = vld [vmem:[%s10459_s19 + $0x6d0] ss:$48 sps:$4 sm:$0xff]   ;;  %v9988_v46 = vld [vmem:[%s10459_s19 + $0x74] ss:$48 sps:$4 sm:$0xff]  }
 0x450   : > { %7291 = vmatpush1.bf16.msra.mxu0 %v9896_v48  ;;  %7332 = vmatpush1.bf16.msra.mxu1 %v9899_v49  ;;  %v9991_v48 = vld [vmem:[%s10459_s19 + $0x674] ss:$48 sps:$4 sm:$0xff]   ;;  %v9986_v49 = vld [vmem:[%s10459_s19 + $0x70] ss:$48 sps:$4 sm:$0xff]  }
 0x451   : > { %7292 = vmatprep.subr.bf16.mxu0 %v9904_v23  ;;  %7333 = vmatprep.subr.bf16.mxu1 %v9907_v53  ;;  %v9989_v23 = vld [vmem:[%s10459_s19 + $0x670] ss:$48 sps:$4 sm:$0xff]   ;;  %v9994_v53 = vld [vmem:[%s10459_s19 + $0x14] ss:$48 sps:$4 sm:$0xff]  }
 0x454   : > { %7293 = vmatpush2.bf16.msra.mxu0 %v9902_v56  ;;  %7334 = vmatpush2.bf16.msra.mxu1 %v9905_v11  ;;  %v9997_v56 = vld [vmem:[%s10459_s19 + $0x614] ss:$48 sps:$4 sm:$0xff]   ;;  %v9992_v11 = vld [vmem:[%s10459_s19 + $0x10] ss:$48 sps:$4 sm:$0xff]  }
 0x455   : > { %7294 = vmatprep.subr.bf16.mxu0 %v9910_v61  ;;  %7335 = vmatprep.subr.bf16.mxu1 %v9913_v12  ;;  %v9995_v61 = vld [vmem:[%s10459_s19 + $0x610] ss:$48 sps:$4 sm:$0xff]   ;;  %v10000_v12 = vld [vmem:[%s10459_s19 + $0x5b4] ss:$48 sps:$4 sm:$0xff]  }
 0x458   : > { %7295 = vmatpush2.bf16.msra.mxu0 %v9908_v62  ;;  %7336 = vmatpush2.bf16.msra.mxu1 %v9911_v63  ;;  %v10003_v62 = vld [vmem:[%s10459_s19 + $0xbb4] ss:$48 sps:$4 sm:$0xff]   ;;  %v9998_v63 = vld [vmem:[%s10459_s19 + $0x5b0] ss:$48 sps:$4 sm:$0xff]  }
 0x459   : > { %7296 = vmatprep.subr.bf16.mxu0 %v9916_v51  ;;  %7337 = vmatprep.subr.bf16.mxu1 %v9919_v19  ;;  %v10001_v51 = vld [vmem:[%s10459_s19 + $0xbb0] ss:$48 sps:$4 sm:$0xff]   ;;  %v10006_v19 = vld [vmem:[%s10459_s19 + $0x554] ss:$48 sps:$4 sm:$0xff]  }
 0x45c   : > { %7297 = vmatpush2.bf16.msra.mxu0 %v9914_v26  ;;  %7338 = vmatpush2.bf16.msra.mxu1 %v9917_v18  ;;  %v10009_v26 = vld [vmem:[%s10459_s19 + $0xb54] ss:$48 sps:$4 sm:$0xff]   ;;  %v10004_v18 = vld [vmem:[%s10459_s19 + $0x550] ss:$48 sps:$4 sm:$0xff]  }
 0x45d   : > { %7298 = vmatprep.subr.bf16.mxu0 %v9922_v13  ;;  %7339 = vmatprep.subr.bf16.mxu1 %v9925_v0  ;;  %v10007_v13 = vld [vmem:[%s10459_s19 + $0xb50] ss:$48 sps:$4 sm:$0xff]   ;;  %v10012_v0 = vld [vmem:[%s10459_s19 + $0x4f4] ss:$48 sps:$4 sm:$0xff]  }
 0x460   : > { %7299 = vmatpush2.bf16.msra.mxu0 %v9920_v1  ;;  %7340 = vmatpush2.bf16.msra.mxu1 %v9923_v39  ;;  %v10015_v1 = vld [vmem:[%s10459_s19 + $0xaf4] ss:$48 sps:$4 sm:$0xff]   ;;  %v10010_v39 = vld [vmem:[%s10459_s19 + $0x4f0] ss:$48 sps:$4 sm:$0xff]  }
 0x461   : > { %7300 = vmatprep.subr.bf16.mxu0 %v9928_v2  ;;  %7341 = vmatprep.subr.bf16.mxu1 %v9931_v3  ;;  %v10013_v2 = vld [vmem:[%s10459_s19 + $0xaf0] ss:$48 sps:$4 sm:$0xff]   ;;  %v10018_v3 = vld [vmem:[%s10459_s19 + $0x494] ss:$48 sps:$4 sm:$0xff]  }
 0x464   : > { %7301 = vmatpush2.bf16.msra.mxu0 %v9926_v41  ;;  %7342 = vmatpush2.bf16.msra.mxu1 %v9929_v4  ;;  %v10021_v41 = vld [vmem:[%s10459_s19 + $0xa94] ss:$48 sps:$4 sm:$0xff]   ;;  %v10016_v4 = vld [vmem:[%s10459_s19 + $0x490] ss:$48 sps:$4 sm:$0xff]  }
 0x465   : > { %7302 = vmatprep.subr.bf16.mxu0 %v9934_v5  ;;  %7343 = vmatprep.subr.bf16.mxu1 %v9937_v6  ;;  %v10019_v5 = vld [vmem:[%s10459_s19 + $0xa90] ss:$48 sps:$4 sm:$0xff]   ;;  %v10024_v6 = vld [vmem:[%s10459_s19 + $0x434] ss:$48 sps:$4 sm:$0xff]  }
 0x468   : > { %7303 = vmatpush2.bf16.msra.mxu0 %v9932_v8  ;;  %7344 = vmatpush2.bf16.msra.mxu1 %v9935_v42  ;;  %v10027_v8 = vld [vmem:[%s10459_s19 + $0xa34] ss:$48 sps:$4 sm:$0xff]   ;;  %v10022_v42 = vld [vmem:[%s10459_s19 + $0x430] ss:$48 sps:$4 sm:$0xff]  }
 0x469   : > { %7304 = vmatprep.subr.bf16.mxu0 %v9940_v52  ;;  %7345 = vmatprep.subr.bf16.mxu1 %v9943_v15  ;;  %v10025_v52 = vld [vmem:[%s10459_s19 + $0xa30] ss:$48 sps:$4 sm:$0xff]   ;;  %v10030_v15 = vld [vmem:[%s10459_s19 + $0x3d4] ss:$48 sps:$4 sm:$0xff]  }
 0x46c   : > { %7305 = vmatpush2.bf16.msra.mxu0 %v9938_v17  ;;  %7346 = vmatpush2.bf16.msra.mxu1 %v9941_v43  ;;  %v10033_v17 = vld [vmem:[%s10459_s19 + $0x9d4] ss:$48 sps:$4 sm:$0xff]   ;;  %v10028_v43 = vld [vmem:[%s10459_s19 + $0x3d0] ss:$48 sps:$4 sm:$0xff]  }
 0x46d   : > { %7306 = vmatprep.subr.bf16.mxu0 %v9946_v58  ;;  %7347 = vmatprep.subr.bf16.mxu1 %v9949_v7  ;;  %v10031_v58 = vld [vmem:[%s10459_s19 + $0x9d0] ss:$48 sps:$4 sm:$0xff]   ;;  %v10036_v7 = vld [vmem:[%s10459_s19 + $0x374] ss:$48 sps:$4 sm:$0xff]  }
 0x470   : > { %7307 = vmatpush2.bf16.msra.mxu0 %v9944_v27  ;;  %7348 = vmatpush2.bf16.msra.mxu1 %v9947_v22  ;;  %v10039_v27 = vld [vmem:[%s10459_s19 + $0x974] ss:$48 sps:$4 sm:$0xff]   ;;  %v10034_v22 = vld [vmem:[%s10459_s19 + $0x370] ss:$48 sps:$4 sm:$0xff]  }
 0x471   : > { %7358 = vmatprep.subr.bf16.mxu0 %v9952_v28  ;;  %7399 = vmatprep.subr.bf16.mxu1 %v9955_v9  ;;  %v10037_v28 = vld [vmem:[%s10459_s19 + $0x970] ss:$48 sps:$4 sm:$0xff]   ;;  %v10042_v9 = vld [vmem:[%s10459_s19 + $0x314] ss:$48 sps:$4 sm:$0xff]  }
 0x473   : > { %7309 = vmatmul.mubr.bf16.vlgmr.msra.gmra.mxu0 %v12014_v20  ;;  %7350 = vmatmul.mubr.bf16.vlgmr.msra.gmra.mxu1 %v12016_v47 }
 0x474   : > { %7359 = vmatpush1.bf16.msra.mxu0 %v9950_v10  ;;  %7390 = vmatprep.mubr.bf16.mxu0 %v12008_v54  ;;  %v10045_v10 = vld [vmem:[%s10459_s19 + $0x914] ss:$48 sps:$4 sm:$0xff]  }
 0x475   : > { %7400 = vmatpush1.bf16.msra.mxu1 %v9953_v59  ;;  %7431 = vmatprep.mubr.bf16.mxu1 %v12010_v55  ;;  %v10040_v59 = vld [vmem:[%s10459_s19 + $0x310] ss:$48 sps:$4 sm:$0xff]  }
 0x476   : > { %7360 = vmatprep.subr.bf16.mxu0 %v9958_v24  ;;  %7401 = vmatprep.subr.bf16.mxu1 %v9961_v60  ;;  %v10043_v24 = vld [vmem:[%s10459_s19 + $0x910] ss:$48 sps:$4 sm:$0xff]   ;;  %v10048_v60 = vld [vmem:[%s10459_s19 + $0x2bc] ss:$48 sps:$4 sm:$0xff]  }
 0x478   : > { %7361 = vmatpush1.bf16.msra.mxu0 %v9956_v16  ;;  %v10051_v16 = vld [vmem:[%s10459_s19 + $0x8bc] ss:$48 sps:$4 sm:$0xff]  }
 0x479   : > { %7402 = vmatpush1.bf16.msra.mxu1 %v9959_v29  ;;  %7362 = vmatprep.subr.bf16.mxu0 %v9964_v14  ;;  %v10046_v29 = vld [vmem:[%s10459_s19 + $0x2b8] ss:$48 sps:$4 sm:$0xff]  }
 0x47a   : > { %7403 = vmatprep.subr.bf16.mxu1 %v9967_v30  ;;  %v10049_v14 = vld [vmem:[%s10459_s19 + $0x8b8] ss:$48 sps:$4 sm:$0xff]   ;;  %v10054_v30 = vld [vmem:[%s10459_s19 + $0x25c] ss:$48 sps:$4 sm:$0xff]  }
 0x47c   : > { %7363 = vmatpush1.bf16.msra.mxu0 %v9962_v25  ;;  %v10057_v25 = vld [vmem:[%s10459_s19 + $0x85c] ss:$48 sps:$4 sm:$0xff]  }
 0x47d   : > { %7404 = vmatpush1.bf16.msra.mxu1 %v9965_v21  ;;  %7364 = vmatprep.subr.bf16.mxu0 %v9970_v50  ;;  %v10052_v21 = vld [vmem:[%s10459_s19 + $0x258] ss:$48 sps:$4 sm:$0xff]  }
 0x47e   : > { %7405 = vmatprep.subr.bf16.mxu1 %v9973_v57  ;;  %v10055_v50 = vld [vmem:[%s10459_s19 + $0x858] ss:$48 sps:$4 sm:$0xff]   ;;  %v10060_v57 = vld [vmem:[%s10459_s19 + $0x1fc] ss:$48 sps:$4 sm:$0xff]  }
 0x480   : > { %7365 = vmatpush1.bf16.msra.mxu0 %v9968_v31  ;;  %v10063_v31 = vld [vmem:[%s10459_s19 + $0x7fc] ss:$48 sps:$4 sm:$0xff]  }
 0x481   : > { %7406 = vmatpush1.bf16.msra.mxu1 %v9971_v32  ;;  %7366 = vmatprep.subr.bf16.mxu0 %v9976_v34  ;;  %v10058_v32 = vld [vmem:[%s10459_s19 + $0x1f8] ss:$48 sps:$4 sm:$0xff]  }
 0x482   : > { %7407 = vmatprep.subr.bf16.mxu1 %v9979_v35  ;;  %v10061_v34 = vld [vmem:[%s10459_s19 + $0x7f8] ss:$48 sps:$4 sm:$0xff]   ;;  %v10066_v35 = vld [vmem:[%s10459_s19 + $0x19c] ss:$48 sps:$4 sm:$0xff]  }
 0x484   : > { %7367 = vmatpush1.bf16.msra.mxu0 %v9974_v36  ;;  %v10069_v36 = vld [vmem:[%s10459_s19 + $0x79c] ss:$48 sps:$4 sm:$0xff]  }
 0x485   : > { %7408 = vmatpush1.bf16.msra.mxu1 %v9977_v37  ;;  %7368 = vmatprep.subr.bf16.mxu0 %v9982_v38  ;;  %v10064_v37 = vld [vmem:[%s10459_s19 + $0x198] ss:$48 sps:$4 sm:$0xff]  }
 0x486   : > { %7409 = vmatprep.subr.bf16.mxu1 %v9985_v40  ;;  %v10067_v38 = vld [vmem:[%s10459_s19 + $0x798] ss:$48 sps:$4 sm:$0xff]   ;;  %v10072_v40 = vld [vmem:[%s10459_s19 + $0x13c] ss:$48 sps:$4 sm:$0xff]  }
 0x488   : > { %7369 = vmatpush1.bf16.msra.mxu0 %v9980_v44  ;;  %v10075_v44 = vld [vmem:[%s10459_s19 + $0x73c] ss:$48 sps:$4 sm:$0xff]  }
 0x489   : > { %7410 = vmatpush1.bf16.msra.mxu1 %v9983_v45  ;;  %7370 = vmatprep.subr.bf16.mxu0 %v9988_v46  ;;  %v10070_v45 = vld [vmem:[%s10459_s19 + $0x138] ss:$48 sps:$4 sm:$0xff]  }
 0x48a   : > { %7411 = vmatprep.subr.bf16.mxu1 %v9991_v48  ;;  %v10073_v46 = vld [vmem:[%s10459_s19 + $0x738] ss:$48 sps:$4 sm:$0xff]   ;;  %v10078_v48 = vld [vmem:[%s10459_s19 + $0xdc] ss:$48 sps:$4 sm:$0xff]  }
 0x48c   : > { %7371 = vmatpush1.bf16.msra.mxu0 %v9986_v49  ;;  %v10081_v49 = vld [vmem:[%s10459_s19 + $0x6dc] ss:$48 sps:$4 sm:$0xff]  }
 0x48d   : > { %7412 = vmatpush1.bf16.msra.mxu1 %v9989_v23  ;;  %7372 = vmatprep.subr.bf16.mxu0 %v9994_v53  ;;  %v10076_v23 = vld [vmem:[%s10459_s19 + $0xd8] ss:$48 sps:$4 sm:$0xff]  }
 0x48e   : > { %7413 = vmatprep.subr.bf16.mxu1 %v9997_v56  ;;  %v10079_v53 = vld [vmem:[%s10459_s19 + $0x6d8] ss:$48 sps:$4 sm:$0xff]   ;;  %v10084_v56 = vld [vmem:[%s10459_s19 + $0x7c] ss:$48 sps:$4 sm:$0xff]  }
 0x490   : > { %7373 = vmatpush1.bf16.msra.mxu0 %v9992_v11  ;;  %v10087_v11 = vld [vmem:[%s10459_s19 + $0x67c] ss:$48 sps:$4 sm:$0xff]  }
 0x491   : > { %7414 = vmatpush1.bf16.msra.mxu1 %v9995_v61  ;;  %7374 = vmatprep.subr.bf16.mxu0 %v10000_v12  ;;  %v10082_v61 = vld [vmem:[%s10459_s19 + $0x78] ss:$48 sps:$4 sm:$0xff]  }
 0x492   : > { %7415 = vmatprep.subr.bf16.mxu1 %v10003_v62  ;;  %v10085_v12 = vld [vmem:[%s10459_s19 + $0x678] ss:$48 sps:$4 sm:$0xff]   ;;  %v10090_v62 = vld [vmem:[%s10459_s19 + $0x1c] ss:$48 sps:$4 sm:$0xff]  }
 0x494   : > { %7375 = vmatpush2.bf16.msra.mxu0 %v9998_v63  ;;  %v10093_v63 = vld [vmem:[%s10459_s19 + $0x61c] ss:$48 sps:$4 sm:$0xff]  }
 0x495   : > { %7416 = vmatpush2.bf16.msra.mxu1 %v10001_v51  ;;  %7376 = vmatprep.subr.bf16.mxu0 %v10006_v19  ;;  %v10088_v51 = vld [vmem:[%s10459_s19 + $0x18] ss:$48 sps:$4 sm:$0xff]  }
 0x496   : > { %7417 = vmatprep.subr.bf16.mxu1 %v10009_v26  ;;  %v10091_v19 = vld [vmem:[%s10459_s19 + $0x618] ss:$48 sps:$4 sm:$0xff]   ;;  %v10096_v26 = vld [vmem:[%s10459_s19 + $0x5bc] ss:$48 sps:$4 sm:$0xff]  }
 0x498   : > { %7377 = vmatpush2.bf16.msra.mxu0 %v10004_v18  ;;  %v10099_v18 = vld [vmem:[%s10459_s19 + $0xbbc] ss:$48 sps:$4 sm:$0xff]  }
 0x499   : > { %7418 = vmatpush2.bf16.msra.mxu1 %v10007_v13  ;;  %7378 = vmatprep.subr.bf16.mxu0 %v10012_v0  ;;  %v10094_v13 = vld [vmem:[%s10459_s19 + $0x5b8] ss:$48 sps:$4 sm:$0xff]  }
 0x49a   : > { %7419 = vmatprep.subr.bf16.mxu1 %v10015_v1  ;;  %v10097_v0 = vld [vmem:[%s10459_s19 + $0xbb8] ss:$48 sps:$4 sm:$0xff]   ;;  %v10102_v1 = vld [vmem:[%s10459_s19 + $0x55c] ss:$48 sps:$4 sm:$0xff]  }
 0x49c   : > { %7379 = vmatpush2.bf16.msra.mxu0 %v10010_v39  ;;  %v10105_v39 = vld [vmem:[%s10459_s19 + $0xb5c] ss:$48 sps:$4 sm:$0xff]  }
 0x49d   : > { %7420 = vmatpush2.bf16.msra.mxu1 %v10013_v2  ;;  %7380 = vmatprep.subr.bf16.mxu0 %v10018_v3  ;;  %v10100_v2 = vld [vmem:[%s10459_s19 + $0x558] ss:$48 sps:$4 sm:$0xff]  }
 0x49e   : > { %7421 = vmatprep.subr.bf16.mxu1 %v10021_v41  ;;  %v10103_v3 = vld [vmem:[%s10459_s19 + $0xb58] ss:$48 sps:$4 sm:$0xff]   ;;  %v10108_v41 = vld [vmem:[%s10459_s19 + $0x4fc] ss:$48 sps:$4 sm:$0xff]  }
 0x4a0   : > { %7381 = vmatpush2.bf16.msra.mxu0 %v10016_v4  ;;  %v10111_v4 = vld [vmem:[%s10459_s19 + $0xafc] ss:$48 sps:$4 sm:$0xff]  }
 0x4a1   : > { %7422 = vmatpush2.bf16.msra.mxu1 %v10019_v5  ;;  %7382 = vmatprep.subr.bf16.mxu0 %v10024_v6  ;;  %v10106_v5 = vld [vmem:[%s10459_s19 + $0x4f8] ss:$48 sps:$4 sm:$0xff]  }
 0x4a2   : > { %7423 = vmatprep.subr.bf16.mxu1 %v10027_v8  ;;  %v10109_v6 = vld [vmem:[%s10459_s19 + $0xaf8] ss:$48 sps:$4 sm:$0xff]   ;;  %v10114_v8 = vld [vmem:[%s10459_s19 + $0x49c] ss:$48 sps:$4 sm:$0xff]  }
 0x4a4   : > { %7383 = vmatpush2.bf16.msra.mxu0 %v10022_v42  ;;  %v10117_v42 = vld [vmem:[%s10459_s19 + $0xa9c] ss:$48 sps:$4 sm:$0xff]  }
 0x4a5   : > { %7424 = vmatpush2.bf16.msra.mxu1 %v10025_v52  ;;  %7384 = vmatprep.subr.bf16.mxu0 %v10030_v15  ;;  %v10112_v52 = vld [vmem:[%s10459_s19 + $0x498] ss:$48 sps:$4 sm:$0xff]  }
 0x4a6   : > { %7425 = vmatprep.subr.bf16.mxu1 %v10033_v17  ;;  %v10115_v15 = vld [vmem:[%s10459_s19 + $0xa98] ss:$48 sps:$4 sm:$0xff]   ;;  %v10120_v17 = vld [vmem:[%s10459_s19 + $0x43c] ss:$48 sps:$4 sm:$0xff]  }
 0x4a8   : > { %7385 = vmatpush2.bf16.msra.mxu0 %v10028_v43  ;;  %v10123_v43 = vld [vmem:[%s10459_s19 + $0xa3c] ss:$48 sps:$4 sm:$0xff]  }
 0x4a9   : > { %7426 = vmatpush2.bf16.msra.mxu1 %v10031_v58  ;;  %7386 = vmatprep.subr.bf16.mxu0 %v10036_v7  ;;  %v10118_v58 = vld [vmem:[%s10459_s19 + $0x438] ss:$48 sps:$4 sm:$0xff]  }
 0x4aa   : > { %7427 = vmatprep.subr.bf16.mxu1 %v10039_v27  ;;  %v10121_v7 = vld [vmem:[%s10459_s19 + $0xa38] ss:$48 sps:$4 sm:$0xff]   ;;  %v10126_v27 = vld [vmem:[%s10459_s19 + $0x3dc] ss:$48 sps:$4 sm:$0xff]  }
 0x4ac   : > { %7387 = vmatpush2.bf16.msra.mxu0 %v10034_v22  ;;  %v10129_v22 = vld [vmem:[%s10459_s19 + $0x9dc] ss:$48 sps:$4 sm:$0xff]  }
 0x4ad   : > { %7428 = vmatpush2.bf16.msra.mxu1 %v10037_v28  ;;  %7388 = vmatprep.subr.bf16.mxu0 %v10042_v9  ;;  %v10124_v28 = vld [vmem:[%s10459_s19 + $0x3d8] ss:$48 sps:$4 sm:$0xff]  }
 0x4ae   : > { %7429 = vmatprep.subr.bf16.mxu1 %v10045_v10  ;;  %v10127_v9 = vld [vmem:[%s10459_s19 + $0x9d8] ss:$48 sps:$4 sm:$0xff]   ;;  %v10132_v10 = vld [vmem:[%s10459_s19 + $0x37c] ss:$48 sps:$4 sm:$0xff]  }
 0x4b0   : > { %7389 = vmatpush2.bf16.msra.mxu0 %v10040_v59  ;;  %v10135_v59 = vld [vmem:[%s10459_s19 + $0x97c] ss:$48 sps:$4 sm:$0xff]  }
 0x4b1   : > { %7430 = vmatpush2.bf16.msra.mxu1 %v10043_v24  ;;  %7440 = vmatprep.subr.bf16.mxu0 %v10048_v60  ;;  %v10130_v24 = vld [vmem:[%s10459_s19 + $0x378] ss:$48 sps:$4 sm:$0xff]  }
 0x4b2   : > { %7481 = vmatprep.subr.bf16.mxu1 %v10051_v16  ;;  %v10133_v60 = vld [vmem:[%s10459_s19 + $0x978] ss:$48 sps:$4 sm:$0xff]   ;;  %v10138_v16 = vld [vmem:[%s10459_s19 + $0x31c] ss:$48 sps:$4 sm:$0xff]  }
 0x4b3   : > { %7391 = vmatmul.mubr.bf16.vlgmr.msra.gmra.mxu0 %v12014_v20 }
 0x4b4   : > { %7432 = vmatmul.mubr.bf16.vlgmr.msra.gmra.mxu1 %v12016_v47  ;;  %7441 = vmatpush1.bf16.msra.mxu0 %v10046_v29  ;;  %v10141_v29 = vld [vmem:[%s10459_s19 + $0x91c] ss:$48 sps:$4 sm:$0xff]  }
 0x4b5   : > { %7472 = vmatprep.mubr.bf16.mxu0 %v12008_v54  ;;  %7482 = vmatpush1.bf16.msra.mxu1 %v10049_v14  ;;  %v10136_v14 = vld [vmem:[%s10459_s19 + $0x318] ss:$48 sps:$4 sm:$0xff]  }
 0x4b6   : > { %7513 = vmatprep.mubr.bf16.mxu1 %v12010_v55  ;;  %7442 = vmatprep.subr.bf16.mxu0 %v10054_v30  ;;  %v10139_v30 = vld [vmem:[%s10459_s19 + $0x918] ss:$48 sps:$4 sm:$0xff]  }
 0x4b7   : > { %7483 = vmatprep.subr.bf16.mxu1 %v10057_v25  ;;  %v10144_v25 = vld [vmem:[%s10459_s19 + $0x2c4] ss:$48 sps:$4 sm:$0xff]  }
 0x4b8   : > { %7443 = vmatpush1.bf16.msra.mxu0 %v10052_v21  ;;  %v10147_v21 = vld [vmem:[%s10459_s19 + $0x8c4] ss:$48 sps:$4 sm:$0xff]  }
 0x4b9   : > { %7484 = vmatpush1.bf16.msra.mxu1 %v10055_v50  ;;  %7444 = vmatprep.subr.bf16.mxu0 %v10060_v57  ;;  %v10142_v50 = vld [vmem:[%s10459_s19 + $0x2c0] ss:$48 sps:$4 sm:$0xff]  }
 0x4ba   : > { %7485 = vmatprep.subr.bf16.mxu1 %v10063_v31  ;;  %v10145_v57 = vld [vmem:[%s10459_s19 + $0x8c0] ss:$48 sps:$4 sm:$0xff]   ;;  %v10150_v31 = vld [vmem:[%s10459_s19 + $0x264] ss:$48 sps:$4 sm:$0xff]  }
 0x4bc   : > { %7445 = vmatpush1.bf16.msra.mxu0 %v10058_v32 }
 0x4bd   : > { %7486 = vmatpush1.bf16.msra.mxu1 %v10061_v34  ;;  %7446 = vmatprep.subr.bf16.mxu0 %v10066_v35  ;;  %v10153_v35 = vld [vmem:[%s10459_s19 + $0x864] ss:$48 sps:$4 sm:$0xff]  }
 0x4be   : > { %7487 = vmatprep.subr.bf16.mxu1 %v10069_v36 }
 0x4c0   : > { %7447 = vmatpush1.bf16.msra.mxu0 %v10064_v37  ;;  %v10148_v37 = vld [vmem:[%s10459_s19 + $0x260] ss:$48 sps:$4 sm:$0xff]  }
 0x4c1   : > { %7488 = vmatpush1.bf16.msra.mxu1 %v10067_v38  ;;  %7448 = vmatprep.subr.bf16.mxu0 %v10072_v40 }
 0x4c2   : > { %7489 = vmatprep.subr.bf16.mxu1 %v10075_v44  ;;  %v10151_v44 = vld [vmem:[%s10459_s19 + $0x860] ss:$48 sps:$4 sm:$0xff]  }
 0x4c4   : > { %7449 = vmatpush1.bf16.msra.mxu0 %v10070_v45  ;;  %v10156_v45 = vld [vmem:[%s10459_s19 + $0x204] ss:$48 sps:$4 sm:$0xff]  }
 0x4c5   : > { %7490 = vmatpush1.bf16.msra.mxu1 %v10073_v46  ;;  %7450 = vmatprep.subr.bf16.mxu0 %v10078_v48  ;;  %v10159_v48 = vld [vmem:[%s10459_s19 + $0x804] ss:$48 sps:$4 sm:$0xff]  }
 0x4c6   : > { %7491 = vmatprep.subr.bf16.mxu1 %v10081_v49 }
 0x4c8   : > { %7451 = vmatpush1.bf16.msra.mxu0 %v10076_v23 }
 0x4c9   : > { %7492 = vmatpush1.bf16.msra.mxu1 %v10079_v53  ;;  %7452 = vmatprep.subr.bf16.mxu0 %v10084_v56  ;;  %v10154_v56 = vld [vmem:[%s10459_s19 + $0x200] ss:$48 sps:$4 sm:$0xff]  }
 0x4ca   : > { %7493 = vmatprep.subr.bf16.mxu1 %v10087_v11 }
 0x4cc   : > { %7453 = vmatpush1.bf16.msra.mxu0 %v10082_v61 }
 0x4cd   : > { %7494 = vmatpush1.bf16.msra.mxu1 %v10085_v12  ;;  %7454 = vmatprep.subr.bf16.mxu0 %v10090_v62  ;;  %v10157_v12 = vld [vmem:[%s10459_s19 + $0x800] ss:$48 sps:$4 sm:$0xff]   ;;  %v10162_v62 = vld [vmem:[%s10459_s19 + $0x1a4] ss:$48 sps:$4 sm:$0xff]  }
 0x4ce   : > { %7495 = vmatprep.subr.bf16.mxu1 %v10093_v63  ;;  %v10165_v63 = vld [vmem:[%s10459_s19 + $0x7a4] ss:$48 sps:$4 sm:$0xff]  }
 0x4d0   : > { %7455 = vmatpush1.bf16.msra.mxu0 %v10088_v51  ;;  %v10160_v51 = vld [vmem:[%s10459_s19 + $0x1a0] ss:$48 sps:$4 sm:$0xff]  }
 0x4d1   : > { %7496 = vmatpush1.bf16.msra.mxu1 %v10091_v19  ;;  %7456 = vmatprep.subr.bf16.mxu0 %v10096_v26  ;;  %v10163_v19 = vld [vmem:[%s10459_s19 + $0x7a0] ss:$48 sps:$4 sm:$0xff]   ;;  %v10168_v26 = vld [vmem:[%s10459_s19 + $0x144] ss:$48 sps:$4 sm:$0xff]  }
 0x4d2   : > { %7497 = vmatprep.subr.bf16.mxu1 %v10099_v18  ;;  %v10171_v18 = vld [vmem:[%s10459_s19 + $0x744] ss:$48 sps:$4 sm:$0xff]  }
 0x4d4   : > { %7457 = vmatpush2.bf16.msra.mxu0 %v10094_v13  ;;  %v10166_v13 = vld [vmem:[%s10459_s19 + $0x140] ss:$48 sps:$4 sm:$0xff]  }
 0x4d5   : > { %7498 = vmatpush2.bf16.msra.mxu1 %v10097_v0  ;;  %7458 = vmatprep.subr.bf16.mxu0 %v10102_v1  ;;  %v10169_v0 = vld [vmem:[%s10459_s19 + $0x740] ss:$48 sps:$4 sm:$0xff]   ;;  %v10174_v1 = vld [vmem:[%s10459_s19 + $0xe4] ss:$48 sps:$4 sm:$0xff]  }
 0x4d6   : > { %7499 = vmatprep.subr.bf16.mxu1 %v10105_v39  ;;  %v10177_v39 = vld [vmem:[%s10459_s19 + $0x6e4] ss:$48 sps:$4 sm:$0xff]  }
 0x4d8   : > { %7459 = vmatpush2.bf16.msra.mxu0 %v10100_v2  ;;  %v10172_v2 = vld [vmem:[%s10459_s19 + $0xe0] ss:$48 sps:$4 sm:$0xff]  }
 0x4d9   : > { %7500 = vmatpush2.bf16.msra.mxu1 %v10103_v3  ;;  %7460 = vmatprep.subr.bf16.mxu0 %v10108_v41  ;;  %v10175_v3 = vld [vmem:[%s10459_s19 + $0x6e0] ss:$48 sps:$4 sm:$0xff]   ;;  %v10180_v41 = vld [vmem:[%s10459_s19 + $0x84] ss:$48 sps:$4 sm:$0xff]  }
 0x4da   : > { %7501 = vmatprep.subr.bf16.mxu1 %v10111_v4  ;;  %v10183_v4 = vld [vmem:[%s10459_s19 + $0x684] ss:$48 sps:$4 sm:$0xff]  }
 0x4dc   : > { %7461 = vmatpush2.bf16.msra.mxu0 %v10106_v5  ;;  %v10178_v5 = vld [vmem:[%s10459_s19 + $0x80] ss:$48 sps:$4 sm:$0xff]  }
 0x4dd   : > { %7502 = vmatpush2.bf16.msra.mxu1 %v10109_v6  ;;  %7462 = vmatprep.subr.bf16.mxu0 %v10114_v8  ;;  %v10181_v6 = vld [vmem:[%s10459_s19 + $0x680] ss:$48 sps:$4 sm:$0xff]   ;;  %v10186_v8 = vld [vmem:[%s10459_s19 + $0x24] ss:$48 sps:$4 sm:$0xff]  }
 0x4de   : > { %7503 = vmatprep.subr.bf16.mxu1 %v10117_v42  ;;  %v10189_v42 = vld [vmem:[%s10459_s19 + $0x624] ss:$48 sps:$4 sm:$0xff]  }
 0x4e0   : > { %7463 = vmatpush2.bf16.msra.mxu0 %v10112_v52  ;;  %v10184_v52 = vld [vmem:[%s10459_s19 + $0x20] ss:$48 sps:$4 sm:$0xff]  }
 0x4e1   : > { %7504 = vmatpush2.bf16.msra.mxu1 %v10115_v15  ;;  %7464 = vmatprep.subr.bf16.mxu0 %v10120_v17  ;;  %v10187_v15 = vld [vmem:[%s10459_s19 + $0x620] ss:$48 sps:$4 sm:$0xff]   ;;  %v10192_v17 = vld [vmem:[%s10459_s19 + $0x5c4] ss:$48 sps:$4 sm:$0xff]  }
 0x4e2   : > { %7505 = vmatprep.subr.bf16.mxu1 %v10123_v43  ;;  %v10195_v43 = vld [vmem:[%s10459_s19 + $0xbc4] ss:$48 sps:$4 sm:$0xff]  }
 0x4e4   : > { %7465 = vmatpush2.bf16.msra.mxu0 %v10118_v58  ;;  %v10190_v58 = vld [vmem:[%s10459_s19 + $0x5c0] ss:$48 sps:$4 sm:$0xff]  }
 0x4e5   : > { %7506 = vmatpush2.bf16.msra.mxu1 %v10121_v7  ;;  %7466 = vmatprep.subr.bf16.mxu0 %v10126_v27  ;;  %v10193_v7 = vld [vmem:[%s10459_s19 + $0xbc0] ss:$48 sps:$4 sm:$0xff]   ;;  %v10198_v27 = vld [vmem:[%s10459_s19 + $0x564] ss:$48 sps:$4 sm:$0xff]  }
 0x4e6   : > { %7507 = vmatprep.subr.bf16.mxu1 %v10129_v22  ;;  %v10201_v22 = vld [vmem:[%s10459_s19 + $0xb64] ss:$48 sps:$4 sm:$0xff]  }
 0x4e8   : > { %7467 = vmatpush2.bf16.msra.mxu0 %v10124_v28  ;;  %v10196_v28 = vld [vmem:[%s10459_s19 + $0x560] ss:$48 sps:$4 sm:$0xff]  }
 0x4e9   : > { %7508 = vmatpush2.bf16.msra.mxu1 %v10127_v9  ;;  %7468 = vmatprep.subr.bf16.mxu0 %v10132_v10  ;;  %v10199_v9 = vld [vmem:[%s10459_s19 + $0xb60] ss:$48 sps:$4 sm:$0xff]   ;;  %v10204_v10 = vld [vmem:[%s10459_s19 + $0x504] ss:$48 sps:$4 sm:$0xff]  }
 0x4ea   : > { %7509 = vmatprep.subr.bf16.mxu1 %v10135_v59  ;;  %v10207_v59 = vld [vmem:[%s10459_s19 + $0xb04] ss:$48 sps:$4 sm:$0xff]  }
 0x4ec   : > { %7469 = vmatpush2.bf16.msra.mxu0 %v10130_v24  ;;  %v10202_v24 = vld [vmem:[%s10459_s19 + $0x500] ss:$48 sps:$4 sm:$0xff]  }
 0x4ed   : > { %7510 = vmatpush2.bf16.msra.mxu1 %v10133_v60  ;;  %7470 = vmatprep.subr.bf16.mxu0 %v10138_v16  ;;  %v10205_v60 = vld [vmem:[%s10459_s19 + $0xb00] ss:$48 sps:$4 sm:$0xff]   ;;  %v10210_v16 = vld [vmem:[%s10459_s19 + $0x4a4] ss:$48 sps:$4 sm:$0xff]  }
 0x4ee   : > { %7511 = vmatprep.subr.bf16.mxu1 %v10141_v29  ;;  %v10213_v29 = vld [vmem:[%s10459_s19 + $0xaa4] ss:$48 sps:$4 sm:$0xff]  }
 0x4f0   : > { %7471 = vmatpush2.bf16.msra.mxu0 %v10136_v14  ;;  %v10208_v14 = vld [vmem:[%s10459_s19 + $0x4a0] ss:$48 sps:$4 sm:$0xff]  }
 0x4f1   : > { %7512 = vmatpush2.bf16.msra.mxu1 %v10139_v30  ;;  %7522 = vmatprep.subr.bf16.mxu0 %v10144_v25  ;;  %v10211_v30 = vld [vmem:[%s10459_s19 + $0xaa0] ss:$48 sps:$4 sm:$0xff]   ;;  %v10216_v25 = vld [vmem:[%s10459_s19 + $0x444] ss:$48 sps:$4 sm:$0xff]  }
 0x4f2   : > { %7563 = vmatprep.subr.bf16.mxu1 %v10147_v21  ;;  %v10219_v21 = vld [vmem:[%s10459_s19 + $0xa44] ss:$48 sps:$4 sm:$0xff]  }
 0x4f3   : > { %7473 = vmatmul.mubr.bf16.vlgmr.msra.gmra.mxu0 %v12014_v20  ;;  %v7228_v32 = vpop.f32.mrf.mxu0  ;;  %v7269_v34 = vpop.f32.mrf.mxu1 }
 0x4f4   : > { %7514 = vmatmul.mubr.bf16.vlgmr.msra.gmra.mxu1 %v12016_v47  ;;  %v12228_v36 = vadd.f32 %v7269_v34, %v7228_v32  ;;  %7523 = vmatpush1.bf16.msra.mxu0 %v10142_v50  ;;  %v10214_v50 = vld [vmem:[%s10459_s19 + $0x440] ss:$48 sps:$4 sm:$0xff]   ;;  %v10225_v32 = vld [vmem:[%s10459_s19 + $0x9e4] ss:$48 sps:$4 sm:$0xff]  }
 0x4f5   : > { %7554 = vmatprep.mubr.bf16.mxu0 %v12008_v54  ;;  %7564 = vmatpush1.bf16.msra.mxu1 %v10145_v57  ;;  %v7230_v38 = vpop.f32.mrf.mxu0  ;;  %v7271_v40 = vpop.f32.mrf.mxu1  ;;  %v10217_v57 = vld [vmem:[%s10459_s19 + $0xa40] ss:$48 sps:$4 sm:$0xff]  }
 0x4f6   : > { %7595 = vmatprep.mubr.bf16.mxu1 %v12010_v55  ;;  %v12235_v46 = vadd.f32 %v7271_v40, %v7230_v38  ;;  %7524 = vmatprep.subr.bf16.mxu0 %v10150_v31  ;;  %v10222_v31 = vld [vmem:[%s10459_s19 + $0x3e4] ss:$48 sps:$4 sm:$0xff]   ;;  %v10220_v34 = vld [vmem:[%s10459_s19 + $0x3e0] ss:$48 sps:$4 sm:$0xff]  }
 0x4f7   : > { %7565 = vmatprep.subr.bf16.mxu1 %v10153_v35  ;;  %v7232_v49 = vpop.f32.mrf.mxu0  ;;  %v7273_v23 = vpop.f32.mrf.mxu1  ;;  %v10223_v35 = vld [vmem:[%s10459_s19 + $0x9e0] ss:$48 sps:$4 sm:$0xff]   ;;  %v10231_v38 = vld [vmem:[%s10459_s19 + $0x984] ss:$48 sps:$4 sm:$0xff]  }
 0x4f8   : > { %v7698_v53 = vcombine.low %v12228_v36, %v12235_v46  ;;  %7525 = vmatpush1.bf16.msra.mxu0 %v10148_v37  ;;  %v10228_v37 = vld [vmem:[%s10459_s19 + $0x384] ss:$48 sps:$4 sm:$0xff]   ;;  %v10226_v40 = vld [vmem:[%s10459_s19 + $0x380] ss:$48 sps:$4 sm:$0xff]   ;;  %v10267_v46 = vld [vmem:[%s10459_s19 + $0x74c] ss:$48 sps:$4 sm:$0xff]  }
 0x4f9   : > { %7566 = vmatpush1.bf16.msra.mxu1 %v10151_v44  ;;  %v7233_v11 = vpop.f32.mrf.mxu0  ;;  %v7274_v61 = vpop.f32.mrf.mxu1  ;;  %7526 = vmatprep.subr.bf16.mxu0 %v10156_v45  ;;  %v10229_v44 = vld [vmem:[%s10459_s19 + $0x980] ss:$48 sps:$4 sm:$0xff]   ;;  %v10234_v45 = vld [vmem:[%s10459_s19 + $0x324] ss:$48 sps:$4 sm:$0xff]  }
 0x4fa   : > { %7567 = vmatprep.subr.bf16.mxu1 %v10159_v48  ;;  %v10237_v48 = vld [vmem:[%s10459_s19 + $0x924] ss:$48 sps:$4 sm:$0xff]   ;;  %v10232_v49 = vld [vmem:[%s10459_s19 + $0x320] ss:$48 sps:$4 sm:$0xff]   ;;  %v10376_v11 = vmov 1983009808  }
 0x4fb   : > { %v10235_v23 = vld [vmem:[%s10459_s19 + $0x920] ss:$48 sps:$4 sm:$0xff]   ;;  %v7701_v61 = vunpack.c.l.s4 %v10376_v11  ;;  %v10301_v11 = vld [vmem:[%s10459_s19 + $0xb08] ss:$48 sps:$4 sm:$0xff]  }
 0x4fc   : > { %7527 = vmatpush1.bf16.msra.mxu0 %v10154_v56  ;;  %v10240_v56 = vld [vmem:[%s10459_s19 + $0x2cc] ss:$48 sps:$4 sm:$0xff]  }
 0x4fd   : > { %7568 = vmatpush1.bf16.msra.mxu1 %v10157_v12  ;;  %7528 = vmatprep.subr.bf16.mxu0 %v10162_v62  ;;  %v10243_v12 = vld [vmem:[%s10459_s19 + $0x8cc] ss:$48 sps:$4 sm:$0xff]   ;;  %v10238_v62 = vld [vmem:[%s10459_s19 + $0x2c8] ss:$48 sps:$4 sm:$0xff]  }
 0x4fe   : > { %7569 = vmatprep.subr.bf16.mxu1 %v10165_v63  ;;  %v10241_v63 = vld [vmem:[%s10459_s19 + $0x8c8] ss:$48 sps:$4 sm:$0xff]  }
 0x500   : > { %7529 = vmatpush1.bf16.msra.mxu0 %v10160_v51  ;;  %v7702_v51 = vunpack.c.0.s8 %v7701_v61  ;;  %v10306_v61 = vld [vmem:[%s10459_s19 + $0x4ac] ss:$48 sps:$4 sm:$0xff]  }
 0x501   : > { %7570 = vmatpush1.bf16.msra.mxu1 %v10163_v19  ;;  %7530 = vmatprep.subr.bf16.mxu0 %v10168_v26  ;;  %v10246_v19 = vld [vmem:[%s10459_s19 + $0x26c] ss:$48 sps:$4 sm:$0xff]  }
 0x502   : > { %7571 = vmatprep.subr.bf16.mxu1 %v10171_v18 }
 0x504   : > { %7531 = vmatpush1.bf16.msra.mxu0 %v10166_v13  ;;  %v10249_v13 = vld [vmem:[%s10459_s19 + $0x86c] ss:$48 sps:$4 sm:$0xff]  }
 0x505   : > { %7572 = vmatpush1.bf16.msra.mxu1 %v10169_v0  ;;  %7532 = vmatprep.subr.bf16.mxu0 %v10174_v1  ;;  %v10244_v0 = vld [vmem:[%s10459_s19 + $0x268] ss:$48 sps:$4 sm:$0xff]  }
 0x506   : > { %7573 = vmatprep.subr.bf16.mxu1 %v10177_v39 }
 0x508   : > { %7533 = vmatpush1.bf16.msra.mxu0 %v10172_v2  ;;  %v10247_v2 = vld [vmem:[%s10459_s19 + $0x868] ss:$48 sps:$4 sm:$0xff]  }
 0x509   : > { %7574 = vmatpush1.bf16.msra.mxu1 %v10175_v3  ;;  %7534 = vmatprep.subr.bf16.mxu0 %v10180_v41  ;;  %v10252_v3 = vld [vmem:[%s10459_s19 + $0x20c] ss:$48 sps:$4 sm:$0xff]   ;;  %v12307_v41 = vsub.s32 %v7702_v51, %v11997_v33 }
 0x50a   : > { %7575 = vmatprep.subr.bf16.mxu1 %v10183_v4  ;;  %v10312_v51 = vld [vmem:[%s10459_s19 + $0x44c] ss:$48 sps:$4 sm:$0xff]  }
 0x50c   : > { %7535 = vmatpush1.bf16.msra.mxu0 %v10178_v5 }
 0x50d   : > { %7576 = vmatpush1.bf16.msra.mxu1 %v10181_v6  ;;  %7536 = vmatprep.subr.bf16.mxu0 %v10186_v8  ;;  %v10255_v6 = vld [vmem:[%s10459_s19 + $0x80c] ss:$48 sps:$4 sm:$0xff]  }
 0x50e   : > { %7577 = vmatprep.subr.bf16.mxu1 %v10189_v42 }
 0x510   : > { %7537 = vmatpush1.bf16.msra.mxu0 %v10184_v52  ;;  %v10250_v52 = vld [vmem:[%s10459_s19 + $0x208] ss:$48 sps:$4 sm:$0xff]  }
 0x511   : > { %7578 = vmatpush1.bf16.msra.mxu1 %v10187_v15  ;;  %7538 = vmatprep.subr.bf16.mxu0 %v10192_v17  ;;  %v10253_v17 = vld [vmem:[%s10459_s19 + $0x808] ss:$48 sps:$4 sm:$0xff]  }
 0x512   : > { %7579 = vmatprep.subr.bf16.mxu1 %v10195_v43  ;;  %v7706_v43 = vrot.slane %v7698_v53, %v12307_v41  ;;  %v10262_v53 = vld [vmem:[%s10459_s19 + $0x148] ss:$48 sps:$4 sm:$0xff]  }
 0x514   : > { %7539 = vmatpush2.bf16.msra.mxu0 %v10190_v58 }
 0x515   : > { %7580 = vmatpush2.bf16.msra.mxu1 %v10193_v7  ;;  %7540 = vmatprep.subr.bf16.mxu0 %v10198_v27  ;;  %v10261_v7 = vld [vmem:[%s10459_s19 + $0x7ac] ss:$48 sps:$4 sm:$0xff]   ;;  %v4887_v27 = vld [vmem:[%s10464_s29] sm:$0xff] }
 0x516   : > { %7581 = vmatprep.subr.bf16.mxu1 %v10201_v22 }
 0x518   : > { %7541 = vmatpush2.bf16.msra.mxu0 %v10196_v28  ;;  %v10256_v28 = vld [vmem:[%s10459_s19 + $0x1a8] ss:$48 sps:$4 sm:$0xff]  }
 0x519   : > { %7582 = vmatpush2.bf16.msra.mxu1 %v10199_v9  ;;  %7542 = vmatprep.subr.bf16.mxu0 %v10204_v10  ;;  %v10259_v9 = vld [vmem:[%s10459_s19 + $0x7a8] ss:$48 sps:$4 sm:$0xff]   ;;  %v10264_v10 = vld [vmem:[%s10459_s19 + $0x14c] ss:$48 sps:$4 sm:$0xff]  }
 0x51a   : > { %7583 = vmatprep.subr.bf16.mxu1 %v10207_v59  ;;  %v10265_v59 = vld [vmem:[%s10459_s19 + $0x748] ss:$48 sps:$4 sm:$0xff]  }
 0x51c   : > { %7543 = vmatpush2.bf16.msra.mxu0 %v10202_v24  ;;  %v10270_v24 = vld [vmem:[%s10459_s19 + $0xec] ss:$48 sps:$4 sm:$0xff]  }
 0x51d   : > { %7584 = vmatpush2.bf16.msra.mxu1 %v10205_v60  ;;  %7544 = vmatprep.subr.bf16.mxu0 %v10210_v16  ;;  %v10273_v60 = vld [vmem:[%s10459_s19 + $0x6ec] ss:$48 sps:$4 sm:$0xff]   ;;  %v10268_v16 = vld [vmem:[%s10459_s19 + $0xe8] ss:$48 sps:$4 sm:$0xff]  }
 0x51e   : > { %7585 = vmatprep.subr.bf16.mxu1 %v10213_v29  ;;  %v10271_v29 = vld [vmem:[%s10459_s19 + $0x6e8] ss:$48 sps:$4 sm:$0xff]  }
 0x520   : > { %7545 = vmatpush2.bf16.msra.mxu0 %v10208_v14  ;;  %v10276_v14 = vld [vmem:[%s10459_s19 + $0x8c] ss:$48 sps:$4 sm:$0xff]  }
 0x521   : > { %7586 = vmatpush2.bf16.msra.mxu1 %v10211_v30  ;;  %7546 = vmatprep.subr.bf16.mxu0 %v10216_v25  ;;  %v10279_v30 = vld [vmem:[%s10459_s19 + $0x68c] ss:$48 sps:$4 sm:$0xff]   ;;  %v10274_v25 = vld [vmem:[%s10459_s19 + $0x88] ss:$48 sps:$4 sm:$0xff]  }
 0x522   : > { %7587 = vmatprep.subr.bf16.mxu1 %v10219_v21  ;;  %v10277_v21 = vld [vmem:[%s10459_s19 + $0x688] ss:$48 sps:$4 sm:$0xff]  }
 0x524   : > { %7547 = vmatpush2.bf16.msra.mxu0 %v10214_v50  ;;  %v10282_v50 = vld [vmem:[%s10459_s19 + $0x2c] ss:$48 sps:$4 sm:$0xff]  }
 0x525   : > { %7588 = vmatpush2.bf16.msra.mxu1 %v10217_v57  ;;  %7548 = vmatprep.subr.bf16.mxu0 %v10222_v31  ;;  %v10285_v57 = vld [vmem:[%s10459_s19 + $0x62c] ss:$48 sps:$4 sm:$0xff]   ;;  %v10280_v31 = vld [vmem:[%s10459_s19 + $0x28] ss:$48 sps:$4 sm:$0xff]  }
 0x526   : > { %7589 = vmatprep.subr.bf16.mxu1 %v10225_v32  ;;  %v10283_v32 = vld [vmem:[%s10459_s19 + $0x628] ss:$48 sps:$4 sm:$0xff]  }
 0x528   : > { %7549 = vmatpush2.bf16.msra.mxu0 %v10220_v34  ;;  %v10288_v34 = vld [vmem:[%s10459_s19 + $0x5cc] ss:$48 sps:$4 sm:$0xff]  }
 0x529   : > { %7590 = vmatpush2.bf16.msra.mxu1 %v10223_v35  ;;  %7550 = vmatprep.subr.bf16.mxu0 %v10228_v37  ;;  %v10291_v35 = vld [vmem:[%s10459_s19 + $0xbcc] ss:$48 sps:$4 sm:$0xff]   ;;  %v10286_v37 = vld [vmem:[%s10459_s19 + $0x5c8] ss:$48 sps:$4 sm:$0xff]  }
 0x52a   : > { %7591 = vmatprep.subr.bf16.mxu1 %v10231_v38  ;;  %v10289_v38 = vld [vmem:[%s10459_s19 + $0xbc8] ss:$48 sps:$4 sm:$0xff]  }
 0x52c   : > { %7551 = vmatpush2.bf16.msra.mxu0 %v10226_v40  ;;  %v10294_v40 = vld [vmem:[%s10459_s19 + $0x56c] ss:$48 sps:$4 sm:$0xff]  }
 0x52d   : > { %7592 = vmatpush2.bf16.msra.mxu1 %v10229_v44  ;;  %7552 = vmatprep.subr.bf16.mxu0 %v10234_v45  ;;  %v10297_v44 = vld [vmem:[%s10459_s19 + $0xb6c] ss:$48 sps:$4 sm:$0xff]   ;;  %v10292_v45 = vld [vmem:[%s10459_s19 + $0x568] ss:$48 sps:$4 sm:$0xff]  }
 0x52e   : > { %7593 = vmatprep.subr.bf16.mxu1 %v10237_v48  ;;  %v10295_v48 = vld [vmem:[%s10459_s19 + $0xb68] ss:$48 sps:$4 sm:$0xff]  }
 0x530   : > { %7553 = vmatpush2.bf16.msra.mxu0 %v10232_v49  ;;  %v10300_v49 = vld [vmem:[%s10459_s19 + $0x50c] ss:$48 sps:$4 sm:$0xff]  }
 0x531   : > { %7594 = vmatpush2.bf16.msra.mxu1 %v10235_v23  ;;  %7604 = vmatprep.subr.bf16.mxu0 %v10240_v56  ;;  %v10303_v23 = vld [vmem:[%s10459_s19 + $0xb0c] ss:$48 sps:$4 sm:$0xff]   ;;  %v10298_v56 = vld [vmem:[%s10459_s19 + $0x508] ss:$48 sps:$4 sm:$0xff]  }
 0x532   : > { %7645 = vmatprep.subr.bf16.mxu1 %v10243_v12  ;;  %v10309_v12 = vld [vmem:[%s10459_s19 + $0xaac] ss:$48 sps:$4 sm:$0xff]  }
 0x533   : > { %v7310_v26 = vpop.f32.mrf.mxu0  ;;  %v7351_v18 = vpop.f32.mrf.mxu1  ;;  %7555 = vmatmul.mubr.bf16.vlgmr.msra.gmra.mxu0 %v12014_v20 }
 0x534   : > { %7596 = vmatmul.mubr.bf16.vlgmr.msra.gmra.mxu1 %v12016_v47  ;;  %7605 = vmatpush1.bf16.msra.mxu0 %v10238_v62  ;;  %v7352_v4 = vadd.f32 %v7351_v18, %v7310_v26  ;;  %v10304_v62 = vld [vmem:[%s10459_s19 + $0x4a8] ss:$48 sps:$4 sm:$0xff]  }
 0x535   : > { %7636 = vmatprep.mubr.bf16.mxu0 %v12008_v54  ;;  %7646 = vmatpush1.bf16.msra.mxu1 %v10241_v63  ;;  %v7312_v1 = vpop.f32.mrf.mxu0  ;;  %v7353_v39 = vpop.f32.mrf.mxu1  ;;  %v10307_v63 = vld [vmem:[%s10459_s19 + $0xaa8] ss:$48 sps:$4 sm:$0xff]  }
 0x536   : > { %7677 = vmatprep.mubr.bf16.mxu1 %v12010_v55  ;;  %v7354_v5 = vadd.f32 %v7353_v39, %v7312_v1  ;;  %7606 = vmatprep.subr.bf16.mxu0 %v10246_v19  ;;  %v10258_v55 = vld [vmem:[%s10459_s19 + $0x1ac] ss:$48 sps:$4 sm:$0xff]   ;;  %v10310_v26 = vld [vmem:[%s10459_s19 + $0x448] ss:$48 sps:$4 sm:$0xff]  }
 0x537   : > { %v7314_v8 = vpop.f32.mrf.mxu0  ;;  %v7355_v54 = vpop.f32.mrf.mxu1  ;;  %7647 = vmatprep.subr.bf16.mxu1 %v10249_v13  ;;  %v10315_v19 = vld [vmem:[%s10459_s19 + $0xa4c] ss:$48 sps:$4 sm:$0xff]   ;;  %v10313_v18 = vld [vmem:[%s10459_s19 + $0xa48] ss:$48 sps:$4 sm:$0xff]  }
 0x538   : > { %v7699_v42 = vcombine.low %v7352_v4, %v7354_v5  ;;  %7607 = vmatpush1.bf16.msra.mxu0 %v10244_v0  ;;  %v10318_v13 = vld [vmem:[%s10459_s19 + $0x3ec] ss:$48 sps:$4 sm:$0xff]   ;;  %v10316_v1 = vld [vmem:[%s10459_s19 + $0x3e8] ss:$48 sps:$4 sm:$0xff]  }
 0x539   : > { %7648 = vmatpush1.bf16.msra.mxu1 %v10247_v2  ;;  %v7315_v33 = vpop.f32.mrf.mxu0  ;;  %v7356_v15 = vpop.f32.mrf.mxu1  ;;  %7608 = vmatprep.subr.bf16.mxu0 %v10252_v3  ;;  %v10321_v0 = vld [vmem:[%s10459_s19 + $0x9ec] ss:$48 sps:$4 sm:$0xff]   ;;  %v10319_v39 = vld [vmem:[%s10459_s19 + $0x9e8] ss:$48 sps:$4 sm:$0xff]  }
 0x53a   : > { %v7713_v58 = vrot.slane %v7699_v42, %v12307_v41  ;;  %7649 = vmatprep.subr.bf16.mxu1 %v10255_v6  ;;  %v10324_v2 = vld [vmem:[%s10459_s19 + $0x38c] ss:$48 sps:$4 sm:$0xff]   ;;  %v10322_v4 = vld [vmem:[%s10459_s19 + $0x388] ss:$48 sps:$4 sm:$0xff]  }
 0x53b   : > { %v10327_v3 = vld [vmem:[%s10459_s19 + $0x98c] ss:$48 sps:$4 sm:$0xff]   ;;  %v10325_v5 = vld [vmem:[%s10459_s19 + $0x988] ss:$48 sps:$4 sm:$0xff]  }
 0x53c   : > { %v7714_v22 = vcombine.low %v7706_v43, %v7713_v58  ;;  %7609 = vmatpush1.bf16.msra.mxu0 %v10250_v52  ;;  %v10330_v6 = vld [vmem:[%s10459_s19 + $0x32c] ss:$48 sps:$4 sm:$0xff]   ;;  %v10328_v54 = vld [vmem:[%s10459_s19 + $0x328] ss:$48 sps:$4 sm:$0xff]  }
 0x53d   : > { %7650 = vmatpush1.bf16.msra.mxu1 %v10253_v17  ;;  %7610 = vmatprep.subr.bf16.mxu0 %v10258_v55  ;;  %v10333_v8 = vld [vmem:[%s10459_s19 + $0x92c] ss:$48 sps:$4 sm:$0xff]   ;;  %v10331_v42 = vld [vmem:[%s10459_s19 + $0x928] ss:$48 sps:$4 sm:$0xff]  }
 0x53e   : > { %v7752_v36 = vadd.f32 %v7714_v22, %v4887_v27  ;;  %7651 = vmatprep.subr.bf16.mxu1 %v10261_v7 }
 0x540   : > { %7755 = vst [vmem:[%s10464_s29] sm:$0xff] %v7752_v36  ;;  %7611 = vmatpush1.bf16.msra.mxu0 %v10256_v28 }
 0x541   : > { %7652 = vmatpush1.bf16.msra.mxu1 %v10259_v9  ;;  %7612 = vmatprep.subr.bf16.mxu0 %v10264_v10 }
 0x542   : > { %7653 = vmatprep.subr.bf16.mxu1 %v10267_v46 }
 0x544   : > { %7613 = vmatpush1.bf16.msra.mxu0 %v10262_v53 }
 0x545   : > { %7654 = vmatpush1.bf16.msra.mxu1 %v10265_v59  ;;  %7614 = vmatprep.subr.bf16.mxu0 %v10270_v24 }
 0x546   : > { %7655 = vmatprep.subr.bf16.mxu1 %v10273_v60 }
 0x548   : > { %7615 = vmatpush1.bf16.msra.mxu0 %v10268_v16 }
 0x549   : > { %7656 = vmatpush1.bf16.msra.mxu1 %v10271_v29  ;;  %7616 = vmatprep.subr.bf16.mxu0 %v10276_v14 }
 0x54a   : > { %7657 = vmatprep.subr.bf16.mxu1 %v10279_v30  ;;  %v4888_v30 = vld [vmem:[%s10464_s29 + $0x8] sm:$0xff] }
 0x54c   : > { %7617 = vmatpush1.bf16.msra.mxu0 %v10274_v25 }
 0x54d   : > { %7658 = vmatpush1.bf16.msra.mxu1 %v10277_v21  ;;  %7618 = vmatprep.subr.bf16.mxu0 %v10282_v50 }
 0x54e   : > { %7659 = vmatprep.subr.bf16.mxu1 %v10285_v57 }
 0x550   : > { %7619 = vmatpush1.bf16.msra.mxu0 %v10280_v31 }
 0x551   : > { %7660 = vmatpush1.bf16.msra.mxu1 %v10283_v32  ;;  %7620 = vmatprep.subr.bf16.mxu0 %v10288_v34 }
 0x552   : > { %7661 = vmatprep.subr.bf16.mxu1 %v10291_v35 }
 0x554   : > { %7621 = vmatpush2.bf16.msra.mxu0 %v10286_v37 }
 0x555   : > { %7662 = vmatpush2.bf16.msra.mxu1 %v10289_v38  ;;  %7622 = vmatprep.subr.bf16.mxu0 %v10294_v40 }
 0x556   : > { %7663 = vmatprep.subr.bf16.mxu1 %v10297_v44 }
 0x558   : > { %7623 = vmatpush2.bf16.msra.mxu0 %v10292_v45 }
 0x559   : > { %7664 = vmatpush2.bf16.msra.mxu1 %v10295_v48  ;;  %7624 = vmatprep.subr.bf16.mxu0 %v10300_v49 }
 0x55a   : > { %7665 = vmatprep.subr.bf16.mxu1 %v10303_v23 }
 0x55c   : > { %7625 = vmatpush2.bf16.msra.mxu0 %v10298_v56 }
 0x55d   : > { %7666 = vmatpush2.bf16.msra.mxu1 %v10301_v11  ;;  %7626 = vmatprep.subr.bf16.mxu0 %v10306_v61 }
 0x55e   : > { %7667 = vmatprep.subr.bf16.mxu1 %v10309_v12 }
 0x560   : > { %7627 = vmatpush2.bf16.msra.mxu0 %v10304_v62 }
 0x561   : > { %7668 = vmatpush2.bf16.msra.mxu1 %v10307_v63  ;;  %7628 = vmatprep.subr.bf16.mxu0 %v10312_v51 }
 0x562   : > { %7669 = vmatprep.subr.bf16.mxu1 %v10315_v19 }
 0x564   : > { %7629 = vmatpush2.bf16.msra.mxu0 %v10310_v26 }
 0x565   : > { %7670 = vmatpush2.bf16.msra.mxu1 %v10313_v18  ;;  %7630 = vmatprep.subr.bf16.mxu0 %v10318_v13  ;;  %v4889_v13 = vld [vmem:[%s10464_s29 + $0x10] sm:$0xff] }
 0x566   : > { %7671 = vmatprep.subr.bf16.mxu1 %v10321_v0 }
 0x568   : > { %7631 = vmatpush2.bf16.msra.mxu0 %v10316_v1 }
 0x569   : > { %7672 = vmatpush2.bf16.msra.mxu1 %v10319_v39  ;;  %7632 = vmatprep.subr.bf16.mxu0 %v10324_v2 }
 0x56a   : > { %7673 = vmatprep.subr.bf16.mxu1 %v10327_v3 }
 0x56c   : > { %7633 = vmatpush2.bf16.msra.mxu0 %v10322_v4 }
 0x56d   : > { %7674 = vmatpush2.bf16.msra.mxu1 %v10325_v5  ;;  %7634 = vmatprep.subr.bf16.mxu0 %v10330_v6 }
 0x56e   : > { %7675 = vmatprep.subr.bf16.mxu1 %v10333_v8 }
 0x570   : > { %7635 = vmatpush2.bf16.msra.mxu0 %v10328_v54 }
 0x571   : > { %7676 = vmatpush2.bf16.msra.mxu1 %v10331_v42 }
 0x573   : > { %v7392_v52 = vpop.f32.mrf.mxu0  ;;  %7637 = vmatmul.mubr.bf16.vlgmr.msra.gmra.mxu0 %v12014_v20 }
 0x574   : > { %v7433_v33 = vpop.f32.mrf.mxu1  ;;  %7678 = vmatmul.mubr.bf16.vlgmr.msra.gmra.mxu1 %v12016_v47 }
 0x575   : > { %v7434_v15 = vadd.f32 %v7433_v33, %v7392_v52  ;;  %v7394_v17 = vpop.f32.mrf.mxu0 }
 0x576   : > { %v7435_v55 = vpop.f32.mrf.mxu1 }
 0x577   : > { %v7436_v43 = vadd.f32 %v7435_v55, %v7394_v17  ;;  %v7396_v58 = vpop.f32.mrf.mxu0 }
 0x578   : > { %v7437_v7 = vpop.f32.mrf.mxu1 }
 0x579   : > { %v7715_v27 = vcombine.low %v7434_v15, %v7436_v43  ;;  %v7397_v22 = vpop.f32.mrf.mxu0 }
 0x57a   : > { %v7438_v28 = vpop.f32.mrf.mxu1 }
 0x57b   : > { %v7723_v29 = vrot.slane %v7715_v27, %v12307_v41 }
 0x5b3   : > { %v7474_v9 = vpop.f32.mrf.mxu0 }
 0x5b4   : > { %v7515_v10 = vpop.f32.mrf.mxu1 }
 0x5b5   : > { %v7476_v36 = vpop.f32.mrf.mxu0  ;;  %v7516_v53 = vadd.f32 %v7515_v10, %v7474_v9 }
 0x5b6   : > { %v7517_v46 = vpop.f32.mrf.mxu1 }
 0x5b7   : > { %v7518_v20 = vadd.f32 %v7517_v46, %v7476_v36  ;;  %v7478_v59 = vpop.f32.mrf.mxu0 }
 0x5b8   : > { %v7519_v24 = vpop.f32.mrf.mxu1 }
 0x5b9   : > { %v7716_v47 = vcombine.low %v7516_v53, %v7518_v20  ;;  %v7479_v60 = vpop.f32.mrf.mxu0 }
 0x5ba   : > { %v7520_v16 = vpop.f32.mrf.mxu1 }
 0x5bb   : > { %v7730_v14 = vrot.slane %v7716_v47, %v12307_v41 }
 0x5bd   : > { %v7731_v25 = vcombine.low %v7723_v29, %v7730_v14 }
 0x5bf   : > { %v7753_v21 = vadd.f32 %v7731_v25, %v4888_v30 }
 0x5c1   : > { %7756 = vst [vmem:[%s10464_s29 + $0x8] sm:$0xff] %v7753_v21 }
 0x5f3   : > { %v7556_v50 = vpop.f32.mrf.mxu0 }
 0x5f4   : > { %v7597_v57 = vpop.f32.mrf.mxu1 }
 0x5f5   : > { %v7598_v31 = vadd.f32 %v7597_v57, %v7556_v50  ;;  %v7558_v32 = vpop.f32.mrf.mxu0 }
 0x5f6   : > { %v7599_v34 = vpop.f32.mrf.mxu1 }
 0x5f7   : > { %v7600_v35 = vadd.f32 %v7599_v34, %v7558_v32  ;;  %v7560_v37 = vpop.f32.mrf.mxu0 }
 0x5f8   : > { %v7601_v38 = vpop.f32.mrf.mxu1 }
 0x5f9   : > { %v7732_v40 = vcombine.low %v7598_v31, %v7600_v35  ;;  %v7561_v44 = vpop.f32.mrf.mxu0 }
 0x5fa   : > { %v7602_v45 = vpop.f32.mrf.mxu1 }
 0x5fb   : > { %v7740_v26 = vrot.slane %v7732_v40, %v12307_v41 }
 0x633   : > { %v7638_v48 = vpop.f32.mrf.mxu0 }
 0x634   : > { %v7679_v49 = vpop.f32.mrf.mxu1 }
 0x635   : > { %v7640_v23 = vpop.f32.mrf.mxu0  ;;  %v7680_v11 = vadd.f32 %v7679_v49, %v7638_v48 }
 0x636   : > { %v7681_v56 = vpop.f32.mrf.mxu1 }
 0x637   : > { %v7682_v61 = vadd.f32 %v7681_v56, %v7640_v23  ;;  %v7642_v12 = vpop.f32.mrf.mxu0 }
 0x638   : > { %v7683_v62 = vpop.f32.mrf.mxu1 }
 0x639   : > { %v7733_v63 = vcombine.low %v7680_v11, %v7682_v61  ;;  %v7643_v51 = vpop.f32.mrf.mxu0 }
 0x63a   : > { %v7684_v19 = vpop.f32.mrf.mxu1 }
 0x63b   : > { %v7747_v18 = vrot.slane %v7733_v63, %v12307_v41 }
 0x63d   : > { %v7748_v0 = vcombine.low %v7740_v26, %v7747_v18 }
 0x63f   : > { %v7754_v1 = vadd.f32 %v7748_v0, %v4889_v13 }
 0x641   : > { %7764 = vst.msk [vmem:[%s10464_s29 + $0x10] sm:$0xff] %vm7763_vm1, %v7754_v1 }
 0x642 PF: > { %s16_s25 = sadd.s32 1, %s10372_s25   ;;  %s12406_s21 = smov %s10364_s23 }
 0x643   : > { %p13_p10 = scmp.ge.s32.totalorder %s16_s25, 6   ;;  %s12407_s22 = smov %s10368_s24 }
 0x644   : > { %s12408_s23 = smov %s12411_s26  ;;  %s12409_s24 = smov %s12415_s27 }
 0x645   :  { %15 = sbr.rel (!%p13_p10) target bundleno = 3 (0x3), region = 86 }

</bundles_post_ra>
